<compile_context>
chip_gen: v7x
topology: tpu7x:2x2x1
jax: 0.10.0
libtpu: 0.0.40
codegen_flags: <defaults>
</compile_context>

<pallas_src>
import numpy as np
import jax
import jax.numpy as jnp
from jax import lax
from jax.experimental import pallas as pl
from jax.experimental.pallas import tpu as pltpu

# ---- small test-size configuration (consistent with the module) -------------
B = 2            # batch
H = W = 16       # image size
HW = H * W       # flattened per-image spatial size (256)
L = B * HW       # lane width of the conv feature maps (512, multiple of 128)
M_SINO = 64      # rows of the synthetic forward operator ("sinogram" size)
LAM = 0.1        # Tikhonov weight of the synthetic regulariser
C_IN = 6         # cat([x, adj, x_old, adj_old, grad_new, grad_old]) -> 6 channels
C_HID = 32       # hidden channels of the LGD conv stack


# -----------------------------------------------------------------------------
# Single fused kernel: data term + 4-layer CNN + update, iterated over the grid.
# -----------------------------------------------------------------------------
def _lgd2_kernel(x0_ref, y_ref, a_ref, step_ref, masks_ref,
                 w1_ref, b1_ref, w2_ref, b2_ref, w3_ref, b3_ref, w4_ref, b4_ref,
                 xs_ref, gn_ref,
                 x_scr, xold_scr, adjold_scr, gold_scr):
    it = pl.program_id(0)
    last = pl.num_programs(0) - 1

    @pl.when(it == 0)
    def _():
        x_scr[...] = x0_ref[...]

    # (B, HW) <-> (1, B*HW) layout helpers (128-aligned lane slices / concat).
    def to_lanes(v):
        return jnp.concatenate([v[b:b + 1, :] for b in range(B)], axis=1)

    def from_lanes(v):
        return jnp.concatenate([v[:, b * HW:(b + 1) * HW] for b in range(B)],
                               axis=0)

    x = x_scr[...]                                       # (B, HW) f32
    a = a_ref[...]                                       # (M, HW) f32

    # ---- data term (kept in f32: tiny matmuls, matches the torch numerics) --
    # r = A x - y   contracts HW of x with HW of A (transposed-RHS dot, MXU)
    r = lax.dot_general(x, a, (((1,), (1,)), ((), ())),
                        preferred_element_type=jnp.float32) - y_ref[...]  # (B, M)
    adj = jnp.dot(r, a, preferred_element_type=jnp.float32)               # (B, HW)
    g = LAM * x                                                           # grad reg

    # ---- grad_norm: only the last iteration's value is returned -------------
    @pl.when(it == last)
    def _():
        s = adj + g
        gn_ref[...] = jnp.sqrt(jnp.sum(s * s) + jnp.zeros((1, 128), jnp.float32))

    # ---- lane-dense (1, L) views of the current quantities -------------------
    x_l, adj_l, g_l = to_lanes(x), to_lanes(adj), to_lanes(g)

    @pl.when(it == 0)
    def _():
        xold_scr[...] = x_l
        adjold_scr[...] = adj_l
        gold_scr[...] = g_l

    u = jnp.concatenate([x_l, adj_l, xold_scr[...], adjold_scr[...],
                         g_l, gold_scr[...]], axis=0)    # (6, L) f32

    masks = masks_ref[...]                               # (9, L) f32

    def conv3x3(h, w_ref, b_ref, relu):
        # h: (c_in, L) f32, w_ref: (c_out, 9*c_in) bf16, b_ref: (c_out, 1) f32.
        # One im2col matmul per layer: stack the 9 rolled+masked maps along K.
        pieces = []
        for t in range(9):
            dh, dw = t // 3 - 1, t % 3 - 1
            s = dh * W + dw
            sh = h if s == 0 else pltpu.roll(h, (-s) % L, axis=1)
            if t != 4:                       # center tap mask is all-ones
                sh = sh * masks[t:t + 1, :]  # zero out-of-image / cross-batch taps
            pieces.append(sh)
        buf = jnp.concatenate(pieces, axis=0).astype(jnp.bfloat16)  # (9*c_in, L)
        acc = jnp.dot(w_ref[...], buf, preferred_element_type=jnp.float32)
        acc = acc + b_ref[...]
        return jnp.maximum(acc, 0.0) if relu else acc

    hmap = conv3x3(u, w1_ref, b1_ref, True)
    hmap = conv3x3(hmap, w2_ref, b2_ref, True)
    hmap = conv3x3(hmap, w3_ref, b3_ref, True)
    u0 = conv3x3(hmap, w4_ref, b4_ref, False)            # (1, L) == u[:, 0:1]

    step = step_ref[0, 0]
    x_new_l = x_l - step * (adj_l + g_l + u0)            # x + df, lane layout
    x_new = from_lanes(x_new_l)                          # (B, HW)

    # Module bookkeeping: x_old is assigned AFTER the update in the reference.
    x_scr[...] = x_new
    xold_scr[...] = x_new_l
    adjold_scr[...] = adj_l
    gold_scr[...] = g_l

    xs_ref[0] = x_new                                    # per-iteration iterate


# -----------------------------------------------------------------------------
# Wrapper: mirrors LGD2_normgrad.forward(x, y, n_iter)
# -----------------------------------------------------------------------------
def lgd2_normgrad_forward(x, y, p, n_iter):
    assert x.shape[0] == B
    x0 = x.reshape(B, HW).astype(jnp.float32)
    yf = y.reshape(B, M_SINO).astype(jnp.float32)

    def full2d(arr):
        return pl.BlockSpec(arr.shape, lambda it: (0, 0))

    xs, gn = pl.pallas_call(
        _lgd2_kernel,
        out_shape=(jax.ShapeDtypeStruct((n_iter, B, HW), jnp.float32),
                   jax.ShapeDtypeStruct((1, 128), jnp.float32)),
        grid_spec=pltpu.PrefetchScalarGridSpec(
            num_scalar_prefetch=0,
            grid=(n_iter,),
            in_specs=[
                pl.BlockSpec((B, HW), lambda it: (0, 0)),            # x0
                pl.BlockSpec((B, M_SINO), lambda it: (0, 0)),        # y
                pl.BlockSpec((M_SINO, HW), lambda it: (0, 0)),       # A
                pl.BlockSpec(memory_space=pltpu.MemorySpace.SMEM),   # step_length
                pl.BlockSpec((9, L), lambda it: (0, 0)),             # tap masks
                full2d(p["w1"]), full2d(p["b1"]),
                full2d(p["w2"]), full2d(p["b2"]),
                full2d(p["w3"]), full2d(p["b3"]),
                full2d(p["w4"]), full2d(p["b4"]),
            ],
            out_specs=(
                pl.BlockSpec((1, B, HW), lambda it: (it, 0, 0)),     # x per iter
                pl.BlockSpec((1, 128), lambda it: (0, 0)),           # grad_norm
            ),
            scratch_shapes=[
                pltpu.VMEM((B, HW), jnp.float32),   # current x (matmul layout)
                pltpu.VMEM((1, L), jnp.float32),    # x_old            (lane layout)
                pltpu.VMEM((1, L), jnp.float32),    # adjoint_eval_old (lane layout)
                pltpu.VMEM((1, L), jnp.float32),    # grad_reg_old     (lane layout)
            ],
        ),
        compiler_params=pltpu.CompilerParams(
            dimension_semantics=("arbitrary",)),   # sequential recurrence
    )(x0, yf, p["A"], p["step_length"], p["masks"],
      p["w1"], p["b1"], p["w2"], p["b2"], p["w3"], p["b3"], p["w4"], p["b4"])

    x_list = [xs[i].reshape(B, 1, H, W) for i in range(n_iter)]
    grad_norm = gn[0, 0]
    return x_list[-1], p["step_length"], x_list, grad_norm


# -----------------------------------------------------------------------------
# Parameter construction helpers
# -----------------------------------------------------------------------------
def _tap_masks():
    """(9, B*HW) validity masks: tap (dh,dw) is zero where it reads outside the image."""
    m = np.zeros((9, L), np.float32)
    rows, cols = np.divmod(np.arange(HW), W)
    for t in range(9):
        dh, dw = t // 3 - 1, t % 3 - 1
        ok = ((rows + dh >= 0) & (rows + dh < H) &
              (cols + dw >= 0) & (cols + dw < W)).astype(np.float32)
        m[t] = np.tile(ok, B)
    return jnp.asarray(m)


def _conv_params(key, c_out, c_in, scale=0.1):
    """PyTorch Conv2d weight (c_out, c_in, 3, 3) -> im2col weight (c_out, 9*c_in) bf16
    (K ordered tap-major to match the in-kernel stacking) + f32 bias (c_out, 1)."""
    kw_, kb_ = jax.random.split(key)
    w = scale * jax.random.normal(kw_, (c_out, c_in, 3, 3), jnp.float32)
    w_taps = jnp.transpose(w, (2, 3, 0, 1)).reshape(9, c_out, c_in)      # t = kh*3 + kw
    w_flat = jnp.transpose(w_taps, (1, 0, 2)).reshape(c_out, 9 * c_in)   # [o, t*c_in + c]
    bias = scale * jax.random.normal(kb_, (c_out, 1), jnp.float32)
    return w_flat.astype(jnp.bfloat16), bias


if __name__ == "__main__":
    key = jax.random.PRNGKey(0)
    ks = jax.random.split(key, 8)

    # Synthetic forward operator A (f32; the data term is tiny, keep full precision).
    a = jax.random.normal(ks[0], (M_SINO, HW), jnp.float32) / np.float32(np.sqrt(HW))

    w1, b1 = _conv_params(ks[1], C_HID, C_IN)
    w2, b2 = _conv_params(ks[2], C_HID, C_HID)
    w3, b3 = _conv_params(ks[3], C_HID, C_HID)
    w4, b4 = _conv_params(ks[4], 1, C_HID)

    params = {
        "A": a,
        # Module inits step_length = nn.Parameter(torch.zeros(1,1,1,1)); a
        # non-zero value is used here so the update path is actually exercised.
        "step_length": jnp.full((1, 1), 0.1, jnp.float32),
        "masks": _tap_masks(),
        "w1": w1, "b1": b1, "w2": w2, "b2": b2,
        "w3": w3, "b3": b3, "w4": w4, "b4": b4,
    }

    x0 = jax.random.normal(ks[5], (B, 1, H, W), jnp.float32)
    y = jax.random.normal(ks[6], (B, 1, M_SINO), jnp.float32)

    x_out, step_len, x_list, grad_norm = lgd2_normgrad_forward(x0, y, params, n_iter=2)

    x_out = jax.block_until_ready(x_out)
    grad_norm = jax.block_until_ready(grad_norm)

    assert x_out.shape == (B, 1, H, W)
    assert len(x_list) == 2
    assert np.all(np.isfinite(np.asarray(x_out)))
    assert all(np.all(np.isfinite(np.asarray(xi))) for xi in x_list)
    assert np.isfinite(float(grad_norm))
    print("KERNEL_OK")
</pallas_src>

<mosaic_0001>
module attributes {stable_mosaic.version = 11 : i64} {
  func.func @_lgd2_kernel(%arg0: i32, %arg1: memref<2x256xf32, #tpu.memory_space<vmem>>, %arg2: memref<2x64xf32, #tpu.memory_space<vmem>>, %arg3: memref<64x256xf32, #tpu.memory_space<vmem>>, %arg4: memref<1x1xf32, #tpu.memory_space<smem>>, %arg5: memref<9x512xf32, #tpu.memory_space<vmem>>, %arg6: memref<32x54xbf16, #tpu.memory_space<vmem>>, %arg7: memref<32x1xf32, #tpu.memory_space<vmem>>, %arg8: memref<32x288xbf16, #tpu.memory_space<vmem>>, %arg9: memref<32x1xf32, #tpu.memory_space<vmem>>, %arg10: memref<32x288xbf16, #tpu.memory_space<vmem>>, %arg11: memref<32x1xf32, #tpu.memory_space<vmem>>, %arg12: memref<1x288xbf16, #tpu.memory_space<vmem>>, %arg13: memref<1x1xf32, #tpu.memory_space<vmem>>, %arg14: memref<1x2x256xf32, #tpu.memory_space<vmem>>, %arg15: memref<1x128xf32, #tpu.memory_space<vmem>>, %arg16: memref<2x256xf32, #tpu.memory_space<vmem>>, %arg17: memref<1x512xf32, #tpu.memory_space<vmem>>, %arg18: memref<1x512xf32, #tpu.memory_space<vmem>>, %arg19: memref<1x512xf32, #tpu.memory_space<vmem>>) attributes {dimension_semantics = [#tpu.dimension_semantics<arbitrary>], iteration_bounds = array<i64: 2>, scalar_prefetch = 0 : i64, scratch_operands = 4 : i64, tpu.core_type = #tpu.core_type<tc>, window_params = [{pipeline_mode = #tpu.pipeline_mode<synchronous>, transform_indices = @transform_0, window_bounds = array<i64: 2, 256>}, {pipeline_mode = #tpu.pipeline_mode<synchronous>, transform_indices = @transform_1, window_bounds = array<i64: 2, 64>}, {pipeline_mode = #tpu.pipeline_mode<synchronous>, transform_indices = @transform_2, window_bounds = array<i64: 64, 256>}, {transform_indices = @transform_3, window_bounds = array<i64: 1, 1>}, {pipeline_mode = #tpu.pipeline_mode<synchronous>, transform_indices = @transform_4, window_bounds = array<i64: 9, 512>}, {pipeline_mode = #tpu.pipeline_mode<synchronous>, transform_indices = @transform_5, window_bounds = array<i64: 32, 54>}, {pipeline_mode = #tpu.pipeline_mode<synchronous>, transform_indices = @transform_6, window_bounds = array<i64: 32, 1>}, {pipeline_mode = #tpu.pipeline_mode<synchronous>, transform_indices = @transform_7, window_bounds = array<i64: 32, 288>}, {pipeline_mode = #tpu.pipeline_mode<synchronous>, transform_indices = @transform_8, window_bounds = array<i64: 32, 1>}, {pipeline_mode = #tpu.pipeline_mode<synchronous>, transform_indices = @transform_9, window_bounds = array<i64: 32, 288>}, {pipeline_mode = #tpu.pipeline_mode<synchronous>, transform_indices = @transform_10, window_bounds = array<i64: 32, 1>}, {pipeline_mode = #tpu.pipeline_mode<synchronous>, transform_indices = @transform_11, window_bounds = array<i64: 1, 288>}, {pipeline_mode = #tpu.pipeline_mode<synchronous>, transform_indices = @transform_12, window_bounds = array<i64: 1, 1>}, {transform_indices = @transform_13, window_bounds = array<i64: 1, 2, 256>}, {pipeline_mode = #tpu.pipeline_mode<synchronous>, transform_indices = @transform_14, window_bounds = array<i64: 1, 128>}]} {
    %c0_i32 = arith.constant 0 : i32
    %0 = arith.cmpi eq, %arg0, %c0_i32 : i32
    %1 = arith.extui %0 : i1 to i32
    %c0_i32_0 = arith.constant 0 : i32
    %2 = arith.cmpi ne, %1, %c0_i32_0 : i32
    scf.if %2 {
      %c0_80 = arith.constant 0 : index
      %c0_81 = arith.constant 0 : index
      %209 = vector.load %arg1[%c0_80, %c0_81] : memref<2x256xf32, #tpu.memory_space<vmem>>, vector<2x256xf32>
      %c0_82 = arith.constant 0 : index
      %c0_83 = arith.constant 0 : index
      %210 = vector.load %arg16[%c0_82, %c0_83] : memref<2x256xf32, #tpu.memory_space<vmem>>, vector<2x256xf32>
      tpu.vector_store %arg16[%c0_82, %c0_83], %209 {strides = array<i32>} : memref<2x256xf32, #tpu.memory_space<vmem>>, vector<2x256xf32>,
    } else {
    }
    %c0 = arith.constant 0 : index
    %c0_1 = arith.constant 0 : index
    %3 = vector.load %arg16[%c0, %c0_1] : memref<2x256xf32, #tpu.memory_space<vmem>>, vector<2x256xf32>
    %c0_2 = arith.constant 0 : index
    %c0_3 = arith.constant 0 : index
    %4 = vector.load %arg3[%c0_2, %c0_3] : memref<64x256xf32, #tpu.memory_space<vmem>>, vector<64x256xf32>
    %cst = arith.constant dense<0.000000e+00> : vector<2x64xf32>
    %5 = tpu.matmul %3, %4, %cst {dimension_numbers = #tpu.dot_dimension_numbers<[1], [1], [0], [0], [0, 0, 1, 0], [], []>} : vector<2x256xf32>, vector<64x256xf32>, vector<2x64xf32> -> vector<2x64xf32>
    %c0_4 = arith.constant 0 : index
    %c0_5 = arith.constant 0 : index
    %6 = vector.load %arg2[%c0_4, %c0_5] : memref<2x64xf32, #tpu.memory_space<vmem>>, vector<2x64xf32>
    %7 = arith.subf %5, %6 : vector<2x64xf32>
    %cst_6 = arith.constant dense<0.000000e+00> : vector<2x256xf32>
    %8 = tpu.matmul %7, %4, %cst_6 {dimension_numbers = #tpu.dot_dimension_numbers<[1], [0], [0], [1], [0, 0, 1, 1], [], []>} : vector<2x64xf32>, vector<64x256xf32>, vector<2x256xf32> -> vector<2x256xf32>
    %cst_7 = arith.constant 1.000000e-01 : f32
    %9 = vector.broadcast %cst_7 : f32 to vector<2x256xf32>
    %10 = arith.mulf %9, %3 : vector<2x256xf32>
    %c1_i32 = arith.constant 1 : i32
    %11 = arith.cmpi eq, %arg0, %c1_i32 : i32
    %12 = arith.extui %11 : i1 to i32
    %c0_i32_8 = arith.constant 0 : i32
    %13 = arith.cmpi ne, %12, %c0_i32_8 : i32
    scf.if %13 {
      %209 = arith.addf %8, %10 : vector<2x256xf32>
      %210 = arith.mulf %209, %209 : vector<2x256xf32>
      %211 = vector.shape_cast %210 : vector<2x256xf32> to vector<1x2x256xf32>
      %cst_80 = arith.constant dense<0.000000e+00> : vector<1xf32>
      %212 = vector.multi_reduction <add>, %211, %cst_80 [1, 2] : vector<1x2x256xf32> to vector<1xf32>
      %213 = vector.shape_cast %212 : vector<1xf32> to vector<1x1x1xf32>
      %214 = vector.extract %213[0, 0, 0] : f32 from vector<1x1x1xf32>
      %cst_81 = arith.constant 0.000000e+00 : f32
      %215 = vector.broadcast %cst_81 : f32 to vector<1x128xf32>
      %216 = vector.broadcast %214 : f32 to vector<1x128xf32>
      %217 = arith.addf %216, %215 : vector<1x128xf32>
      %218 = math.sqrt %217 : vector<1x128xf32>
      %c0_82 = arith.constant 0 : index
      %c0_83 = arith.constant 0 : index
      %219 = vector.load %arg15[%c0_82, %c0_83] : memref<1x128xf32, #tpu.memory_space<vmem>>, vector<1x128xf32>
      tpu.vector_store %arg15[%c0_82, %c0_83], %218 {strides = array<i32>} : memref<1x128xf32, #tpu.memory_space<vmem>>, vector<1x128xf32>,
    } else {
    }
    %14 = vector.extract_strided_slice %3 {offsets = [0, 0], sizes = [1, 256], strides = [1, 1]} : vector<2x256xf32> to vector<1x256xf32>
    %15 = vector.extract_strided_slice %3 {offsets = [1, 0], sizes = [1, 256], strides = [1, 1]} : vector<2x256xf32> to vector<1x256xf32>
    %16 = tpu.concatenate %14, %15 in 1 : vector<1x256xf32>, vector<1x256xf32> -> vector<1x512xf32>
    %17 = vector.extract_strided_slice %8 {offsets = [0, 0], sizes = [1, 256], strides = [1, 1]} : vector<2x256xf32> to vector<1x256xf32>
    %18 = vector.extract_strided_slice %8 {offsets = [1, 0], sizes = [1, 256], strides = [1, 1]} : vector<2x256xf32> to vector<1x256xf32>
    %19 = tpu.concatenate %17, %18 in 1 : vector<1x256xf32>, vector<1x256xf32> -> vector<1x512xf32>
    %20 = vector.extract_strided_slice %10 {offsets = [0, 0], sizes = [1, 256], strides = [1, 1]} : vector<2x256xf32> to vector<1x256xf32>
    %21 = vector.extract_strided_slice %10 {offsets = [1, 0], sizes = [1, 256], strides = [1, 1]} : vector<2x256xf32> to vector<1x256xf32>
    %22 = tpu.concatenate %20, %21 in 1 : vector<1x256xf32>, vector<1x256xf32> -> vector<1x512xf32>
    %c0_i32_9 = arith.constant 0 : i32
    %23 = arith.cmpi eq, %arg0, %c0_i32_9 : i32
    %24 = arith.extui %23 : i1 to i32
    %c0_i32_10 = arith.constant 0 : i32
    %25 = arith.cmpi ne, %24, %c0_i32_10 : i32
    scf.if %25 {
      %c0_80 = arith.constant 0 : index
      %c0_81 = arith.constant 0 : index
      %209 = vector.load %arg17[%c0_80, %c0_81] : memref<1x512xf32, #tpu.memory_space<vmem>>, vector<1x512xf32>
      tpu.vector_store %arg17[%c0_80, %c0_81], %16 {strides = array<i32>} : memref<1x512xf32, #tpu.memory_space<vmem>>, vector<1x512xf32>,
      %c0_82 = arith.constant 0 : index
      %c0_83 = arith.constant 0 : index
      %210 = vector.load %arg18[%c0_82, %c0_83] : memref<1x512xf32, #tpu.memory_space<vmem>>, vector<1x512xf32>
      tpu.vector_store %arg18[%c0_82, %c0_83], %19 {strides = array<i32>} : memref<1x512xf32, #tpu.memory_space<vmem>>, vector<1x512xf32>,
      %c0_84 = arith.constant 0 : index
      %c0_85 = arith.constant 0 : index
      %211 = vector.load %arg19[%c0_84, %c0_85] : memref<1x512xf32, #tpu.memory_space<vmem>>, vector<1x512xf32>
      tpu.vector_store %arg19[%c0_84, %c0_85], %22 {strides = array<i32>} : memref<1x512xf32, #tpu.memory_space<vmem>>, vector<1x512xf32>,
    } else {
    }
    %c0_11 = arith.constant 0 : index
    %c0_12 = arith.constant 0 : index
    %26 = vector.load %arg17[%c0_11, %c0_12] : memref<1x512xf32, #tpu.memory_space<vmem>>, vector<1x512xf32>
    %c0_13 = arith.constant 0 : index
    %c0_14 = arith.constant 0 : index
    %27 = vector.load %arg18[%c0_13, %c0_14] : memref<1x512xf32, #tpu.memory_space<vmem>>, vector<1x512xf32>
    %c0_15 = arith.constant 0 : index
    %c0_16 = arith.constant 0 : index
    %28 = vector.load %arg19[%c0_15, %c0_16] : memref<1x512xf32, #tpu.memory_space<vmem>>, vector<1x512xf32>
    %29 = tpu.concatenate %16, %19, %26, %27, %22, %28 in 0 : vector<1x512xf32>, vector<1x512xf32>, vector<1x512xf32>, vector<1x512xf32>, vector<1x512xf32>, vector<1x512xf32> -> vector<6x512xf32>
    %c0_17 = arith.constant 0 : index
    %c0_18 = arith.constant 0 : index
    %30 = vector.load %arg5[%c0_17, %c0_18] : memref<9x512xf32, #tpu.memory_space<vmem>>, vector<9x512xf32>
    %c17_i32 = arith.constant 17 : i32
    %31 = tpu.dynamic_rotate %29 by %c17_i32 dim 1 : vector<6x512xf32>, i32 -> vector<6x512xf32>
    %32 = vector.extract_strided_slice %30 {offsets = [0, 0], sizes = [1, 512], strides = [1, 1]} : vector<9x512xf32> to vector<1x512xf32>
    %33 = vector.broadcast %32 : vector<1x512xf32> to vector<6x512xf32>
    %34 = arith.mulf %31, %33 : vector<6x512xf32>
    %c16_i32 = arith.constant 16 : i32
    %35 = tpu.dynamic_rotate %29 by %c16_i32 dim 1 : vector<6x512xf32>, i32 -> vector<6x512xf32>
    %36 = vector.extract_strided_slice %30 {offsets = [1, 0], sizes = [1, 512], strides = [1, 1]} : vector<9x512xf32> to vector<1x512xf32>
    %37 = vector.broadcast %36 : vector<1x512xf32> to vector<6x512xf32>
    %38 = arith.mulf %35, %37 : vector<6x512xf32>
    %c15_i32 = arith.constant 15 : i32
    %39 = tpu.dynamic_rotate %29 by %c15_i32 dim 1 : vector<6x512xf32>, i32 -> vector<6x512xf32>
    %40 = vector.extract_strided_slice %30 {offsets = [2, 0], sizes = [1, 512], strides = [1, 1]} : vector<9x512xf32> to vector<1x512xf32>
    %41 = vector.broadcast %40 : vector<1x512xf32> to vector<6x512xf32>
    %42 = arith.mulf %39, %41 : vector<6x512xf32>
    %c1_i32_19 = arith.constant 1 : i32
    %43 = tpu.dynamic_rotate %29 by %c1_i32_19 dim 1 : vector<6x512xf32>, i32 -> vector<6x512xf32>
    %44 = vector.extract_strided_slice %30 {offsets = [3, 0], sizes = [1, 512], strides = [1, 1]} : vector<9x512xf32> to vector<1x512xf32>
    %45 = vector.broadcast %44 : vector<1x512xf32> to vector<6x512xf32>
    %46 = arith.mulf %43, %45 : vector<6x512xf32>
    %c511_i32 = arith.constant 511 : i32
    %47 = tpu.dynamic_rotate %29 by %c511_i32 dim 1 : vector<6x512xf32>, i32 -> vector<6x512xf32>
    %48 = vector.extract_strided_slice %30 {offsets = [5, 0], sizes = [1, 512], strides = [1, 1]} : vector<9x512xf32> to vector<1x512xf32>
    %49 = vector.broadcast %48 : vector<1x512xf32> to vector<6x512xf32>
    %50 = arith.mulf %47, %49 : vector<6x512xf32>
    %c497_i32 = arith.constant 497 : i32
    %51 = tpu.dynamic_rotate %29 by %c497_i32 dim 1 : vector<6x512xf32>, i32 -> vector<6x512xf32>
    %52 = vector.extract_strided_slice %30 {offsets = [6, 0], sizes = [1, 512], strides = [1, 1]} : vector<9x512xf32> to vector<1x512xf32>
    %53 = vector.broadcast %52 : vector<1x512xf32> to vector<6x512xf32>
    %54 = arith.mulf %51, %53 : vector<6x512xf32>
    %c496_i32 = arith.constant 496 : i32
    %55 = tpu.dynamic_rotate %29 by %c496_i32 dim 1 : vector<6x512xf32>, i32 -> vector<6x512xf32>
    %56 = vector.extract_strided_slice %30 {offsets = [7, 0], sizes = [1, 512], strides = [1, 1]} : vector<9x512xf32> to vector<1x512xf32>
    %57 = vector.broadcast %56 : vector<1x512xf32> to vector<6x512xf32>
    %58 = arith.mulf %55, %57 : vector<6x512xf32>
    %c495_i32 = arith.constant 495 : i32
    %59 = tpu.dynamic_rotate %29 by %c495_i32 dim 1 : vector<6x512xf32>, i32 -> vector<6x512xf32>
    %60 = vector.extract_strided_slice %30 {offsets = [8, 0], sizes = [1, 512], strides = [1, 1]} : vector<9x512xf32> to vector<1x512xf32>
    %61 = vector.broadcast %60 : vector<1x512xf32> to vector<6x512xf32>
    %62 = arith.mulf %59, %61 : vector<6x512xf32>
    %63 = tpu.concatenate %34, %38, %42, %46, %29, %50, %54, %58, %62 in 0 : vector<6x512xf32>, vector<6x512xf32>, vector<6x512xf32>, vector<6x512xf32>, vector<6x512xf32>, vector<6x512xf32>, vector<6x512xf32>, vector<6x512xf32>, vector<6x512xf32> -> vector<54x512xf32>
    %64 = arith.truncf %63 : vector<54x512xf32> to vector<54x512xbf16>
    %c0_20 = arith.constant 0 : index
    %c0_21 = arith.constant 0 : index
    %65 = vector.load %arg6[%c0_20, %c0_21] : memref<32x54xbf16, #tpu.memory_space<vmem>>, vector<32x54xbf16>
    %cst_22 = arith.constant dense<0.000000e+00> : vector<32x512xf32>
    %66 = tpu.matmul %65, %64, %cst_22 {dimension_numbers = #tpu.dot_dimension_numbers<[1], [0], [0], [1], [0, 0, 1, 1], [], []>} : vector<32x54xbf16>, vector<54x512xbf16>, vector<32x512xf32> -> vector<32x512xf32>
    %c0_23 = arith.constant 0 : index
    %c0_24 = arith.constant 0 : index
    %67 = vector.load %arg7[%c0_23, %c0_24] : memref<32x1xf32, #tpu.memory_space<vmem>>, vector<32x1xf32>
    %68 = vector.broadcast %67 : vector<32x1xf32> to vector<32x512xf32>
    %69 = arith.addf %66, %68 : vector<32x512xf32>
    %cst_25 = arith.constant 0.000000e+00 : f32
    %70 = vector.broadcast %cst_25 : f32 to vector<32x512xf32>
    %71 = arith.maximumf %69, %70 : vector<32x512xf32>
    %c17_i32_26 = arith.constant 17 : i32
    %72 = tpu.dynamic_rotate %71 by %c17_i32_26 dim 1 : vector<32x512xf32>, i32 -> vector<32x512xf32>
    %73 = vector.extract_strided_slice %30 {offsets = [0, 0], sizes = [1, 512], strides = [1, 1]} : vector<9x512xf32> to vector<1x512xf32>
    %74 = vector.broadcast %73 : vector<1x512xf32> to vector<32x512xf32>
    %75 = arith.mulf %72, %74 : vector<32x512xf32>
    %c16_i32_27 = arith.constant 16 : i32
    %76 = tpu.dynamic_rotate %71 by %c16_i32_27 dim 1 : vector<32x512xf32>, i32 -> vector<32x512xf32>
    %77 = vector.extract_strided_slice %30 {offsets = [1, 0], sizes = [1, 512], strides = [1, 1]} : vector<9x512xf32> to vector<1x512xf32>
    %78 = vector.broadcast %77 : vector<1x512xf32> to vector<32x512xf32>
    %79 = arith.mulf %76, %78 : vector<32x512xf32>
    %c15_i32_28 = arith.constant 15 : i32
    %80 = tpu.dynamic_rotate %71 by %c15_i32_28 dim 1 : vector<32x512xf32>, i32 -> vector<32x512xf32>
    %81 = vector.extract_strided_slice %30 {offsets = [2, 0], sizes = [1, 512], strides = [1, 1]} : vector<9x512xf32> to vector<1x512xf32>
    %82 = vector.broadcast %81 : vector<1x512xf32> to vector<32x512xf32>
    %83 = arith.mulf %80, %82 : vector<32x512xf32>
    %c1_i32_29 = arith.constant 1 : i32
    %84 = tpu.dynamic_rotate %71 by %c1_i32_29 dim 1 : vector<32x512xf32>, i32 -> vector<32x512xf32>
    %85 = vector.extract_strided_slice %30 {offsets = [3, 0], sizes = [1, 512], strides = [1, 1]} : vector<9x512xf32> to vector<1x512xf32>
    %86 = vector.broadcast %85 : vector<1x512xf32> to vector<32x512xf32>
    %87 = arith.mulf %84, %86 : vector<32x512xf32>
    %c511_i32_30 = arith.constant 511 : i32
    %88 = tpu.dynamic_rotate %71 by %c511_i32_30 dim 1 : vector<32x512xf32>, i32 -> vector<32x512xf32>
    %89 = vector.extract_strided_slice %30 {offsets = [5, 0], sizes = [1, 512], strides = [1, 1]} : vector<9x512xf32> to vector<1x512xf32>
    %90 = vector.broadcast %89 : vector<1x512xf32> to vector<32x512xf32>
    %91 = arith.mulf %88, %90 : vector<32x512xf32>
    %c497_i32_31 = arith.constant 497 : i32
    %92 = tpu.dynamic_rotate %71 by %c497_i32_31 dim 1 : vector<32x512xf32>, i32 -> vector<32x512xf32>
    %93 = vector.extract_strided_slice %30 {offsets = [6, 0], sizes = [1, 512], strides = [1, 1]} : vector<9x512xf32> to vector<1x512xf32>
    %94 = vector.broadcast %93 : vector<1x512xf32> to vector<32x512xf32>
    %95 = arith.mulf %92, %94 : vector<32x512xf32>
    %c496_i32_32 = arith.constant 496 : i32
    %96 = tpu.dynamic_rotate %71 by %c496_i32_32 dim 1 : vector<32x512xf32>, i32 -> vector<32x512xf32>
    %97 = vector.extract_strided_slice %30 {offsets = [7, 0], sizes = [1, 512], strides = [1, 1]} : vector<9x512xf32> to vector<1x512xf32>
    %98 = vector.broadcast %97 : vector<1x512xf32> to vector<32x512xf32>
    %99 = arith.mulf %96, %98 : vector<32x512xf32>
    %c495_i32_33 = arith.constant 495 : i32
    %100 = tpu.dynamic_rotate %71 by %c495_i32_33 dim 1 : vector<32x512xf32>, i32 -> vector<32x512xf32>
    %101 = vector.extract_strided_slice %30 {offsets = [8, 0], sizes = [1, 512], strides = [1, 1]} : vector<9x512xf32> to vector<1x512xf32>
    %102 = vector.broadcast %101 : vector<1x512xf32> to vector<32x512xf32>
    %103 = arith.mulf %100, %102 : vector<32x512xf32>
    %104 = tpu.concatenate %75, %79, %83, %87, %71, %91, %95, %99, %103 in 0 : vector<32x512xf32>, vector<32x512xf32>, vector<32x512xf32>, vector<32x512xf32>, vector<32x512xf32>, vector<32x512xf32>, vector<32x512xf32>, vector<32x512xf32>, vector<32x512xf32> -> vector<288x512xf32>
    %105 = arith.truncf %104 : vector<288x512xf32> to vector<288x512xbf16>
    %c0_34 = arith.constant 0 : index
    %c0_35 = arith.constant 0 : index
    %106 = vector.load %arg8[%c0_34, %c0_35] : memref<32x288xbf16, #tpu.memory_space<vmem>>, vector<32x288xbf16>
    %cst_36 = arith.constant dense<0.000000e+00> : vector<32x512xf32>
    %107 = tpu.matmul %106, %105, %cst_36 {dimension_numbers = #tpu.dot_dimension_numbers<[1], [0], [0], [1], [0, 0, 1, 1], [], []>} : vector<32x288xbf16>, vector<288x512xbf16>, vector<32x512xf32> -> vector<32x512xf32>
    %c0_37 = arith.constant 0 : index
    %c0_38 = arith.constant 0 : index
    %108 = vector.load %arg9[%c0_37, %c0_38] : memref<32x1xf32, #tpu.memory_space<vmem>>, vector<32x1xf32>
    %109 = vector.broadcast %108 : vector<32x1xf32> to vector<32x512xf32>
    %110 = arith.addf %107, %109 : vector<32x512xf32>
    %cst_39 = arith.constant 0.000000e+00 : f32
    %111 = vector.broadcast %cst_39 : f32 to vector<32x512xf32>
    %112 = arith.maximumf %110, %111 : vector<32x512xf32>
    %c17_i32_40 = arith.constant 17 : i32
    %113 = tpu.dynamic_rotate %112 by %c17_i32_40 dim 1 : vector<32x512xf32>, i32 -> vector<32x512xf32>
    %114 = vector.extract_strided_slice %30 {offsets = [0, 0], sizes = [1, 512], strides = [1, 1]} : vector<9x512xf32> to vector<1x512xf32>
    %115 = vector.broadcast %114 : vector<1x512xf32> to vector<32x512xf32>
    %116 = arith.mulf %113, %115 : vector<32x512xf32>
    %c16_i32_41 = arith.constant 16 : i32
    %117 = tpu.dynamic_rotate %112 by %c16_i32_41 dim 1 : vector<32x512xf32>, i32 -> vector<32x512xf32>
    %118 = vector.extract_strided_slice %30 {offsets = [1, 0], sizes = [1, 512], strides = [1, 1]} : vector<9x512xf32> to vector<1x512xf32>
    %119 = vector.broadcast %118 : vector<1x512xf32> to vector<32x512xf32>
    %120 = arith.mulf %117, %119 : vector<32x512xf32>
    %c15_i32_42 = arith.constant 15 : i32
    %121 = tpu.dynamic_rotate %112 by %c15_i32_42 dim 1 : vector<32x512xf32>, i32 -> vector<32x512xf32>
    %122 = vector.extract_strided_slice %30 {offsets = [2, 0], sizes = [1, 512], strides = [1, 1]} : vector<9x512xf32> to vector<1x512xf32>
    %123 = vector.broadcast %122 : vector<1x512xf32> to vector<32x512xf32>
    %124 = arith.mulf %121, %123 : vector<32x512xf32>
    %c1_i32_43 = arith.constant 1 : i32
    %125 = tpu.dynamic_rotate %112 by %c1_i32_43 dim 1 : vector<32x512xf32>, i32 -> vector<32x512xf32>
    %126 = vector.extract_strided_slice %30 {offsets = [3, 0], sizes = [1, 512], strides = [1, 1]} : vector<9x512xf32> to vector<1x512xf32>
    %127 = vector.broadcast %126 : vector<1x512xf32> to vector<32x512xf32>
    %128 = arith.mulf %125, %127 : vector<32x512xf32>
    %c511_i32_44 = arith.constant 511 : i32
    %129 = tpu.dynamic_rotate %112 by %c511_i32_44 dim 1 : vector<32x512xf32>, i32 -> vector<32x512xf32>
    %130 = vector.extract_strided_slice %30 {offsets = [5, 0], sizes = [1, 512], strides = [1, 1]} : vector<9x512xf32> to vector<1x512xf32>
    %131 = vector.broadcast %130 : vector<1x512xf32> to vector<32x512xf32>
    %132 = arith.mulf %129, %131 : vector<32x512xf32>
    %c497_i32_45 = arith.constant 497 : i32
    %133 = tpu.dynamic_rotate %112 by %c497_i32_45 dim 1 : vector<32x512xf32>, i32 -> vector<32x512xf32>
    %134 = vector.extract_strided_slice %30 {offsets = [6, 0], sizes = [1, 512], strides = [1, 1]} : vector<9x512xf32> to vector<1x512xf32>
    %135 = vector.broadcast %134 : vector<1x512xf32> to vector<32x512xf32>
    %136 = arith.mulf %133, %135 : vector<32x512xf32>
    %c496_i32_46 = arith.constant 496 : i32
    %137 = tpu.dynamic_rotate %112 by %c496_i32_46 dim 1 : vector<32x512xf32>, i32 -> vector<32x512xf32>
    %138 = vector.extract_strided_slice %30 {offsets = [7, 0], sizes = [1, 512], strides = [1, 1]} : vector<9x512xf32> to vector<1x512xf32>
    %139 = vector.broadcast %138 : vector<1x512xf32> to vector<32x512xf32>
    %140 = arith.mulf %137, %139 : vector<32x512xf32>
    %c495_i32_47 = arith.constant 495 : i32
    %141 = tpu.dynamic_rotate %112 by %c495_i32_47 dim 1 : vector<32x512xf32>, i32 -> vector<32x512xf32>
    %142 = vector.extract_strided_slice %30 {offsets = [8, 0], sizes = [1, 512], strides = [1, 1]} : vector<9x512xf32> to vector<1x512xf32>
    %143 = vector.broadcast %142 : vector<1x512xf32> to vector<32x512xf32>
    %144 = arith.mulf %141, %143 : vector<32x512xf32>
    %145 = tpu.concatenate %116, %120, %124, %128, %112, %132, %136, %140, %144 in 0 : vector<32x512xf32>, vector<32x512xf32>, vector<32x512xf32>, vector<32x512xf32>, vector<32x512xf32>, vector<32x512xf32>, vector<32x512xf32>, vector<32x512xf32>, vector<32x512xf32> -> vector<288x512xf32>
    %146 = arith.truncf %145 : vector<288x512xf32> to vector<288x512xbf16>
    %c0_48 = arith.constant 0 : index
    %c0_49 = arith.constant 0 : index
    %147 = vector.load %arg10[%c0_48, %c0_49] : memref<32x288xbf16, #tpu.memory_space<vmem>>, vector<32x288xbf16>
    %cst_50 = arith.constant dense<0.000000e+00> : vector<32x512xf32>
    %148 = tpu.matmul %147, %146, %cst_50 {dimension_numbers = #tpu.dot_dimension_numbers<[1], [0], [0], [1], [0, 0, 1, 1], [], []>} : vector<32x288xbf16>, vector<288x512xbf16>, vector<32x512xf32> -> vector<32x512xf32>
    %c0_51 = arith.constant 0 : index
    %c0_52 = arith.constant 0 : index
    %149 = vector.load %arg11[%c0_51, %c0_52] : memref<32x1xf32, #tpu.memory_space<vmem>>, vector<32x1xf32>
    %150 = vector.broadcast %149 : vector<32x1xf32> to vector<32x512xf32>
    %151 = arith.addf %148, %150 : vector<32x512xf32>
    %cst_53 = arith.constant 0.000000e+00 : f32
    %152 = vector.broadcast %cst_53 : f32 to vector<32x512xf32>
    %153 = arith.maximumf %151, %152 : vector<32x512xf32>
    %c17_i32_54 = arith.constant 17 : i32
    %154 = tpu.dynamic_rotate %153 by %c17_i32_54 dim 1 : vector<32x512xf32>, i32 -> vector<32x512xf32>
    %155 = vector.extract_strided_slice %30 {offsets = [0, 0], sizes = [1, 512], strides = [1, 1]} : vector<9x512xf32> to vector<1x512xf32>
    %156 = vector.broadcast %155 : vector<1x512xf32> to vector<32x512xf32>
    %157 = arith.mulf %154, %156 : vector<32x512xf32>
    %c16_i32_55 = arith.constant 16 : i32
    %158 = tpu.dynamic_rotate %153 by %c16_i32_55 dim 1 : vector<32x512xf32>, i32 -> vector<32x512xf32>
    %159 = vector.extract_strided_slice %30 {offsets = [1, 0], sizes = [1, 512], strides = [1, 1]} : vector<9x512xf32> to vector<1x512xf32>
    %160 = vector.broadcast %159 : vector<1x512xf32> to vector<32x512xf32>
    %161 = arith.mulf %158, %160 : vector<32x512xf32>
    %c15_i32_56 = arith.constant 15 : i32
    %162 = tpu.dynamic_rotate %153 by %c15_i32_56 dim 1 : vector<32x512xf32>, i32 -> vector<32x512xf32>
    %163 = vector.extract_strided_slice %30 {offsets = [2, 0], sizes = [1, 512], strides = [1, 1]} : vector<9x512xf32> to vector<1x512xf32>
    %164 = vector.broadcast %163 : vector<1x512xf32> to vector<32x512xf32>
    %165 = arith.mulf %162, %164 : vector<32x512xf32>
    %c1_i32_57 = arith.constant 1 : i32
    %166 = tpu.dynamic_rotate %153 by %c1_i32_57 dim 1 : vector<32x512xf32>, i32 -> vector<32x512xf32>
    %167 = vector.extract_strided_slice %30 {offsets = [3, 0], sizes = [1, 512], strides = [1, 1]} : vector<9x512xf32> to vector<1x512xf32>
    %168 = vector.broadcast %167 : vector<1x512xf32> to vector<32x512xf32>
    %169 = arith.mulf %166, %168 : vector<32x512xf32>
    %c511_i32_58 = arith.constant 511 : i32
    %170 = tpu.dynamic_rotate %153 by %c511_i32_58 dim 1 : vector<32x512xf32>, i32 -> vector<32x512xf32>
    %171 = vector.extract_strided_slice %30 {offsets = [5, 0], sizes = [1, 512], strides = [1, 1]} : vector<9x512xf32> to vector<1x512xf32>
    %172 = vector.broadcast %171 : vector<1x512xf32> to vector<32x512xf32>
    %173 = arith.mulf %170, %172 : vector<32x512xf32>
    %c497_i32_59 = arith.constant 497 : i32
    %174 = tpu.dynamic_rotate %153 by %c497_i32_59 dim 1 : vector<32x512xf32>, i32 -> vector<32x512xf32>
    %175 = vector.extract_strided_slice %30 {offsets = [6, 0], sizes = [1, 512], strides = [1, 1]} : vector<9x512xf32> to vector<1x512xf32>
    %176 = vector.broadcast %175 : vector<1x512xf32> to vector<32x512xf32>
    %177 = arith.mulf %174, %176 : vector<32x512xf32>
    %c496_i32_60 = arith.constant 496 : i32
    %178 = tpu.dynamic_rotate %153 by %c496_i32_60 dim 1 : vector<32x512xf32>, i32 -> vector<32x512xf32>
    %179 = vector.extract_strided_slice %30 {offsets = [7, 0], sizes = [1, 512], strides = [1, 1]} : vector<9x512xf32> to vector<1x512xf32>
    %180 = vector.broadcast %179 : vector<1x512xf32> to vector<32x512xf32>
    %181 = arith.mulf %178, %180 : vector<32x512xf32>
    %c495_i32_61 = arith.constant 495 : i32
    %182 = tpu.dynamic_rotate %153 by %c495_i32_61 dim 1 : vector<32x512xf32>, i32 -> vector<32x512xf32>
    %183 = vector.extract_strided_slice %30 {offsets = [8, 0], sizes = [1, 512], strides = [1, 1]} : vector<9x512xf32> to vector<1x512xf32>
    %184 = vector.broadcast %183 : vector<1x512xf32> to vector<32x512xf32>
    %185 = arith.mulf %182, %184 : vector<32x512xf32>
    %186 = tpu.concatenate %157, %161, %165, %169, %153, %173, %177, %181, %185 in 0 : vector<32x512xf32>, vector<32x512xf32>, vector<32x512xf32>, vector<32x512xf32>, vector<32x512xf32>, vector<32x512xf32>, vector<32x512xf32>, vector<32x512xf32>, vector<32x512xf32> -> vector<288x512xf32>
    %187 = arith.truncf %186 : vector<288x512xf32> to vector<288x512xbf16>
    %c0_62 = arith.constant 0 : index
    %c0_63 = arith.constant 0 : index
    %188 = vector.load %arg12[%c0_62, %c0_63] : memref<1x288xbf16, #tpu.memory_space<vmem>>, vector<1x288xbf16>
    %cst_64 = arith.constant dense<0.000000e+00> : vector<1x512xf32>
    %189 = tpu.matmul %188, %187, %cst_64 {dimension_numbers = #tpu.dot_dimension_numbers<[1], [0], [0], [1], [0, 0, 1, 1], [], []>} : vector<1x288xbf16>, vector<288x512xbf16>, vector<1x512xf32> -> vector<1x512xf32>
    %c0_65 = arith.constant 0 : index
    %c0_66 = arith.constant 0 : index
    %190 = vector.load %arg13[%c0_65, %c0_66] : memref<1x1xf32, #tpu.memory_space<vmem>>, vector<1x1xf32>
    %191 = vector.broadcast %190 : vector<1x1xf32> to vector<1x512xf32>
    %192 = arith.addf %189, %191 : vector<1x512xf32>
    %c0_67 = arith.constant 0 : index
    %c0_68 = arith.constant 0 : index
    %193 = memref.load %arg4[%c0_67, %c0_68] : memref<1x1xf32, #tpu.memory_space<smem>>
    %194 = arith.addf %19, %22 : vector<1x512xf32>
    %195 = arith.addf %194, %192 : vector<1x512xf32>
    %196 = vector.broadcast %193 : f32 to vector<1x512xf32>
    %197 = arith.mulf %196, %195 : vector<1x512xf32>
    %198 = arith.subf %16, %197 : vector<1x512xf32>
    %199 = vector.extract_strided_slice %198 {offsets = [0, 0], sizes = [1, 256], strides = [1, 1]} : vector<1x512xf32> to vector<1x256xf32>
    %200 = vector.extract_strided_slice %198 {offsets = [0, 256], sizes = [1, 256], strides = [1, 1]} : vector<1x512xf32> to vector<1x256xf32>
    %201 = tpu.concatenate %199, %200 in 0 : vector<1x256xf32>, vector<1x256xf32> -> vector<2x256xf32>
    %c0_69 = arith.constant 0 : index
    %c0_70 = arith.constant 0 : index
    %202 = vector.load %arg16[%c0_69, %c0_70] : memref<2x256xf32, #tpu.memory_space<vmem>>, vector<2x256xf32>
    tpu.vector_store %arg16[%c0_69, %c0_70], %201 {strides = array<i32>} : memref<2x256xf32, #tpu.memory_space<vmem>>, vector<2x256xf32>,
    %c0_71 = arith.constant 0 : index
    %c0_72 = arith.constant 0 : index
    %203 = vector.load %arg17[%c0_71, %c0_72] : memref<1x512xf32, #tpu.memory_space<vmem>>, vector<1x512xf32>
    tpu.vector_store %arg17[%c0_71, %c0_72], %198 {strides = array<i32>} : memref<1x512xf32, #tpu.memory_space<vmem>>, vector<1x512xf32>,
    %c0_73 = arith.constant 0 : index
    %c0_74 = arith.constant 0 : index
    %204 = vector.load %arg18[%c0_73, %c0_74] : memref<1x512xf32, #tpu.memory_space<vmem>>, vector<1x512xf32>
    tpu.vector_store %arg18[%c0_73, %c0_74], %19 {strides = array<i32>} : memref<1x512xf32, #tpu.memory_space<vmem>>, vector<1x512xf32>,
    %c0_75 = arith.constant 0 : index
    %c0_76 = arith.constant 0 : index
    %205 = vector.load %arg19[%c0_75, %c0_76] : memref<1x512xf32, #tpu.memory_space<vmem>>, vector<1x512xf32>
    tpu.vector_store %arg19[%c0_75, %c0_76], %22 {strides = array<i32>} : memref<1x512xf32, #tpu.memory_space<vmem>>, vector<1x512xf32>,
    %c0_77 = arith.constant 0 : index
    %c0_78 = arith.constant 0 : index
    %c0_79 = arith.constant 0 : index
    %206 = vector.load %arg14[%c0_77, %c0_78, %c0_79] : memref<1x2x256xf32, #tpu.memory_space<vmem>>, vector<1x2x256xf32>
    %207 = vector.shape_cast %206 : vector<1x2x256xf32> to vector<2x256xf32>
    %208 = vector.shape_cast %201 : vector<2x256xf32> to vector<1x2x256xf32>
    tpu.vector_store %arg14[%c0_77, %c0_78, %c0_79], %208 {strides = array<i32>} : memref<1x2x256xf32, #tpu.memory_space<vmem>>, vector<1x2x256xf32>,
    return
  }
  func.func @transform_0(%arg0: i32) -> (i32, i32) {
    %c0_i32 = arith.constant 0 : i32
    %c0_i32_0 = arith.constant 0 : i32
    %c0_i32_1 = arith.constant 0 : i32
    return %c0_i32, %c0_i32_0 : i32, i32
  }
  func.func @transform_1(%arg0: i32) -> (i32, i32) {
    %c0_i32 = arith.constant 0 : i32
    %c0_i32_0 = arith.constant 0 : i32
    %c0_i32_1 = arith.constant 0 : i32
    return %c0_i32, %c0_i32_0 : i32, i32
  }
  func.func @transform_2(%arg0: i32) -> (i32, i32) {
    %c0_i32 = arith.constant 0 : i32
    %c0_i32_0 = arith.constant 0 : i32
    %c0_i32_1 = arith.constant 0 : i32
    return %c0_i32, %c0_i32_0 : i32, i32
  }
  func.func @transform_3(%arg0: i32) -> (i32, i32) {
    %c0_i32 = arith.constant 0 : i32
    %c0_i32_0 = arith.constant 0 : i32
    %c0_i32_1 = arith.constant 0 : i32
    return %c0_i32, %c0_i32_0 : i32, i32
  }
  func.func @transform_4(%arg0: i32) -> (i32, i32) {
    %c0_i32 = arith.constant 0 : i32
    %c0_i32_0 = arith.constant 0 : i32
    %c0_i32_1 = arith.constant 0 : i32
    return %c0_i32, %c0_i32_0 : i32, i32
  }
  func.func @transform_5(%arg0: i32) -> (i32, i32) {
    %c0_i32 = arith.constant 0 : i32
    %c0_i32_0 = arith.constant 0 : i32
    %c0_i32_1 = arith.constant 0 : i32
    return %c0_i32, %c0_i32_0 : i32, i32
  }
  func.func @transform_6(%arg0: i32) -> (i32, i32) {
    %c0_i32 = arith.constant 0 : i32
    %c0_i32_0 = arith.constant 0 : i32
    %c0_i32_1 = arith.constant 0 : i32
    return %c0_i32, %c0_i32_0 : i32, i32
  }
  func.func @transform_7(%arg0: i32) -> (i32, i32) {
    %c0_i32 = arith.constant 0 : i32
    %c0_i32_0 = arith.constant 0 : i32
    %c0_i32_1 = arith.constant 0 : i32
    return %c0_i32, %c0_i32_0 : i32, i32
  }
  func.func @transform_8(%arg0: i32) -> (i32, i32) {
    %c0_i32 = arith.constant 0 : i32
    %c0_i32_0 = arith.constant 0 : i32
    %c0_i32_1 = arith.constant 0 : i32
    return %c0_i32, %c0_i32_0 : i32, i32
  }
  func.func @transform_9(%arg0: i32) -> (i32, i32) {
    %c0_i32 = arith.constant 0 : i32
    %c0_i32_0 = arith.constant 0 : i32
    %c0_i32_1 = arith.constant 0 : i32
    return %c0_i32, %c0_i32_0 : i32, i32
  }
  func.func @transform_10(%arg0: i32) -> (i32, i32) {
    %c0_i32 = arith.constant 0 : i32
    %c0_i32_0 = arith.constant 0 : i32
    %c0_i32_1 = arith.constant 0 : i32
    return %c0_i32, %c0_i32_0 : i32, i32
  }
  func.func @transform_11(%arg0: i32) -> (i32, i32) {
    %c0_i32 = arith.constant 0 : i32
    %c0_i32_0 = arith.constant 0 : i32
    %c0_i32_1 = arith.constant 0 : i32
    return %c0_i32, %c0_i32_0 : i32, i32
  }
  func.func @transform_12(%arg0: i32) -> (i32, i32) {
    %c0_i32 = arith.constant 0 : i32
    %c0_i32_0 = arith.constant 0 : i32
    %c0_i32_1 = arith.constant 0 : i32
    return %c0_i32, %c0_i32_0 : i32, i32
  }
  func.func @transform_13(%arg0: i32) -> (i32, i32, i32) {
    %c0_i32 = arith.constant 0 : i32
    %c0_i32_0 = arith.constant 0 : i32
    %c0_i32_1 = arith.constant 0 : i32
    return %arg0, %c0_i32, %c0_i32_0 : i32, i32, i32
  }
  func.func @transform_14(%arg0: i32) -> (i32, i32) {
    %c0_i32 = arith.constant 0 : i32
    %c0_i32_0 = arith.constant 0 : i32
    %c0_i32_1 = arith.constant 0 : i32
    return %c0_i32, %c0_i32_0 : i32, i32
  }
}

</mosaic_0001>

<bundles_post_ra>
// kernel: tpu_custom_call.1
= control target key start
LH: loop header
LB: loop body
LE: loop exit
PB: predicated region body
PF: predicated region fallthrough
CT: control target
= control target key end

     0   :  { %s9634_s0 = inlined_call_operand.vmem [shape: f32[2,256], index: 0, kind: input, shape index: {}]   ;;  %s9635_s1 = inlined_call_operand.hbm [shape: f32[2,64], index: 1, kind: input, shape index: {}]   ;;  %s9636_s2 = inlined_call_operand.hbm [shape: f32[64,256], index: 2, kind: input, shape index: {}]   ;;  %s9637_s3 = inlined_call_operand.<no memory space> [shape: f32[1,1], index: 3, kind: input, shape index: {}]   ;;  %s9638_s4 = inlined_call_operand.vmem [shape: f32[9,512], index: 4, kind: input, shape index: {}]   ;;  %s9639_s5 = inlined_call_operand.hbm [shape: bf16[32,54], index: 5, kind: input, shape index: {}]   ;;  %s9640_s6 = inlined_call_operand.vmem [shape: f32[32,1], index: 6, kind: input, shape index: {}]   ;;  %s9641_s7 = inlined_call_operand.vmem [shape: bf16[32,288], index: 7, kind: input, shape index: {}]   ;;  %s9642_s8 = inlined_call_operand.vmem [shape: f32[32,1], index: 8, kind: input, shape index: {}]   ;;  %s9643_s9 = inlined_call_operand.hbm [shape: bf16[32,288], index: 9, kind: input, shape index: {}]   ;;  %s9644_s10 = inlined_call_operand.vmem [shape: f32[32,1], index: 10, kind: input, shape index: {}]   ;;  %s9645_s11 = inlined_call_operand.vmem [shape: bf16[1,288], index: 11, kind: input, shape index: {}]   ;;  %s9646_s12 = inlined_call_operand.<no memory space> [shape: f32[1,1], index: 12, kind: input, shape index: {}]   ;;  %s9647_s13 = inlined_call_operand.hbm [shape: f32[2,2,256], index: 13, kind: output, shape index: {0}]   ;;  %s9648_s14 = inlined_call_operand.hbm [shape: f32[1,128], index: 14, kind: output, shape index: {1}]  }
   0x1   :  { %9975 = sst [smem:[#allocation127_spill]] %s9647_s13  ;;  %v21_v0 = vstv %s9646_s12 }
   0x2   :  { %20 = sst [smem:[#allocation6]] %s9637_s3  ;;  %22 = vst [vmem:[#allocation7] sm:$0x1] %v21_v0 }
   0x3   :  { %23 = vsyncpa [#allocation9], 0 }
   0x4   :  { %24 = vsyncpa [#allocation12], 0 }
   0x5   :  { %25 = vsyncpa [#allocation15], 0 }
   0x6   :  { %26 = vsyncpa [#allocation10], 0 }
   0x7   :  { %28 = vsyncpa [#allocation10 + $0x1], 0 }
   0x8   :  { %29 = vsyncpa [#allocation18], 0  ;;  %s4955_s17 = smov 0   ;;  %s4957_s18 = smov 0  }
   0x9   :  { %s4959_s19 = smov 0   ;;  %s4961_s20 = smov 0  }
   0xa LB: > { %9976 = sst [smem:[#allocation24_spill]] %s4835_s17  ;;  %s4976_s3 = sadd.s32 4294967295, %s4847_s20   ;;  %s4847_s20 = sphi %s4961_s20, %s10588_s20   ;;  %s4843_s19 = sphi %s4959_s19, %s10590_s19   ;;  %s4839_s18 = sphi %s4957_s18, %s10592_s18   ;;  %s4835_s17 = sphi %s4955_s17, %s10591_s17  }
   0xb   : > { %9977 = sst [smem:[#allocation25_spill]] %s4843_s19  ;;  %s4332_s12 = sadd.s32 4294967294, %s4847_s20  }
   0xc   : > { %9978 = sst [smem:[#allocation26_spill]] %s4847_s20  ;;  %s4980_s21 = sadd.s32 1, %s4847_s20  }
   0xd   : > { %9979 = sst [smem:[#allocation27_spill]] %s4980_s21  ;;  %s315_s22 = sadd.s32 1, %s4843_s19 }
   0xe   : > { %s312_s23 = ssub.s32 %s4847_s20, %s4980_s21  ;;  %p325_p0 = scmp.ne.s32.totalorder %s4843_s19, %s4839_s18 }
   0xf   : > { %p313_p1 = scmp.eq.s32.totalorder %s312_s23, 0  ;;  %p9653_p2 = scmp.eq.s32.totalorder %s4976_s3, 1 }
  0x10   : > { %p331_p3 = scmp.ne.s32.totalorder %s4839_s18, %s4835_s17  ;;  %p332_p4 = scmp.eq.s32.totalorder %s4332_s12, 1 }
  0x11   : > { %s4991_s24 = scalar_select %p313_p1, %s4843_s19, %s315_s22  }
  0x12   : > { %p4995_p5 = por %p9653_p2, %p325_p0  ;;  %p4999_p6 = por %p332_p4, %p331_p3 }
  0x13   : > { %9980 = sst [smem:[#allocation28_spill]] %s4991_s24  ;;  %p4333_p7 = scmp.ge.s32.totalorder %s4847_s20, 1 }
  0x14   : > { %s9981_s25 = scalar_select %p4995_p5, 1, 0 }
  0x15   : > { %s9983_s26 = scalar_select %p4999_p6, 1, 0 }
  0x16   : > { %9982 = sst [smem:[#allocation29_spill]] %s9981_s25  ;;  %p360_p8 = scmp.lt.s32.totalorder %s4847_s20, 3 }
  0x17   : > { %9984 = sst [smem:[#allocation30_spill]] %s9983_s26  ;;  %p9654_p10 = scmp.eq.s32.totalorder %s4976_s3, 0 }
  0x18   : > { %p5007_p11 = pnand %p4333_p7, %p360_p8  ;;  %s4849_s28 = smov [#allocation11]  }
  0x19   : > { %s386_s29 = sshll.u32 %s4849_s28, 4  ;;  %s4850_s15 = smov [#allocation8]   ;;  %s5013_s29 = int_to_ptr.vmem [resolvable:$true] %s386_s29 }
  0x1a   : > { %s9985_s27 = scalar_select %p5007_p11, 1, 0 }
  0x1b   : > { %p4513_p12 = pneg %p5007_p11  ;;  %s376_s16 = sshll.u32 %s4850_s15, 4  ;;  %s5021_s16 = int_to_ptr.vmem [resolvable:$true] %s376_s16 }
  0x1c   : > { %s4851_s12 = smov [#allocation13]   ;;  %s4631_s28 = scalar_lea.hbm %s9636_s2, 2048 }
  0x1d   : > { %p5017_p13 = pnand %p9654_p10, %p4513_p12  ;;  %s5023_s22 = sshll.u32 %s4851_s12, 4  ;;  %s406_s22 = int_to_ptr.vmem [resolvable:$true] %s5023_s22 }
  0x1e   : > { %p4632_p0 = scmp.ne.s32.totalorder %s9636_s2, %s4631_s28  ;;  %p4638_p7 = scmp.lt.u32.totalorder %s4631_s28, %s9636_s2 }
  0x1f   : > { %p5033_p1 = pneg %p5017_p13 }
  0x21   : > { %p4634_p3 = pnand %p5033_p1, %p4632_p0 }
  0x23   : > { %p4635_p4 = pneg %p4634_p3 }
  0x25   : > { %p4640_p8 = pnand %p4638_p7, %p4635_p4 }
  0x27   : > { %4643 = shalt.err (!%p4640_p8)
}
  0x28   : > { %s4644_s19 = scalar_lea.vmem %s5013_s29, 2048  ;;  %p4652_p10 = scmp.lt.s32.totalorder %s5013_s29, %s5013_s29 }
  0x29   : > { %p4645_p12 = scmp.ne.s32.totalorder %s5013_s29, %s4644_s19  ;;  %p4653_p6 = scmp.lt.s32.totalorder %s4644_s19, %s4644_s19 }
  0x2b   : > { %p4647_p2 = pnand %p4645_p12, %p5033_p1  ;;  %p4654_p0 = por %p4653_p6, %p4652_p10 }
  0x2d   : > { %p4648_p9 = pneg %p4647_p2 }
  0x2f   : > { %p4655_p3 = pnand %p4654_p0, %p4648_p9 }
  0x31   : > { %4658 = shalt.err (!%p4655_p3)
}
  0x32   : > { %s4852_s21 = smov 256   ;;  %s4853_s24 = smov 16  }
  0x33   : > { %4519 = dma.hbm_to_vmem [thread:$0]  (!%p5017_p13), %s9636_s2, 2048, %s5013_s29, [#allocation12], %s4852_s21, %s4852_s21, %s4853_s24  }
  0x34   : > { %s4659_s17 = scalar_lea.hbm %s9635_s1, 32 }
  0x35   : > { %p4660_p2 = scmp.ne.s32.totalorder %s9635_s1, %s4659_s17  ;;  %p4666_p10 = scmp.lt.u32.totalorder %s4659_s17, %s9635_s1 }
  0x37   : > { %p4662_p6 = pnand %p4660_p2, %p5033_p1 }
  0x39   : > { %p4663_p9 = pneg %p4662_p6 }
  0x3b   : > { %p4668_p4 = pnand %p4666_p10, %p4663_p9 }
  0x3d   : > { %4671 = shalt.err (!%p4668_p4)
}
  0x3e   : > { %s4672_s29 = scalar_lea.vmem %s5021_s16, 32  ;;  %p4680_p0 = scmp.lt.s32.totalorder %s5021_s16, %s5021_s16 }
  0x3f   : > { %p4673_p7 = scmp.ne.s32.totalorder %s5021_s16, %s4672_s29  ;;  %p4681_p3 = scmp.lt.s32.totalorder %s4672_s29, %s4672_s29 }
  0x41   : > { %p4675_p8 = pnand %p4673_p7, %p5033_p1  ;;  %p4682_p2 = por %p4681_p3, %p4680_p0 }
  0x43   : > { %p4676_p12 = pneg %p4675_p8 }
  0x45   : > { %p4683_p6 = pnand %p4682_p2, %p4676_p12 }
  0x47   : > { %4686 = shalt.err (!%p4683_p6)
}
  0x48   : > { %4516 = dma.hbm_to_vmem [thread:$0]  (!%p5017_p13), %s9635_s1, 32, %s5021_s16, [#allocation9]  }
  0x49   : > { %s4687_s21 = scalar_lea.hbm %s9639_s5, 256 }
  0x4a   : > { %p4688_p9 = scmp.ne.s32.totalorder %s9639_s5, %s4687_s21  ;;  %p4694_p7 = scmp.lt.u32.totalorder %s4687_s21, %s9639_s5 }
  0x4c   : > { %p4690_p10 = pnand %p4688_p9, %p5033_p1 }
  0x4e   : > { %p4691_p4 = pneg %p4690_p10 }
  0x50   : > { %p4696_p8 = pnand %p4694_p7, %p4691_p4 }
  0x52   : > { %4699 = shalt.err (!%p4696_p8)
}
  0x53   : > { %s4700_s12 = scalar_lea.vmem %s406_s22, 256  ;;  %p4708_p2 = scmp.lt.s32.totalorder %s406_s22, %s406_s22 }
  0x54   : > { %p4701_p12 = scmp.ne.s32.totalorder %s406_s22, %s4700_s12  ;;  %p4709_p6 = scmp.lt.s32.totalorder %s4700_s12, %s4700_s12 }
  0x56   : > { %p4703_p0 = pnand %p4701_p12, %p5033_p1  ;;  %p4710_p5 = por %p4709_p6, %p4708_p2 }
  0x58   : > { %p4704_p3 = pneg %p4703_p0 }
  0x5a   : > { %p4711_p11 = pnand %p4710_p5, %p4704_p3 }
  0x5c   : > { %4714 = shalt.err (!%p4711_p11)
}
  0x5d   : > { %s4854_s16 = smov 64   ;;  %s4855_s19 = smov 4  }
  0x5e   : > { %4522 = dma.hbm_to_vmem [thread:$0]  (!%p5017_p13), %s9639_s5, 256, %s406_s22, [#allocation12], %s4854_s16, %s4854_s16, %s4855_s19  }
  0x5f   : > { %s4856_s17 = smov [#allocation14]   ;;  %s4715_s24 = scalar_lea.hbm %s9643_s9, 768 }
  0x60   : > { %s427_s20 = sshll.u32 %s4856_s17, 4  ;;  %p4716_p5 = scmp.ne.s32.totalorder %s9643_s9, %s4715_s24  ;;  %s428_s20 = int_to_ptr.vmem [resolvable:$true] %s427_s20 }
  0x61   : > { %p4722_p10 = scmp.lt.u32.totalorder %s4715_s24, %s9643_s9 }
  0x62   : > { %p4718_p11 = pnand %p4716_p5, %p5033_p1 }
  0x64   : > { %p4719_p9 = pneg %p4718_p11 }
  0x66   : > { %p4724_p4 = pnand %p4722_p10, %p4719_p9 }
  0x68   : > { %4727 = shalt.err (!%p4724_p4)
}
  0x69   : > { %s4728_s22 = scalar_lea.vmem %s428_s20, 768  ;;  %p4736_p0 = scmp.lt.s32.totalorder %s428_s20, %s428_s20 }
  0x6a   : > { %p4729_p7 = scmp.ne.s32.totalorder %s428_s20, %s4728_s22  ;;  %p4737_p3 = scmp.lt.s32.totalorder %s4728_s22, %s4728_s22 }
  0x6c   : > { %p4731_p8 = pnand %p4729_p7, %p5033_p1  ;;  %p4738_p2 = por %p4737_p3, %p4736_p0 }
  0x6e   : > { %p4732_p12 = pneg %p4731_p8 }
  0x70   : > { %p4739_p6 = pnand %p4738_p2, %p4732_p12 }
  0x72   : > { %4742 = shalt.err (!%p4739_p6)
}
  0x73   : > { %s4857_s16 = smov 192   ;;  %s4858_s19 = smov 12  }
  0x74   : > { %4525 = dma.hbm_to_vmem [thread:$0]  (!%p5017_p13), %s9643_s9, 768, %s428_s20, [#allocation15], %s4857_s16, %s4857_s16, %s4858_s19  }
  0x75   : > { %p9988_p5 = scmp.ne.s32.totalorder %s9985_s27, 0 }
  0x77   : > { %452 = sbr.rel (%p9988_p5) target bundleno = 3082 (0xc0a), region = 72 }
  0x7e   : > { %p9989_p11 = scmp.eq.s32.totalorder %s4976_s3, 0 }
  0x80   : > { %4814 = dma.done.wait (%p9989_p11), [#allocation9], 32   ;;  %p9990_p1 = pmov %p9989_p11 }
  0x82   : > { %4816 = vsyncadd (%p9990_p1), [#allocation9], 4294967264  ;;  %p9991_p9 = pmov %p9990_p1 }
  0x83   : > { %p9992_p10 = pmov %p9990_p1 }
  0x84   : > { %4818 = dma.done.wait (%p9991_p9), [#allocation12], 2304  }
  0x85   : > { %4820 = vsyncadd (%p9992_p10), [#allocation12], 4294964992  ;;  %p9993_p4 = pmov %p9990_p1 }
  0x86   : > { %p9994_p13 = pmov %p9990_p1 }
  0x87   : > { %4822 = dma.done.wait (%p9993_p4), [#allocation15], 768  }
  0x88   : > { %4824 = vsyncadd (%p9994_p13), [#allocation15], 4294966528  ;;  %s9662_s26 = sand.u32 1, %s4839_s18   ;;  %p9995_p7 = scmp.ne.s32.totalorder %s4976_s3, 0 }
  0x89   : > { %s5131_s27 = sshll.u32 %s9662_s26, 2  ;;  %v510_v1 = vld [vmem:[%s9634_s0] sm:$0xf] (!%p9995_p7) }
  0x8a   : > { %509 = sbr.rel (%p9995_p7) target bundleno = 145 (0x91), region = 92  ;;  %511 = vst [vmem:[#allocation2] sm:$0xf] (!%p9995_p7), %v510_v1 }
  0x91 PF: > { %v514_v2 = vld [vmem:[#allocation11 + $0x8] sm:$0xff]  ;;  %v516_v3 = vld [vmem:[#allocation11 + $0x18] sm:$0xff]  ;;  %v513_v4 = vld [vmem:[#allocation11] sm:$0xff]  ;;  %v9663_v5 = vlaneseq  ;;  %v4859_v10 = vmov 1983009808   ;;  %v4860_v36 = vmov 0.0  }
  0x92   : > { %v4393_v6 = vpack.c.bf16 %v516_v3, %v514_v2  ;;  %v515_v7 = vld [vmem:[#allocation11 + $0x10] sm:$0xff]  ;;  %v518_v8 = vld [vmem:[#allocation11 + $0x28] sm:$0xff]  ;;  %v520_v9 = vld [vmem:[#allocation11 + $0x38] sm:$0xff]  ;;  %v531_v11 = vunpack.c.l.s4 %v4859_v10  ;;  %680 = vmatprep.mubr.f32.mxu1 %v4860_v36  ;;  %vm612_vm0 = vcmask 523264   ;;  %p4346_p8 = scmp.ne.s32.totalorder %s4976_s3, 1 }
  0x93   : > { %v4395_v12 = vpack.c.bf16 %v515_v7, %v513_v4  ;;  %v4397_v13 = vpack.c.bf16 %v520_v9, %v518_v8  ;;  %v5140_v14 = vshrl.u32 %v9663_v5, 7  ;;  %v517_v15 = vld [vmem:[#allocation11 + $0x20] sm:$0xff]  ;;  %v519_v16 = vld [vmem:[#allocation11 + $0x30] sm:$0xff]  ;;  %v522_v18 = vld [vmem:[#allocation11 + $0x48] sm:$0xff]  ;;  %vm707_vm1 = vcmask (!%p4346_p8), 1041408  }
  0x94   : > { %4394 = vmatprep.subr.bf16.mxu0 %v4393_v6  ;;  %v532_v17 = vunpack.c.0.s8 %v531_v11  ;;  %4410 = vmatprep.subr.bf16.mxu1 %v4393_v6  ;;  %v524_v19 = vld [vmem:[#allocation11 + $0x58] sm:$0xff]  ;;  %v5142_v20 = vld [vmem:[#allocation2] sm:$0xf]  ;;  %v4399_v22 = vpack.c.bf16 %v519_v16, %v517_v15  ;;  %v521_v25 = vld [vmem:[#allocation11 + $0x40] sm:$0xff] }
  0x95   : > { %9996 = vst [vmem:[#allocation31_spill] sm:$0xff] %v5140_v14  ;;  %4396 = vmatpush1.bf16.xpose.msra.mxu0 %v4395_v12  ;;  %4412 = vmatpush1.bf16.msra.mxu1 %v4395_v12  ;;  %v5146_v23 = vmul.f32 0.1, %v5142_v20  ;;  %v4401_v24 = vpack.c.bf16 %v524_v19, %v522_v18  ;;  %v523_v26 = vld [vmem:[#allocation11 + $0x50] sm:$0xff]  ;;  %v526_v28 = vld [vmem:[#allocation11 + $0x68] sm:$0xff]  ;;  %v528_v29 = vld [vmem:[#allocation11 + $0x78] sm:$0xff] }
  0x96   : > { %4398 = vmatprep.subr.bf16.mxu0 %v4397_v13  ;;  %v535_v21 = vsub.s32 %v532_v17, %v5140_v14  ;;  %4414 = vmatprep.subr.bf16.mxu1 %v4397_v13  ;;  %v4403_v31 = vpack.c.bf16 %v523_v26, %v521_v25  ;;  %v4405_v32 = vpack.c.bf16 %v528_v29, %v526_v28  ;;  %v525_v33 = vld [vmem:[#allocation11 + $0x60] sm:$0xff]  ;;  %v527_v34 = vld [vmem:[#allocation11 + $0x70] sm:$0xff]  ;;  %v610_v37 = vld [vmem:[#allocation8] sm:$0x3] }
  0x97   : > { %v4407_v35 = vpack.c.bf16 %v527_v34, %v525_v33 }
  0x98   : > { %v536_v27 = vrot.slane %v5142_v20, %v535_v21  ;;  %v699_v43 = vrot.slane (!%p4346_p8), %v5146_v23, %v535_v21 }
  0x99   : > { %4416 = vmatpush1.bf16.msra.mxu1 %v4399_v22 }
  0x9a   : > { %v537_v30 = vcombine.high %v536_v27, %v536_v27  ;;  %4418 = vmatprep.subr.bf16.mxu1 %v4401_v24  ;;  %v700_v44 = vcombine.high (!%p4346_p8), %v699_v43, %v699_v43 }
  0x9c   : > { %604 = vmatprep.mubr.f32.mxu0 %v537_v30 }
  0x9d   : > { %4400 = vmatpush1.bf16.xpose.msra.mxu0 %v4399_v22  ;;  %4420 = vmatpush1.bf16.msra.mxu1 %v4403_v31 }
  0x9e   : > { %4402 = vmatprep.subr.bf16.mxu0 %v4401_v24  ;;  %4422 = vmatprep.subr.bf16.mxu1 %v4405_v32 }
  0xa1   : > { %4424 = vmatpush1.bf16.msra.mxu1 %v4407_v35 }
  0xa5   : > { %4404 = vmatpush1.bf16.xpose.msra.mxu0 %v4403_v31 }
  0xa6   : > { %4406 = vmatprep.subr.bf16.mxu0 %v4405_v32 }
  0xad   : > { %4408 = vmatpush1.bf16.xpose.msra.mxu0 %v4407_v35 }
  0xb4   : > { %605 = vmatmul.mubr.f32.vlgmr.msra.gmra.mrb[0].mxu0 %v536_v27 }
 0x187   : > { %v606_v38 = vpop.f32.mrb[0].mxu0 }
 0x188   : > { %v611_v39 = vsub.f32 %v606_v38, %v610_v37  ;;  %v608_v40 = vpop.f32.mrb[1].mxu0 }
 0x18a   : > { %4345 = vmatmul.mubr.msk.f32.vlgmr.msra.gmra.mrb[0].mxu1 %vm612_vm0, %v611_v39 }
 0x259   : > { %691 = sbr.rel (%p4346_p8) target bundleno = 835 (0x343), region = 96 }
 0x25d   : > { %v5149_v41 = vpop.f32.mrb[0].mxu1 }
 0x25e   : > { %9997 = vst [vmem:[#allocation32_spill] sm:$0xff] %v5149_v41  ;;  %v5151_v42 = vpop.f32.mrb[1].mxu1  ;;  %v703_v45 = vadd.f32 (!%p4346_p8), %v699_v43, %v5149_v41 }
 0x25f   : > { %9998 = vst [vmem:[#allocation33_spill] sm:$0xff] %v5151_v42  ;;  %v704_v46 = vadd.f32 (!%p4346_p8), %v700_v44, %v5151_v42 }
 0x260   : > { %v705_v47 = vmul.f32 %v703_v45, %v703_v45 }
 0x261   : > { %v706_v48 = vmul.f32 %v704_v46, %v704_v46 }
 0x262   : > { %v708_v49 = vsel %vm707_vm1, %v705_v47, 0.0 }
 0x263   : > { %v709_v50 = vsel %vm707_vm1, %v706_v48, 0.0 }
 0x264   : > { %v710_v51 = vadd.f32 %v709_v50, %v708_v49 }
 0x266   : > { %711 = vadd.xlane.f32.xlu0 %v710_v51 }
 0x2f3   : > { %v712_v52 = vpop.xlane.xlu0 %711 }
 0x2f4   : > { %v713_v53 = vrot.slane %v712_v52, 4 }
 0x2f6   : > { %v714_v54 = vadd.f32 %v713_v53, %v712_v52 }
 0x2f8   : > { %v715_v55 = vrot.slane %v714_v54, 2 }
 0x2fa   : > { %v716_v56 = vadd.f32 %v715_v55, %v714_v54 }
 0x2fc   : > { %v717_v57 = vrot.slane %v716_v56, 1 }
 0x2fe   : > { %v718_v58 = vadd.f32 %v717_v57, %v716_v56 }
 0x300   : > { %4489 = vpush %v718_v58 }
 0x331   : > { %s4490_s25 = spop %4489 }
 0x332   : > { %v720_v59 = vstv %s4490_s25 }
 0x333   : > { %4597 = vrsqrt.f32 %v720_v59  ;;  %vm724_vm2 = vcmp.eq.f32.partialorder %v720_v59, inf  ;;  %v727_v62 = vand.u32 2147483648, %v720_v59  ;;  %vm726_vm3 = vcmp.eq.f32.partialorder %v720_v59, 0.0 }
 0x33d   : > { %v4598_v60 = vpop.eup %4597 }
 0x33e   : > { %v723_v61 = vmul.f32 %v4598_v60, %v720_v59 }
 0x340   : > { %v725_v63 = vsel %vm724_vm2, %v720_v59, %v723_v61 }
 0x341   : > { %v728_v0 = vsel %vm726_vm3, %v727_v62, %v725_v63 }
 0x342   : > { %729 = vst [vmem:[#allocation17] sm:$0x1] %v728_v0 }
 0x343 PF: > { %v5158_v1 = vsub.s32 0, %v5140_v14  ;;  %v5161_v2 = vsub.s32 2, %v5140_v14  ;;  %v5164_v3 = vsub.s32 1, %v5140_v14  ;;  %v5167_v4 = vsub.s32 3, %v5140_v14  ;;  %p10010_p12 = scmp.ne.s32.totalorder %s4976_s3, 0 }
 0x344   : > { %v5170_v6 = vrot.slane %v5149_v41, 1  ;;  %v5173_v7 = vrot.slane %v5151_v42, 1  ;;  %v4861_v17 = vmov (!%p10010_p12), 1966171168   ;;  %v810_v22 = vcombine.low (!%p10010_p12), %v5149_v41, %v5151_v42 }
 0x345   : > { %9999 = vst [vmem:[#allocation34_spill] sm:$0xff] %v5158_v1  ;;  %v5177_v8 = vrot.slane %v5142_v20, %v5158_v1  ;;  %v5181_v9 = vrot.slane %v5142_v20, %v5161_v2  ;;  %v5185_v10 = vrot.slane %v5142_v20, %v5164_v3  ;;  %v5189_v11 = vrot.slane %v5142_v20, %v5167_v4  ;;  %779 = sbr.rel (%p10010_p12) target bundleno = 852 (0x354), region = 100 }
 0x346   : > { %10000 = vst [vmem:[#allocation35_spill] sm:$0xff] %v5170_v6  ;;  %10001 = vst [vmem:[#allocation36_spill] sm:$0xff] %v5173_v7  ;;  %v5193_v12 = vrot.slane %v5146_v23, %v5158_v1  ;;  %v5197_v13 = vrot.slane %v5146_v23, %v5161_v2  ;;  %v5201_v15 = vrot.slane %v5146_v23, %v5164_v3  ;;  %v783_v18 = vunpack.c.l.s4 (!%p10010_p12), %v4861_v17 }
 0x347   : > { %10002 = vst [vmem:[#allocation37_spill] sm:$0xff] %v5177_v8  ;;  %10003 = vst [vmem:[#allocation38_spill] sm:$0xff] %v5181_v9  ;;  %v5205_v16 = vrot.slane %v5146_v23, %v5167_v4  ;;  %v780_v19 = vcombine.low (!%p10010_p12), %v5177_v8, %v5181_v9  ;;  %v781_v20 = vcombine.low (!%p10010_p12), %v5185_v10, %v5189_v11  ;;  %vm807_vm4 = vcmp.lt.s32.totalorder (!%p10010_p12), %v9663_v5, 512 }
 0x348   : > { %10004 = vst [vmem:[#allocation39_spill] sm:$0xff] %v5185_v10  ;;  %10005 = vst [vmem:[#allocation40_spill] sm:$0xff] %v5189_v11  ;;  %v784_v21 = vunpack.c.0.s8 (!%p10010_p12), %v783_v18  ;;  %v811_v24 = vcombine.low (!%p10010_p12), %v5170_v6, %v5173_v7  ;;  %v836_v23 = vcombine.low (!%p10010_p12), %v5193_v12, %v5197_v13 }
 0x349   : > { %10006 = vst [vmem:[#allocation41_spill] sm:$0xff] %v5193_v12  ;;  %10007 = vst [vmem:[#allocation42_spill] sm:$0xff] %v5197_v13  ;;  %v837_v25 = vcombine.low (!%p10010_p12), %v5201_v15, %v5205_v16 }
 0x34a   : > { %10008 = vst [vmem:[#allocation43_spill] sm:$0xff] %v5201_v15  ;;  %10009 = vst [vmem:[#allocation44_spill] sm:$0xff] %v5205_v16  ;;  %v787_v26 = vsub.s32 (!%p10010_p12), %v784_v21, %v5140_v14 }
 0x34c   : > { %v788_v27 = vrot.slane %v780_v19, %v787_v26  ;;  %v795_v28 = vrot.slane %v781_v20, %v787_v26  ;;  %v818_v29 = vrot.slane %v810_v22, %v787_v26  ;;  %v825_v30 = vrot.slane %v811_v24, %v787_v26 }
 0x34d   : > { %v844_v31 = vrot.slane %v836_v23, %v787_v26  ;;  %v851_v32 = vrot.slane %v837_v25, %v787_v26 }
 0x34e   : > { %v796_v33 = vcombine.low %v788_v27, %v795_v28  ;;  %v826_v34 = vcombine.low %v818_v29, %v825_v30 }
 0x34f   : > { %v852_v35 = vcombine.low %v844_v31, %v851_v32 }
 0x350   : > { %v803_v36 = vrot.slane %v796_v33, %v787_v26  ;;  %v833_v37 = vrot.slane %v826_v34, %v787_v26 }
 0x351   : > { %v859_v38 = vrot.slane %v852_v35, %v787_v26 }
 0x352   : > { %809 = vst.msk [vmem:[#allocation3] sm:$0xf] %vm807_vm4, %v803_v36  ;;  %835 = vst.msk [vmem:[#allocation4] sm:$0xf] %vm807_vm4, %v833_v37 }
 0x353   : > { %861 = vst.msk [vmem:[#allocation5] sm:$0xf] %vm807_vm4, %v859_v38 }
 0x354 PF: > { %v865_v44 = vrot.slane %v5149_v41, 7  ;;  %v915_v47 = vrot.slane %v5193_v12, 4  ;;  %vm944_vm5 = vcmask 1040384   ;;  %vm949_vm6 = vcmask 1041408   ;;  %s4862_s21 = smov 15   ;;  %s4863_s24 = smov 16  }
 0x355   : > { %vm954_vm7 = vcmask 1042432   ;;  %vm959_vm8 = vcmask 1043456   ;;  %vm964_vm9 = vcmask 1044480   ;;  %v866_v50 = vrot.slane %v5151_v42, 7  ;;  %s4864_s23 = smov 17   ;;  %s4865_s28 = smov 1  }
 0x356   : > { %v945_v49 = vsel %vm944_vm5, %v5177_v8, %v865_v44  ;;  %v916_v54 = vrot.slane %v5197_v13, 4  ;;  %v868_v58 = vrot.slane %v5173_v7, 7  ;;  %v918_v17 = vrot.slane %v5205_v16, 4  ;;  %s4866_s15 = smov 127   ;;  %s4867_s12 = smov 113   ;;  %v1361_v37 = vld [vmem:[%s9640_s6 + $0x8] sm:$0xff] }
 0x357   : > { %v946_v57 = vsel %vm944_vm5, %v5181_v9, %v866_v50  ;;  %v867_v21 = vrot.slane %v5170_v6, 7  ;;  %v917_v26 = vrot.slane %v5201_v15, 4  ;;  %s4868_s22 = smov 112   ;;  %v9664_v36 = vmov 0   ;;  %s4870_s16 = smov 111   ;;  %v1360_v38 = vld [vmem:[%s9640_s6] sm:$0xff] }
 0x358   : > { %v948_v20 = vsel %vm944_vm5, %v5189_v11, %v868_v58  ;;  %1445 = vmatprep.mubr.bf16.mxu1 %v9664_v36  ;;  %1498 = vmatprep.mubr.bf16.mxu0 %v9664_v36  ;;  %vm1315_vm13 = vcmask 1045504   ;;  %vm1394_vm3 = vcmask 441344   ;;  %vm2181_vm4 = vcmask 261120   ;;  %s4872_s20 = smov [#allocation17]   ;;  %p10568_p3 = scmp.eq.s32.totalorder %s4976_s3, 1 }
 0x359   : > { %v862_v39 = vld [vmem:[#allocation3] sm:$0xf]  ;;  %v863_v40 = vld [vmem:[#allocation4] sm:$0xf]  ;;  %v947_v29 = vsel %vm944_vm5, %v5185_v10, %v867_v21  ;;  %4600 = vset.pattern.permute.xlu1 %v9664_v36  ;;  %4599 = vset.pattern.permute.xlu0 %v9664_v36  ;;  %s4233_s25 = sshll.u32 %s4872_s20, 4  ;;  %s4234_s25 = int_to_ptr.vmem [resolvable:$true] %s4233_s25 }
 0x35a   : > { %v864_v43 = vld [vmem:[#allocation5] sm:$0xf]  ;;  %v877_v45 = vrot.slane %v862_v39, %v5158_v1  ;;  %v898_v46 = vrot.slane %v863_v40, %v5158_v1  ;;  %v881_v52 = vrot.slane %v862_v39, %v5164_v3  ;;  %v902_v53 = vrot.slane %v863_v40, %v5164_v3  ;;  %s4743_s19 = scalar_lea.vmem %s4234_s25, 16  ;;  %s4749_s29 = scalar_lea.vmem %s4234_s25, 32 }
 0x35b   : > { %v927_v48 = vrot.slane %v864_v43, %v5158_v1  ;;  %v931_v56 = vrot.slane %v864_v43, %v5164_v3  ;;  %v889_v61 = vrot.slane %v862_v39, %v5167_v4  ;;  %v910_v62 = vrot.slane %v863_v40, %v5167_v4  ;;  %p4744_p0 = scmp.ne.s32.totalorder %s4234_s25, %s4743_s19  ;;  %p4750_p5 = scmp.lt.s32.totalorder %s4234_s25, %s4234_s25 }
 0x35c   : > { %v950_v51 = vsel %vm949_vm6, %v945_v49, %v877_v45  ;;  %v951_v60 = vsel %vm949_vm6, %v946_v57, %v881_v52  ;;  %v939_v18 = vrot.slane %v864_v43, %v5167_v4  ;;  %v885_v22 = vrot.slane %v862_v39, %v5161_v2  ;;  %v1362_v39 = vld [vmem:[%s9640_s6 + $0x10] sm:$0xff]  ;;  %p4751_p11 = scmp.lt.s32.totalorder %s4749_s29, %s4743_s19 }
 0x35d   : > { %v955_v55 = vsel %vm954_vm7, %v950_v51, %v898_v46  ;;  %v956_v0 = vsel %vm954_vm7, %v951_v60, %v902_v53  ;;  %v953_v23 = vsel %vm949_vm6, %v948_v20, %v889_v61  ;;  %v906_v25 = vrot.slane %v863_v40, %v5161_v2  ;;  %v1363_v40 = vld [vmem:[%s9640_s6 + $0x18] sm:$0xff]  ;;  %v5361_v46 = vld [vmem:[%s9638_s4 + $0x8] sm:$0xff]  ;;  %p4745_p2 = pnand %p4744_p0, %p10568_p3 }
 0x35e   : > { %v960_v59 = vsel %vm959_vm8, %v955_v55, %v915_v47  ;;  %v961_v19 = vsel %vm959_vm8, %v956_v0, %v916_v54  ;;  %v958_v27 = vsel %vm954_vm7, %v953_v23, %v910_v62  ;;  %v935_v28 = vrot.slane %v864_v43, %v5161_v2  ;;  %v5380_v55 = vld [vmem:[%s9638_s4] sm:$0xff]  ;;  %p4752_p1 = por %p4751_p11, %p4750_p5 }
 0x35f   : > { %v5245_v63 = vsel %vm964_vm9, %v960_v59, %v927_v48  ;;  %v5260_v24 = vsel %vm964_vm9, %v961_v19, %v931_v56  ;;  %v963_v30 = vsel %vm959_vm8, %v958_v27, %v918_v17  ;;  %v952_v31 = vsel %vm949_vm6, %v947_v29, %v885_v22  ;;  %v5385_v56 = vld [vmem:[%s9638_s4 + $0x18] sm:$0xff]  ;;  %v5394_v59 = vld [vmem:[%s9638_s4 + $0x10] sm:$0xff]  ;;  %p4746_p6 = pneg %p4745_p2 }
 0x360   : > { %1045 = vrot.lane.b32.xlu1 %v5245_v63, %s4862_s21  ;;  %1012 = vrot.lane.b32.xlu0 %v5245_v63, %s4863_s24  ;;  %v957_v32 = vsel %vm954_vm7, %v952_v31, %v906_v25  ;;  %v5277_v33 = vsel %vm964_vm9, %v963_v30, %v939_v18  ;;  %v5356_v45 = vand.u32 127, %v9663_v5  ;;  %v5367_v49 = vrot.slane %v5361_v46, %v5161_v2 }
 0x361   : > { %v962_v34 = vsel %vm959_vm8, %v957_v32, %v917_v26  ;;  %v5373_v51 = vrot.slane %v5361_v46, %v5164_v3  ;;  %v5398_v60 = vrot.slane %v5380_v55, %v5161_v2  ;;  %v5402_v61 = vrot.slane %v5385_v56, %v5161_v2  ;;  %p4753_p9 = pnand %p4752_p1, %p4746_p6 }
 0x362   : > { %v5281_v35 = vsel %vm964_vm9, %v962_v34, %v935_v28  ;;  %vm1053_vm10 = vcmp.lt.s32.totalorder %v5356_v45, 15  ;;  %vm1020_vm11 = vcmp.lt.s32.totalorder %v5356_v45, 16  ;;  %v5406_v62 = vrot.slane %v5380_v55, %v5164_v3 }
 0x363   : > { %v5412_v17 = vrot.slane %v5385_v56, %v5164_v3  ;;  %v5416_v19 = vrot.slane %v5394_v59, %v5161_v2  ;;  %v5429_v27 = vrot.slane %v5394_v59, %v5164_v3  ;;  %vm987_vm12 = vcmp.lt.s32.totalorder %v5356_v45, 17 }
 0x364   : > { %1047 = vrot.lane.b32.xlu1 %v5260_v24, %s4862_s21  ;;  %1014 = vrot.lane.b32.xlu0 %v5260_v24, %s4863_s24  ;;  %v5434_v2 = vrot.slane %v5361_v46, %v5158_v1  ;;  %vm1086_vm14 = vcmp.lt.s32.totalorder %v5356_v45, 1  ;;  %vm1119_vm15 = vcmp.lt.s32.totalorder %v5356_v45, 127  ;;  %vm1152_vm0 = vcmp.lt.s32.totalorder %v5356_v45, 113 }
 0x365   : > { %vm1185_vm1 = vcmp.lt.s32.totalorder %v5356_v45, 112  ;;  %vm1218_vm2 = vcmp.lt.s32.totalorder %v5356_v45, 111  ;;  %v10557_v45 = vld [vmem:[#allocation33_spill] sm:$0xff] }
 0x366   : > { %10011 = vst [vmem:[#allocation45_spill] sm:$0xff] %v5434_v2 }
 0x368   : > { %1018 = vrot.lane.b32.xlu1 %v5277_v33, %s4863_s24  ;;  %1016 = vrot.lane.b32.xlu0 %v5281_v35, %s4863_s24 }
 0x36c   : > { %1051 = vrot.lane.b32.xlu1 %v5277_v33, %s4862_s21  ;;  %1049 = vrot.lane.b32.xlu0 %v5281_v35, %s4862_s21 }
 0x370   : > { %979 = vrot.lane.b32.xlu1 %v5260_v24, %s4864_s23  ;;  %977 = vrot.lane.b32.xlu0 %v5245_v63, %s4864_s23 }
 0x374   : > { %983 = vrot.lane.b32.xlu1 %v5277_v33, %s4864_s23  ;;  %981 = vrot.lane.b32.xlu0 %v5281_v35, %s4864_s23 }
 0x378   : > { %1080 = vrot.lane.b32.xlu1 %v5260_v24, %s4865_s28  ;;  %1078 = vrot.lane.b32.xlu0 %v5245_v63, %s4865_s28 }
 0x37c   : > { %1115 = vrot.lane.b32.xlu1 %v5281_v35, %s4866_s15  ;;  %1113 = vrot.lane.b32.xlu0 %v5260_v24, %s4866_s15 }
 0x380   : > { %1084 = vrot.lane.b32.xlu1 %v5277_v33, %s4865_s28  ;;  %1082 = vrot.lane.b32.xlu0 %v5281_v35, %s4865_s28 }
 0x384   : > { %1117 = vrot.lane.b32.xlu1 %v5277_v33, %s4866_s15  ;;  %1111 = vrot.lane.b32.xlu0 %v5245_v63, %s4866_s15 }
 0x388   : > { %1148 = vrot.lane.b32.xlu1 %v5281_v35, %s4867_s12  ;;  %1146 = vrot.lane.b32.xlu0 %v5260_v24, %s4867_s12 }
 0x38c   : > { %1181 = vrot.lane.b32.xlu1 %v5281_v35, %s4868_s22  ;;  %1179 = vrot.lane.b32.xlu0 %v5260_v24, %s4868_s22 }
 0x390   : > { %1150 = vrot.lane.b32.xlu1 %v5277_v33, %s4867_s12  ;;  %1144 = vrot.lane.b32.xlu0 %v5245_v63, %s4867_s12 }
 0x394   : > { %1183 = vrot.lane.b32.xlu1 %v5277_v33, %s4868_s22  ;;  %1177 = vrot.lane.b32.xlu0 %v5245_v63, %s4868_s22 }
 0x398   : > { %1212 = vrot.lane.b32.xlu1 %v5260_v24, %s4870_s16  ;;  %1210 = vrot.lane.b32.xlu0 %v5245_v63, %s4870_s16 }
 0x39c   : > { %1216 = vrot.lane.b32.xlu1 %v5277_v33, %s4870_s16  ;;  %1214 = vrot.lane.b32.xlu0 %v5281_v35, %s4870_s16 }
 0x3a0   : > { %1371 = vperm.xlu1 %4600, %v1361_v37   ;;  %1366 = vperm.xlu0 %4599, %v1360_v38  }
 0x3a4   : > { %1376 = vperm.xlu1 %4600, %v1362_v39   ;;  %1381 = vperm.xlu0 %4599, %v1363_v40   ;;  %v5451_v39 = vrot.slane %v5380_v55, %v5158_v1 }
 0x3a6   : > { %10012 = vst [vmem:[#allocation46_spill] sm:$0xff] %v5451_v39 }
 0x3d2   : > { %v1046_v43 = vpop.permute.xlu1 %1045  ;;  %v1013_v44 = vpop.permute.xlu0 %1012 }
 0x3d6   : > { %v1048_v47 = vpop.permute.xlu1 %1047  ;;  %v1015_v48 = vpop.permute.xlu0 %1014 }
 0x3d7   : > { %v1056_v50 = vsel %vm1053_vm10, %v1046_v43, %v1048_v47  ;;  %v1023_v52 = vsel %vm1020_vm11, %v1013_v44, %v1015_v48 }
 0x3d8   : > { %v5388_v57 = vmul.f32 %v5367_v49, %v1056_v50  ;;  %v1042_v58 = vmul.f32 %v5373_v51, %v1023_v52  ;;  %v5468_v50 = vrot.slane %v5361_v46, %v5167_v4 }
 0x3da   : > { %v1019_v53 = vpop.permute.xlu1 %1018  ;;  %v1017_v54 = vpop.permute.xlu0 %1016  ;;  %v9666_v26 = vrot.slane %v5388_v57, 4  ;;  %v1248_v28 = vrot.slane %v1042_v58, 2  ;;  %v1126_v58 = vsub.s32 5, %v5140_v14 }
 0x3db   : > { %v1024_v0 = vsel %vm1020_vm11, %v1019_v53, %v1013_v44  ;;  %v1021_v21 = vsel %vm1020_vm11, %v1017_v54, %v1019_v53  ;;  %v1022_v29 = vsel %vm1020_vm11, %v1015_v48, %v1017_v54  ;;  %v5461_v44 = vrot.slane %v5385_v56, %v5158_v1 }
 0x3dc   : > { %v1041_v32 = vmul.f32 %v5406_v62, %v1024_v0  ;;  %v1044_v3 = vmul.f32 %v5412_v17, %v1021_v21  ;;  %v1321_v54 = vsel %vm959_vm8, %v1248_v28, %v9666_v26 }
 0x3dd   : > { %10014 = vst [vmem:[#allocation48_spill] sm:$0xff] %v5461_v44 }
 0x3de   : > { %v1052_v18 = vpop.permute.xlu1 %1051  ;;  %v1050_v20 = vpop.permute.xlu0 %1049  ;;  %v1247_v0 = vrot.slane %v1041_v32, 2 }
 0x3df   : > { %v1057_v22 = vsel %vm1053_vm10, %v1052_v18, %v1046_v43  ;;  %v1054_v23 = vsel %vm1053_vm10, %v1050_v20, %v1052_v18  ;;  %v1055_v25 = vsel %vm1053_vm10, %v1048_v47, %v1050_v20  ;;  %v5457_v43 = vrot.slane %v5394_v59, %v5158_v1 }
 0x3e0   : > { %v5439_v30 = vmul.f32 %v5398_v60, %v1057_v22  ;;  %v5442_v31 = vmul.f32 %v5402_v61, %v1054_v23  ;;  %v5447_v34 = vmul.f32 %v5416_v19, %v1055_v25  ;;  %v1043_v47 = vmul.f32 %v5429_v27, %v1022_v29 }
 0x3e1   : > { %10013 = vst [vmem:[#allocation47_spill] sm:$0xff] %v5457_v43  ;;  %v1250_v18 = vrot.slane %v1044_v3, 2 }
 0x3e2   : > { %v980_v37 = vpop.permute.xlu1 %979  ;;  %v978_v38 = vpop.permute.xlu0 %977  ;;  %v9669_v52 = vrot.slane %v5439_v30, 4  ;;  %v9668_v53 = vrot.slane %v5442_v31, 4  ;;  %v9667_v20 = vrot.slane %v5447_v34, 4  ;;  %v1249_v36 = vrot.slane %v1043_v47, 2 }
 0x3e3   : > { %v990_v40 = vsel %vm987_vm12, %v978_v38, %v980_v37 }
 0x3e4   : > { %v1009_v48 = vmul.f32 %v5434_v2, %v990_v40 }
 0x3e6   : > { %v984_v21 = vpop.permute.xlu1 %983  ;;  %v982_v22 = vpop.permute.xlu0 %981  ;;  %v1317_v23 = vsel %vm1315_vm13, %v1009_v48, %v1248_v28  ;;  %v1320_v28 = vsel %vm959_vm8, %v1247_v0, %v9669_v52 }
 0x3e7   : > { %v991_v25 = vsel %vm987_vm12, %v984_v21, %v978_v38  ;;  %v988_v29 = vsel %vm987_vm12, %v982_v22, %v984_v21  ;;  %v989_v40 = vsel %vm987_vm12, %v980_v37, %v982_v22  ;;  %v1341_v5 = vpack.c.bf16 %v1321_v54, %v1317_v23 }
 0x3e8   : > { %v1008_v32 = vmul.f32 %v5451_v39, %v991_v25  ;;  %v1010_v3 = vmul.f32 %v5457_v43, %v989_v40  ;;  %v1011_v26 = vmul.f32 %v5461_v44, %v988_v29  ;;  %v1323_v38 = vsel %vm959_vm8, %v1250_v18, %v9668_v53 }
 0x3e9   : > { %1413 = vmatprep.subr.bf16.mxu1 %v1341_v5  ;;  %v1322_v5 = vsel %vm959_vm8, %v1249_v36, %v9667_v20  ;;  %v10022_v20 = vrot.slane %v5388_v57, 4  ;;  %v1192_v57 = vsub.s32 7, %v5140_v14 }
 0x3ea   : > { %v1081_v48 = vpop.permute.xlu1 %1080  ;;  %v1079_v21 = vpop.permute.xlu0 %1078  ;;  %v1316_v37 = vsel %vm1315_vm13, %v1008_v32, %v1247_v0  ;;  %v1319_v47 = vsel %vm1315_vm13, %v1011_v26, %v1250_v18  ;;  %v1318_v54 = vsel %vm1315_vm13, %v1010_v3, %v1249_v36  ;;  %v5504_v0 = vrot.slane %v5361_v46, %v1126_v58 }
 0x3eb   : > { %v1089_v22 = vsel %vm1086_vm14, %v1079_v21, %v1081_v48  ;;  %v1340_v23 = vpack.c.bf16 %v1320_v28, %v1316_v37  ;;  %v1343_v25 = vpack.c.bf16 %v1323_v38, %v1319_v47  ;;  %v1342_v29 = vpack.c.bf16 %v1322_v5, %v1318_v54 }
 0x3ec   : > { %v1108_v40 = vmul.f32 %v5468_v50, %v1089_v22  ;;  %10015 = vst [vmem:[#allocation49_spill] sm:$0xff] %v5504_v0  ;;  %v5513_v28 = vrot.slane %v5380_v55, %v5167_v4  ;;  %v5517_v38 = vrot.slane %v5394_v59, %v5167_v4  ;;  %v5521_v37 = vrot.slane %v5385_v56, %v5167_v4 }
 0x3ed   : > { %1414 = vmatpush1.bf16.msra.mxu1 %v1340_v23  ;;  %1466 = vmatprep.subr.bf16.mxu0 %v1343_v25  ;;  %v5524_v47 = vrot.slane %v5394_v59, %v1126_v58  ;;  %v5528_v23 = vrot.slane %v5380_v55, %v1126_v58  ;;  %v5531_v25 = vrot.slane %v5385_v56, %v1126_v58 }
 0x3ee   : > { %v1116_v26 = vpop.permute.xlu1 %1115  ;;  %1467 = vmatpush1.bf16.msra.mxu0 %v1342_v29  ;;  %v1114_v18 = vpop.permute.xlu0 %1113  ;;  %v1272_v32 = vrot.slane %v1108_v40, 6  ;;  %10016 = vst [vmem:[#allocation50_spill] sm:$0xff] %v5513_v28  ;;  %10017 = vst [vmem:[#allocation51_spill] sm:$0xff] %v5517_v38  ;;  %v1159_v29 = vsub.s32 6, %v5140_v14 }
 0x3ef   : > { %v1121_v36 = vsel %vm1119_vm15, %v1114_v18, %v1116_v26  ;;  %10018 = vst [vmem:[#allocation52_spill] sm:$0xff] %v5521_v37  ;;  %10019 = vst [vmem:[#allocation53_spill] sm:$0xff] %v5524_v47 }
 0x3f0   : > { %v5509_v3 = vmul.f32 %v5504_v0, %v1121_v36  ;;  %10020 = vst [vmem:[#allocation54_spill] sm:$0xff] %v5528_v23  ;;  %10021 = vst [vmem:[#allocation55_spill] sm:$0xff] %v5531_v25  ;;  %v1325_v53 = vsel %vm949_vm6, %v10022_v20, %v1272_v32 }
 0x3f2   : > { %v1085_v5 = vpop.permute.xlu1 %1084  ;;  %v1083_v22 = vpop.permute.xlu0 %1082  ;;  %v10023_v11 = vrot.slane %v5509_v3, 2 }
 0x3f3   : > { %v1090_v40 = vsel %vm1086_vm14, %v1085_v5, %v1079_v21  ;;  %v1087_v4 = vsel %vm1086_vm14, %v1083_v22, %v1085_v5  ;;  %v1088_v36 = vsel %vm1086_vm14, %v1081_v48, %v1083_v22 }
 0x3f4   : > { %v1107_v52 = vmul.f32 %v5513_v28, %v1090_v40  ;;  %v1109_v58 = vmul.f32 %v5517_v38, %v1088_v36  ;;  %v1110_v54 = vmul.f32 %v5521_v37, %v1087_v4  ;;  %v1329_v21 = vsel %vm1315_vm13, %v5260_v24, %v10023_v11  ;;  %v2127_v37 = vld [vmem:[%s9642_s8] sm:$0xff] }
 0x3f5   : > { %v1345_v10 = vpack.c.bf16 %v1329_v21, %v1325_v53  ;;  %v5568_v53 = vrot.slane %v5361_v46, %v1159_v29  ;;  %v5575_v4 = vrot.slane %v5361_v46, %v1192_v57 }
 0x3f6   : > { %v1271_v5 = vrot.slane %v1107_v52, 6  ;;  %v1273_v9 = vrot.slane %v1109_v58, 6  ;;  %v1118_v8 = vpop.permute.xlu1 %1117  ;;  %v1112_v48 = vpop.permute.xlu0 %1111  ;;  %v1274_v20 = vrot.slane %v1110_v54, 6  ;;  %v10026_v58 = vrot.slane %v5439_v30, 4 }
 0x3f7   : > { %v1120_v32 = vsel %vm1119_vm15, %v1116_v26, %v1118_v8  ;;  %v1122_v22 = vsel %vm1119_vm15, %v1112_v48, %v1114_v18  ;;  %v1123_v40 = vsel %vm1119_vm15, %v1118_v8, %v1112_v48  ;;  %1415 = vmatprep.subr.bf16.mxu1 %v1345_v10  ;;  %10024 = vst [vmem:[#allocation56_spill] sm:$0xff] %v5568_v53  ;;  %10025 = vst [vmem:[#allocation57_spill] sm:$0xff] %v5575_v4 }
 0x3f8   : > { %v5559_v11 = vmul.f32 %v5524_v47, %v1120_v32  ;;  %v5562_v24 = vmul.f32 %v5528_v23, %v1122_v22  ;;  %v5565_v52 = vmul.f32 %v5531_v25, %v1123_v40  ;;  %v1324_v21 = vsel %vm949_vm6, %v10026_v58, %v1271_v5 }
 0x3f9   : > { %v10027_v48 = vrot.slane %v5442_v31, 4  ;;  %v10028_v22 = vrot.slane %v5447_v34, 4 }
 0x3fa   : > { %v9675_v18 = vrot.slane %v5562_v24, 2  ;;  %v9674_v8 = vrot.slane %v5565_v52, 2  ;;  %v1149_v10 = vpop.permute.xlu1 %1148  ;;  %v1147_v54 = vpop.permute.xlu0 %1146  ;;  %v10029_v31 = vrot.slane %v5559_v11, 2 }
 0x3fb   : > { %v1154_v36 = vsel %vm1152_vm0, %v1147_v54, %v1149_v10  ;;  %v1327_v32 = vsel %vm949_vm6, %v10027_v48, %v1274_v20  ;;  %v1326_v40 = vsel %vm949_vm6, %v10028_v22, %v1273_v9 }
 0x3fc   : > { %v1174_v26 = vmul.f32 %v5568_v53, %v1154_v36  ;;  %v1328_v46 = vsel %vm1315_vm13, %v5245_v63, %v9675_v18  ;;  %v1331_v30 = vsel %vm1315_vm13, %v5277_v33, %v9674_v8  ;;  %v1330_v5 = vsel %vm1315_vm13, %v5281_v35, %v10029_v31 }
 0x3fd   : > { %v1344_v34 = vpack.c.bf16 %v1328_v46, %v1324_v21  ;;  %v1347_v20 = vpack.c.bf16 %v1331_v30, %v1327_v32  ;;  %v1346_v9 = vpack.c.bf16 %v1330_v5, %v1326_v40  ;;  %v5605_v33 = vrot.slane %v5394_v59, %v1159_v29 }
 0x3fe   : > { %v1182_v58 = vpop.permute.xlu1 %1181  ;;  %v1180_v36 = vpop.permute.xlu0 %1179  ;;  %v1296_v48 = vrot.slane %v1174_v26, 4  ;;  %v5608_v8 = vrot.slane %v5380_v55, %v1159_v29  ;;  %v5611_v35 = vrot.slane %v5385_v56, %v1159_v29  ;;  %v5614_v40 = vrot.slane %v5394_v59, %v1192_v57 }
 0x3ff   : > { %v1187_v22 = vsel %vm1185_vm1, %v1180_v36, %v1182_v58  ;;  %1416 = vmatpush1.bf16.msra.mxu1 %v1344_v34  ;;  %1468 = vmatprep.subr.bf16.mxu0 %v1347_v20  ;;  %10030 = vst [vmem:[#allocation58_spill] sm:$0xff] %v5605_v33  ;;  %v5617_v46 = vrot.slane %v5380_v55, %v1192_v57  ;;  %v10036_v34 = vrot.slane %v5509_v3, 2 }
 0x400   : > { %v1207_v63 = vmul.f32 %v5575_v4, %v1187_v22  ;;  %1469 = vmatpush1.bf16.msra.mxu0 %v1346_v9  ;;  %10031 = vst [vmem:[#allocation59_spill] sm:$0xff] %v5608_v8  ;;  %10032 = vst [vmem:[#allocation60_spill] sm:$0xff] %v5611_v35  ;;  %v5620_v30 = vrot.slane %v5385_v56, %v1192_v57 }
 0x401   : > { %10033 = vst [vmem:[#allocation61_spill] sm:$0xff] %v5614_v40  ;;  %10034 = vst [vmem:[#allocation62_spill] sm:$0xff] %v5617_v46  ;;  %v1333_v59 = vsel %vm959_vm8, %v10036_v34, %v1296_v48 }
 0x402   : > { %v1308_v21 = vrot.slane %v1207_v63, 6  ;;  %v1151_v32 = vpop.permute.xlu1 %1150  ;;  %v1145_v26 = vpop.permute.xlu0 %1144  ;;  %10035 = vst [vmem:[#allocation63_spill] sm:$0xff] %v5620_v30 }
 0x403   : > { %v1153_v31 = vsel %vm1152_vm0, %v1149_v10, %v1151_v32  ;;  %v1155_v5 = vsel %vm1152_vm0, %v1145_v26, %v1147_v54  ;;  %v1156_v29 = vsel %vm1152_vm0, %v1151_v32, %v1145_v26 }
 0x404   : > { %v1175_v20 = vmul.f32 %v5605_v33, %v1153_v31  ;;  %v1173_v55 = vmul.f32 %v5608_v8, %v1155_v5  ;;  %v1176_v56 = vmul.f32 %v5611_v35, %v1156_v29  ;;  %v1337_v57 = vsel %vm949_vm6, %v1296_v48, %v1308_v21  ;;  %v4348_v5 = vld [vmem:[%s9638_s4 + $0x20] ss:$0 sm:$0xff] }
 0x405   : > { %v1349_v9 = vpack.c.bf16 %v1337_v57, %v1333_v59  ;;  %v10038_v57 = vrot.slane %v5565_v52, 2  ;;  %v4349_v52 = vld [vmem:[%s9638_s4 + $0x28] ss:$0 sm:$0xff] }
 0x406   : > { %v1297_v10 = vrot.slane %v1175_v20, 4  ;;  %v1295_v22 = vrot.slane %v1173_v55, 4  ;;  %v1184_v63 = vpop.permute.xlu1 %1183  ;;  %v1178_v54 = vpop.permute.xlu0 %1177  ;;  %v1298_v18 = vrot.slane %v1176_v56, 4  ;;  %v10037_v55 = vrot.slane %v5562_v24, 2  ;;  %v4351_v24 = vld [vmem:[%s9638_s4 + $0x38] ss:$0 sm:$0xff] }
 0x407   : > { %v1186_v32 = vsel %vm1185_vm1, %v1182_v58, %v1184_v63  ;;  %v1188_v3 = vsel %vm1185_vm1, %v1178_v54, %v1180_v36  ;;  %v1189_v26 = vsel %vm1185_vm1, %v1184_v63, %v1178_v54  ;;  %1417 = vmatprep.subr.bf16.mxu1 %v1349_v9  ;;  %v10039_v63 = vrot.slane %v5559_v11, 2 }
 0x408   : > { %v1208_v31 = vmul.f32 %v5614_v40, %v1186_v32  ;;  %v1206_v48 = vmul.f32 %v5617_v46, %v1188_v3  ;;  %v1209_v21 = vmul.f32 %v5620_v30, %v1189_v26  ;;  %v1332_v56 = vsel %vm959_vm8, %v10037_v55, %v1295_v22 }
 0x409   : > { %v1335_v9 = vsel %vm959_vm8, %v10038_v57, %v1298_v18  ;;  %v1334_v54 = vsel %vm959_vm8, %v10039_v63, %v1297_v10 }
 0x40a   : > { %v1309_v58 = vrot.slane %v1208_v31, 6  ;;  %v1307_v29 = vrot.slane %v1206_v48, 6  ;;  %v1310_v34 = vrot.slane %v1209_v21, 6  ;;  %v1213_v36 = vpop.permute.xlu1 %1212  ;;  %v1211_v59 = vpop.permute.xlu0 %1210 }
 0x40b   : > { %v1221_v20 = vsel %vm1218_vm2, %v1211_v59, %v1213_v36 }
 0x40c   : > { %v1336_v32 = vsel %vm949_vm6, %v1295_v22, %v1307_v29  ;;  %v1339_v3 = vsel %vm949_vm6, %v1298_v18, %v1310_v34  ;;  %v1338_v26 = vsel %vm949_vm6, %v1297_v10, %v1309_v58  ;;  %v1239_v31 = vmul.f32 %v4348_v5, %v1221_v20  ;;  %v4350_v22 = vld [vmem:[%s9638_s4 + $0x30] ss:$0 sm:$0xff] }
 0x40d   : > { %v1348_v48 = vpack.c.bf16 %v1336_v32, %v1332_v56  ;;  %v1351_v21 = vpack.c.bf16 %v1339_v3, %v1335_v9  ;;  %v1350_v11 = vpack.c.bf16 %v1338_v26, %v1334_v54  ;;  %v4601_v32 = vld [vmem:[#allocation13] sm:$0xff]   ;;  %v4602_v3 = vld [vmem:[#allocation13 + $0x8] sm:$0xff]  }
 0x40e   : > { %v1217_v29 = vpop.permute.xlu1 %1216  ;;  %v1215_v18 = vpop.permute.xlu0 %1214  ;;  %v1352_v55 = vpack.c.bf16 %v1239_v31, %v1239_v31 }
 0x40f   : > { %v1222_v10 = vsel %vm1218_vm2, %v1217_v29, %v1211_v59  ;;  %v1219_v5 = vsel %vm1218_vm2, %v1215_v18, %v1217_v29  ;;  %v1220_v58 = vsel %vm1218_vm2, %v1213_v36, %v1215_v18  ;;  %1418 = vmatpush1.bf16.msra.mxu1 %v1348_v48  ;;  %1470 = vmatprep.subr.bf16.mxu0 %v1351_v21  ;;  %v10040_v36 = vmov 0  }
 0x410   : > { %v1242_v34 = vmul.f32 %v4351_v24, %v1222_v10  ;;  %v1240_v20 = vmul.f32 %v4349_v52, %v1220_v58  ;;  %1471 = vmatpush1.bf16.msra.mxu0 %v1350_v11  ;;  %v1241_v56 = vmul.f32 %v4350_v22, %v1219_v5  ;;  %v1402_v59 = vsel %vm954_vm7, %v1352_v55, 0 }
 0x412   : > { %v1355_v57 = vpack.c.bf16 %v1242_v34, %v1242_v34  ;;  %v1353_v9 = vpack.c.bf16 %v1240_v20, %v1240_v20  ;;  %v1354_v63 = vpack.c.bf16 %v1241_v56, %v1241_v56 }
 0x414   : > { %4354 = vmatprep.subr.msk.bf16.mxu1 %vm954_vm7, %v1353_v9  ;;  %4357 = vmatprep.subr.msk.bf16.mxu0 %vm954_vm7, %v1355_v57  ;;  %v1408_v54 = vsel %vm954_vm7, %v1354_v63, 0 }
 0x415   : > { %1420 = vmatpush1.bf16.msra.mxu1 %v1402_v59  ;;  %1473 = vmatpush1.bf16.msra.mxu0 %v1408_v54 }
 0x418   : > { %4355 = vmatmul.mubr.msk.bf16.vlgmr.msra.gmra.mrb[4].mxu1 %vm1394_vm3, %v4601_v32  ;;  %4358 = vmatmul.mubr.msk.bf16.vlgmr.msra.gmra.mrb[4].mxu0 %vm1394_vm3, %v4601_v32 }
 0x419   : > { %1455 = vmatprep.mubr.bf16.mxu1 %v10040_v36  ;;  %1508 = vmatprep.mubr.bf16.mxu0 %v10040_v36 }
 0x41f   : > { %v1372_v26 = vpop.permute.xlu1 %1371  ;;  %v1367_v31 = vpop.permute.xlu0 %1366 }
 0x420   : > { %4356 = vmatmul.mubr.msk.bf16.gmra.mrb[8].mxu1 %vm1394_vm3, %v4602_v3  ;;  %4359 = vmatmul.mubr.msk.bf16.gmra.mrb[8].mxu0 %vm1394_vm3, %v4602_v3 }
 0x4eb   : > { %v1447_v24 = vpop.f32.mrb[4].mxu1  ;;  %v1500_v52 = vpop.f32.mrb[4].mxu0 }
 0x4ec   : > { %v1448_v48 = vadd.f32 %v1447_v24, %v1367_v31  ;;  %v1501_v21 = vadd.f32 %v1500_v52, %v1367_v31  ;;  %v1449_v11 = vpop.f32.mrb[5].mxu1  ;;  %v1502_v22 = vpop.f32.mrb[5].mxu0 }
 0x4ed   : > { %v1451_v29 = vpop.f32.mrb[6].mxu1  ;;  %v1504_v18 = vpop.f32.mrb[6].mxu0 }
 0x4ee   : > { %v5683_v10 = vmax.f32 %v1448_v48, 0.0  ;;  %v5685_v5 = vmax.f32 %v1501_v21, 0.0  ;;  %v1452_v58 = vadd.f32 %v1451_v29, %v1372_v26  ;;  %v1505_v34 = vadd.f32 %v1504_v18, %v1372_v26  ;;  %v1453_v20 = vpop.f32.mrb[7].mxu1  ;;  %v1506_v55 = vpop.f32.mrb[7].mxu0 }
 0x4ef   : > { %v1450_v21 = vadd.f32 %v1449_v11, %v1367_v31  ;;  %v1454_v29 = vadd.f32 %v1453_v20, %v1372_v26  ;;  %v1507_v9 = vadd.f32 %v1506_v55, %v1372_v26  ;;  %v5827_v26 = vpop.permute.xlu1 %1376 }
 0x4f0   : > { %10041 = vst [vmem:[#allocation64_spill] sm:$0xff] %v5685_v5  ;;  %v5687_v56 = vmax.f32 %v1452_v58, 0.0  ;;  %v5689_v57 = vmax.f32 %v1505_v34, 0.0  ;;  %1535 = vrot.lane.b32.xlu1 %v5683_v10, %s4864_s23  ;;  %v1503_v58 = vadd.f32 %v1502_v22, %v1367_v31  ;;  %v5831_v31 = vpop.permute.xlu0 %1381 }
 0x4f1   : > { %v5767_v18 = vmax.f32 %v1450_v21, 0.0  ;;  %v5771_v34 = vmax.f32 %v1454_v29, 0.0  ;;  %v5779_v20 = vmax.f32 %v1507_v9, 0.0 }
 0x4f2   : > { %10042 = vst [vmem:[#allocation65_spill] sm:$0xff] %v5689_v57  ;;  %1537 = vrot.lane.b32.xlu0 %v5687_v56, %s4864_s23  ;;  %v5775_v11 = vmax.f32 %v1503_v58, 0.0 }
 0x4f3   : > { %v5697_v63 = vpop.f32.mrb[8].mxu1  ;;  %v5699_v59 = vpop.f32.mrb[8].mxu0 }
 0x4f4   : > { %v5701_v54 = vpop.f32.mrb[9].mxu1  ;;  %v5703_v32 = vpop.f32.mrb[9].mxu0  ;;  %1551 = vrot.lane.b32.xlu1 %v5685_v5, %s4864_s23  ;;  %v1458_v22 = vadd.f32 %v5697_v63, %v5827_v26  ;;  %v1511_v58 = vadd.f32 %v5699_v59, %v5827_v26 }
 0x4f5   : > { %v5707_v3 = vpop.f32.mrb[10].mxu1  ;;  %v5709_v24 = vpop.f32.mrb[10].mxu0 }
 0x4f6   : > { %v5711_v52 = vpop.f32.mrb[11].mxu1  ;;  %v5713_v48 = vpop.f32.mrb[11].mxu0  ;;  %1553 = vrot.lane.b32.xlu0 %v5689_v57, %s4864_s23  ;;  %v1462_v9 = vadd.f32 %v5707_v3, %v5831_v31  ;;  %v5847_v29 = vmax.f32 %v1458_v22, 0.0  ;;  %v1515_v3 = vadd.f32 %v5709_v24, %v5831_v31  ;;  %v5863_v22 = vmax.f32 %v1511_v58, 0.0 }
 0x4f8   : > { %1599 = vrot.lane.b32.xlu1 %v5683_v10, %s4863_s24  ;;  %10043 = vst [vmem:[#allocation66_spill] sm:$0xff] %v5847_v29  ;;  %v5855_v1 = vmax.f32 %v1462_v9, 0.0  ;;  %10045 = vst [vmem:[#allocation68_spill] sm:$0xff] %v5863_v22  ;;  %v5869_v59 = vmax.f32 %v1515_v3, 0.0 }
 0x4fa   : > { %1601 = vrot.lane.b32.xlu0 %v5687_v56, %s4863_s24  ;;  %10044 = vst [vmem:[#allocation67_spill] sm:$0xff] %v5855_v1  ;;  %10046 = vst [vmem:[#allocation69_spill] sm:$0xff] %v5869_v59 }
 0x4fc   : > { %1615 = vrot.lane.b32.xlu1 %v5685_v5, %s4863_s24 }
 0x4fe   : > { %1617 = vrot.lane.b32.xlu0 %v5689_v57, %s4863_s24 }
 0x500   : > { %1663 = vrot.lane.b32.xlu1 %v5683_v10, %s4862_s21 }
 0x502   : > { %1665 = vrot.lane.b32.xlu0 %v5687_v56, %s4862_s21 }
 0x504   : > { %1679 = vrot.lane.b32.xlu1 %v5685_v5, %s4862_s21 }
 0x506   : > { %1681 = vrot.lane.b32.xlu0 %v5689_v57, %s4862_s21 }
 0x508   : > { %1727 = vrot.lane.b32.xlu1 %v5683_v10, %s4865_s28 }
 0x50a   : > { %1729 = vrot.lane.b32.xlu0 %v5687_v56, %s4865_s28 }
 0x50c   : > { %1743 = vrot.lane.b32.xlu1 %v5685_v5, %s4865_s28 }
 0x50e   : > { %1745 = vrot.lane.b32.xlu0 %v5689_v57, %s4865_s28 }
 0x510   : > { %1807 = vrot.lane.b32.xlu1 %v5685_v5, %s4866_s15 }
 0x512   : > { %1809 = vrot.lane.b32.xlu0 %v5689_v57, %s4866_s15 }
 0x514   : > { %1791 = vrot.lane.b32.xlu1 %v5683_v10, %s4866_s15 }
 0x516   : > { %1793 = vrot.lane.b32.xlu0 %v5687_v56, %s4866_s15 }
 0x518   : > { %1871 = vrot.lane.b32.xlu1 %v5685_v5, %s4867_s12 }
 0x51a   : > { %1873 = vrot.lane.b32.xlu0 %v5689_v57, %s4867_s12 }
 0x51c   : > { %1855 = vrot.lane.b32.xlu1 %v5683_v10, %s4867_s12 }
 0x51e   : > { %1857 = vrot.lane.b32.xlu0 %v5687_v56, %s4867_s12 }
 0x520   : > { %1935 = vrot.lane.b32.xlu1 %v5685_v5, %s4868_s22 }
 0x522   : > { %1937 = vrot.lane.b32.xlu0 %v5689_v57, %s4868_s22 }
 0x524   : > { %1919 = vrot.lane.b32.xlu1 %v5683_v10, %s4868_s22 }
 0x526   : > { %1921 = vrot.lane.b32.xlu0 %v5687_v56, %s4868_s22 }
 0x528   : > { %1999 = vrot.lane.b32.xlu1 %v5685_v5, %s4870_s16 }
 0x52a   : > { %2001 = vrot.lane.b32.xlu0 %v5689_v57, %s4870_s16 }
 0x52c   : > { %1543 = vrot.lane.b32.xlu1 %v5767_v18, %s4864_s23 }
 0x52e   : > { %1545 = vrot.lane.b32.xlu0 %v5771_v34, %s4864_s23 }
 0x530   : > { %1559 = vrot.lane.b32.xlu1 %v5775_v11, %s4864_s23 }
 0x532   : > { %1561 = vrot.lane.b32.xlu0 %v5779_v20, %s4864_s23 }
 0x534   : > { %1607 = vrot.lane.b32.xlu1 %v5767_v18, %s4863_s24 }
 0x536   : > { %1609 = vrot.lane.b32.xlu0 %v5771_v34, %s4863_s24 }
 0x538   : > { %1623 = vrot.lane.b32.xlu1 %v5775_v11, %s4863_s24 }
 0x53a   : > { %1625 = vrot.lane.b32.xlu0 %v5779_v20, %s4863_s24 }
 0x53c   : > { %1671 = vrot.lane.b32.xlu1 %v5767_v18, %s4862_s21 }
 0x53e   : > { %1673 = vrot.lane.b32.xlu0 %v5771_v34, %s4862_s21 }
 0x540   : > { %1687 = vrot.lane.b32.xlu1 %v5775_v11, %s4862_s21 }
 0x542   : > { %1689 = vrot.lane.b32.xlu0 %v5779_v20, %s4862_s21 }
 0x544   : > { %1735 = vrot.lane.b32.xlu1 %v5767_v18, %s4865_s28 }
 0x546   : > { %1737 = vrot.lane.b32.xlu0 %v5771_v34, %s4865_s28 }
 0x548   : > { %1751 = vrot.lane.b32.xlu1 %v5775_v11, %s4865_s28 }
 0x54a   : > { %1753 = vrot.lane.b32.xlu0 %v5779_v20, %s4865_s28 }
 0x54c   : > { %1799 = vrot.lane.b32.xlu1 %v5767_v18, %s4866_s15 }
 0x54e   : > { %1801 = vrot.lane.b32.xlu0 %v5771_v34, %s4866_s15 }
 0x550   : > { %1815 = vrot.lane.b32.xlu1 %v5775_v11, %s4866_s15 }
 0x552   : > { %1817 = vrot.lane.b32.xlu0 %v5779_v20, %s4866_s15 }
 0x554   : > { %1863 = vrot.lane.b32.xlu1 %v5767_v18, %s4867_s12 }
 0x556   : > { %1865 = vrot.lane.b32.xlu0 %v5771_v34, %s4867_s12 }
 0x558   : > { %1879 = vrot.lane.b32.xlu1 %v5775_v11, %s4867_s12 }
 0x55a   : > { %1881 = vrot.lane.b32.xlu0 %v5779_v20, %s4867_s12 }
 0x55c   : > { %1927 = vrot.lane.b32.xlu1 %v5767_v18, %s4868_s22 }
 0x55e   : > { %1929 = vrot.lane.b32.xlu0 %v5771_v34, %s4868_s22 }
 0x560   : > { %1943 = vrot.lane.b32.xlu1 %v5775_v11, %s4868_s22 }
 0x562   : > { %1945 = vrot.lane.b32.xlu0 %v5779_v20, %s4868_s22  ;;  %v5839_v55 = vpop.permute.xlu1 %1535 }
 0x564   : > { %1991 = vrot.lane.b32.xlu1 %v5767_v18, %s4870_s16  ;;  %v5845_v21 = vpop.permute.xlu0 %1537 }
 0x566   : > { %1993 = vrot.lane.b32.xlu0 %v5771_v34, %s4870_s16  ;;  %v5853_v63 = vpop.permute.xlu1 %1551 }
 0x568   : > { %1539 = vrot.lane.b32.xlu1 %v5847_v29, %s4864_s23  ;;  %v5861_v15 = vpop.permute.xlu0 %1553 }
 0x56a   : > { %v5865_v16 = vpop.permute.xlu1 %1599  ;;  %1541 = vrot.lane.b32.xlu0 %v5855_v1, %s4864_s23 }
 0x56c   : > { %1555 = vrot.lane.b32.xlu1 %v5863_v22, %s4864_s23  ;;  %v5873_v9 = vpop.permute.xlu0 %1601 }
 0x56e   : > { %v5875_v24 = vpop.permute.xlu1 %1615  ;;  %1557 = vrot.lane.b32.xlu0 %v5869_v59, %s4864_s23 }
 0x570   : > { %1603 = vrot.lane.b32.xlu1 %v5847_v29, %s4863_s24  ;;  %v5881_v58 = vpop.permute.xlu0 %1617 }
 0x572   : > { %v5883_v12 = vpop.permute.xlu1 %1663  ;;  %1605 = vrot.lane.b32.xlu0 %v5855_v1, %s4863_s24 }
 0x574   : > { %1619 = vrot.lane.b32.xlu1 %v5863_v22, %s4863_s24  ;;  %v5889_v3 = vpop.permute.xlu0 %1665 }
 0x576   : > { %v5891_v13 = vpop.permute.xlu1 %1679  ;;  %1621 = vrot.lane.b32.xlu0 %v5869_v59, %s4863_s24 }
 0x578   : > { %1667 = vrot.lane.b32.xlu1 %v5847_v29, %s4862_s21  ;;  %v5897_v6 = vpop.permute.xlu0 %1681 }
 0x57a   : > { %v5899_v7 = vpop.permute.xlu1 %1727  ;;  %1669 = vrot.lane.b32.xlu0 %v5855_v1, %s4862_s21 }
 0x57c   : > { %1683 = vrot.lane.b32.xlu1 %v5863_v22, %s4862_s21  ;;  %v5905_v41 = vpop.permute.xlu0 %1729 }
 0x57e   : > { %v5907_v42 = vpop.permute.xlu1 %1743  ;;  %1685 = vrot.lane.b32.xlu0 %v5869_v59, %s4862_s21 }
 0x580   : > { %1731 = vrot.lane.b32.xlu1 %v5847_v29, %s4865_s28  ;;  %v5913_v14 = vpop.permute.xlu0 %1745 }
 0x582   : > { %v5915_v36 = vpop.permute.xlu1 %1807  ;;  %1733 = vrot.lane.b32.xlu0 %v5855_v1, %s4865_s28 }
 0x583   : > { %10047 = vst [vmem:[#allocation70_spill] sm:$0xff] %v5915_v36 }
 0x584   : > { %1747 = vrot.lane.b32.xlu1 %v5863_v22, %s4865_s28  ;;  %v5921_v30 = vpop.permute.xlu0 %1809 }
 0x585   : > { %10048 = vst [vmem:[#allocation71_spill] sm:$0xff] %v5921_v30 }
 0x586   : > { %v5923_v40 = vpop.permute.xlu1 %1791  ;;  %1749 = vrot.lane.b32.xlu0 %v5869_v59, %s4865_s28 }
 0x587   : > { %10049 = vst [vmem:[#allocation72_spill] sm:$0xff] %v5923_v40 }
 0x588   : > { %1811 = vrot.lane.b32.xlu1 %v5863_v22, %s4866_s15  ;;  %v5929_v4 = vpop.permute.xlu0 %1793 }
 0x589   : > { %10050 = vst [vmem:[#allocation73_spill] sm:$0xff] %v5929_v4 }
 0x58a   : > { %v5931_v46 = vpop.permute.xlu1 %1871  ;;  %1813 = vrot.lane.b32.xlu0 %v5869_v59, %s4866_s15 }
 0x58b   : > { %10051 = vst [vmem:[#allocation74_spill] sm:$0xff] %v5931_v46 }
 0x58c   : > { %1795 = vrot.lane.b32.xlu1 %v5847_v29, %s4866_s15  ;;  %v5937_v5 = vpop.permute.xlu0 %1873 }
 0x58d   : > { %10052 = vst [vmem:[#allocation75_spill] sm:$0xff] %v5937_v5 }
 0x58e   : > { %v5939_v57 = vpop.permute.xlu1 %1855  ;;  %1797 = vrot.lane.b32.xlu0 %v5855_v1, %s4866_s15 }
 0x58f   : > { %10053 = vst [vmem:[#allocation76_spill] sm:$0xff] %v5939_v57 }
 0x590   : > { %1875 = vrot.lane.b32.xlu1 %v5863_v22, %s4867_s12  ;;  %v5945_v35 = vpop.permute.xlu0 %1857 }
 0x591   : > { %10054 = vst [vmem:[#allocation77_spill] sm:$0xff] %v5945_v35 }
 0x592   : > { %v5947_v33 = vpop.permute.xlu1 %1935  ;;  %1877 = vrot.lane.b32.xlu0 %v5869_v59, %s4867_s12 }
 0x593   : > { %10055 = vst [vmem:[#allocation78_spill] sm:$0xff] %v5947_v33  ;;  %v1460_v33 = vadd.f32 %v5701_v54, %v5827_v26 }
 0x594   : > { %1859 = vrot.lane.b32.xlu1 %v5847_v29, %s4867_s12  ;;  %v5953_v53 = vpop.permute.xlu0 %1937 }
 0x595   : > { %10056 = vst [vmem:[#allocation79_spill] sm:$0xff] %v5953_v53  ;;  %v1464_v53 = vadd.f32 %v5711_v52, %v5831_v31  ;;  %v5975_v5 = vmax.f32 %v1460_v33, 0.0  ;;  %v1517_v52 = vadd.f32 %v5713_v48, %v5831_v31 }
 0x596   : > { %v5955_v8 = vpop.permute.xlu1 %1919  ;;  %1861 = vrot.lane.b32.xlu0 %v5855_v1, %s4867_s12 }
 0x597   : > { %10057 = vst [vmem:[#allocation80_spill] sm:$0xff] %v5955_v8  ;;  %v6008_v31 = vmax.f32 %v1517_v52, 0.0 }
 0x598   : > { %1939 = vrot.lane.b32.xlu1 %v5863_v22, %s4868_s22  ;;  %v5961_v57 = vpop.permute.xlu0 %1921 }
 0x599   : > { %10058 = vst [vmem:[#allocation81_spill] sm:$0xff] %v5961_v57  ;;  %v1513_v57 = vadd.f32 %v5703_v32, %v5827_v26  ;;  %10062 = vst [vmem:[#allocation85_spill] sm:$0xff] %v6008_v31 }
 0x59a   : > { %v5965_v46 = vpop.permute.xlu1 %1999  ;;  %1941 = vrot.lane.b32.xlu0 %v5869_v59, %s4868_s22 }
 0x59b   : > { %10059 = vst [vmem:[#allocation82_spill] sm:$0xff] %v5965_v46  ;;  %v5984_v46 = vmax.f32 %v1464_v53, 0.0  ;;  %v5993_v26 = vmax.f32 %v1513_v57, 0.0 }
 0x59c   : > { %1923 = vrot.lane.b32.xlu1 %v5847_v29, %s4868_s22  ;;  %v5973_v8 = vpop.permute.xlu0 %2001 }
 0x59d   : > { %10060 = vst [vmem:[#allocation83_spill] sm:$0xff] %v5973_v8  ;;  %10061 = vst [vmem:[#allocation84_spill] sm:$0xff] %v5993_v26 }
 0x59e   : > { %v1544_v35 = vpop.permute.xlu1 %1543  ;;  %1925 = vrot.lane.b32.xlu0 %v5855_v1, %s4868_s22 }
 0x59f   : > { %v1575_v54 = vsel %vm987_vm12, %v5839_v55, %v1544_v35 }
 0x5a0   : > { %1547 = vrot.lane.b32.xlu1 %v5975_v5, %s4864_s23  ;;  %v1546_v33 = vpop.permute.xlu0 %1545  ;;  %v1584_v8 = vmul.f32 %v1575_v54, %v5434_v2  ;;  %v1571_v54 = vsel %vm987_vm12, %v1544_v35, %v5853_v63 }
 0x5a1   : > { %v1576_v32 = vsel %vm987_vm12, %v5845_v21, %v1546_v33  ;;  %v1572_v53 = vsel %vm987_vm12, %v1546_v33, %v5861_v15 }
 0x5a2   : > { %v1588_v25 = vmul.f32 %v1576_v32, %v5434_v2  ;;  %v1560_v47 = vpop.permute.xlu1 %1559  ;;  %1549 = vrot.lane.b32.xlu0 %v5984_v46, %s4864_s23  ;;  %v1589_v0 = vmul.f32 %v1572_v53, %v5457_v43 }
 0x5a3   : > { %v1567_v48 = vsel %vm987_vm12, %v5853_v63, %v1560_v47  ;;  %v1579_v57 = vsel %vm987_vm12, %v1560_v47, %v5839_v55 }
 0x5a4   : > { %1563 = vrot.lane.b32.xlu1 %v5993_v26, %s4864_s23  ;;  %v1562_v33 = vpop.permute.xlu0 %1561  ;;  %v2048_v32 = vpack.c.bf16 %v1588_v25, %v1584_v8  ;;  %v1583_v4 = vmul.f32 %v1579_v57, %v5451_v39  ;;  %v1586_v55 = vmul.f32 %v1567_v48, %v5461_v44  ;;  %v1585_v25 = vmul.f32 %v1571_v54, %v5457_v43 }
 0x5a5   : > { %v1568_v30 = vsel %vm987_vm12, %v5861_v15, %v1562_v33  ;;  %v1580_v47 = vsel %vm987_vm12, %v1562_v33, %v5845_v21 }
 0x5a6   : > { %v1587_v35 = vmul.f32 %v1580_v47, %v5451_v39  ;;  %v1590_v63 = vmul.f32 %v1568_v30, %v5461_v44  ;;  %v6026_v52 = vpop.permute.xlu1 %1607  ;;  %1565 = vrot.lane.b32.xlu0 %v6008_v31, %s4864_s23  ;;  %2188 = vmatprep.subr.bf16.mxu1 %v2048_v32  ;;  %v2049_v53 = vpack.c.bf16 %v1589_v0, %v1585_v25 }
 0x5a8   : > { %v2047_v8 = vpack.c.bf16 %v1587_v35, %v1583_v4  ;;  %1611 = vrot.lane.b32.xlu1 %v5975_v5, %s4863_s24  ;;  %v6033_v15 = vpop.permute.xlu0 %1609  ;;  %v2050_v21 = vpack.c.bf16 %v1590_v63, %v1586_v55 }
 0x5aa   : > { %v6035_v48 = vpop.permute.xlu1 %1623  ;;  %1613 = vrot.lane.b32.xlu0 %v5984_v46, %s4863_s24  ;;  %2189 = vmatpush1.bf16.msra.mxu1 %v2047_v8 }
 0x5ab   : > { %2294 = vmatprep.subr.bf16.mxu0 %v2050_v21 }
 0x5ac   : > { %2295 = vmatpush1.bf16.msra.mxu0 %v2049_v53  ;;  %1627 = vrot.lane.b32.xlu1 %v5993_v26, %s4863_s24  ;;  %v6041_v30 = vpop.permute.xlu0 %1625 }
 0x5ae   : > { %v6043_v4 = vpop.permute.xlu1 %1671  ;;  %1629 = vrot.lane.b32.xlu0 %v6008_v31, %s4863_s24 }
 0x5b0   : > { %1675 = vrot.lane.b32.xlu1 %v5975_v5, %s4862_s21  ;;  %v6049_v0 = vpop.permute.xlu0 %1673 }
 0x5b2   : > { %v6051_v57 = vpop.permute.xlu1 %1687  ;;  %1677 = vrot.lane.b32.xlu0 %v5984_v46, %s4862_s21 }
 0x5b4   : > { %1691 = vrot.lane.b32.xlu1 %v5993_v26, %s4862_s21  ;;  %v6057_v54 = vpop.permute.xlu0 %1689 }
 0x5b6   : > { %v6059_v33 = vpop.permute.xlu1 %1735  ;;  %1693 = vrot.lane.b32.xlu0 %v6008_v31, %s4862_s21 }
 0x5b8   : > { %1739 = vrot.lane.b32.xlu1 %v5975_v5, %s4865_s28  ;;  %v6065_v32 = vpop.permute.xlu0 %1737 }
 0x5ba   : > { %v6067_v47 = vpop.permute.xlu1 %1751  ;;  %1741 = vrot.lane.b32.xlu0 %v5984_v46, %s4865_s28 }
 0x5bb   : > { %10063 = vst [vmem:[#allocation86_spill] sm:$0xff] %v6067_v47 }
 0x5bc   : > { %1755 = vrot.lane.b32.xlu1 %v5993_v26, %s4865_s28  ;;  %v6073_v55 = vpop.permute.xlu0 %1753 }
 0x5bd   : > { %10064 = vst [vmem:[#allocation87_spill] sm:$0xff] %v6073_v55 }
 0x5be   : > { %v6075_v35 = vpop.permute.xlu1 %1799  ;;  %1757 = vrot.lane.b32.xlu0 %v6008_v31, %s4865_s28 }
 0x5bf   : > { %10065 = vst [vmem:[#allocation88_spill] sm:$0xff] %v6075_v35 }
 0x5c0   : > { %1983 = vrot.lane.b32.xlu1 %v5683_v10, %s4870_s16  ;;  %v6081_v63 = vpop.permute.xlu0 %1801 }
 0x5c1   : > { %10066 = vst [vmem:[#allocation89_spill] sm:$0xff] %v6081_v63 }
 0x5c2   : > { %v6083_v25 = vpop.permute.xlu1 %1815  ;;  %1985 = vrot.lane.b32.xlu0 %v5687_v56, %s4870_s16 }
 0x5c3   : > { %10067 = vst [vmem:[#allocation90_spill] sm:$0xff] %v6083_v25 }
 0x5c4   : > { %1803 = vrot.lane.b32.xlu1 %v5975_v5, %s4866_s15  ;;  %v6089_v8 = vpop.permute.xlu0 %1817 }
 0x5c5   : > { %10068 = vst [vmem:[#allocation91_spill] sm:$0xff] %v6089_v8 }
 0x5c6   : > { %v6091_v21 = vpop.permute.xlu1 %1863  ;;  %2009 = vrot.lane.b32.xlu0 %v5779_v20, %s4870_s16 }
 0x5c7   : > { %10069 = vst [vmem:[#allocation92_spill] sm:$0xff] %v6091_v21 }
 0x5c8   : > { %1819 = vrot.lane.b32.xlu1 %v5993_v26, %s4866_s15  ;;  %v6097_v53 = vpop.permute.xlu0 %1865 }
 0x5c9   : > { %10070 = vst [vmem:[#allocation93_spill] sm:$0xff] %v6097_v53 }
 0x5ca   : > { %v6099_v63 = vpop.permute.xlu1 %1879  ;;  %1805 = vrot.lane.b32.xlu0 %v5984_v46, %s4866_s15 }
 0x5cb   : > { %10071 = vst [vmem:[#allocation94_spill] sm:$0xff] %v6099_v63 }
 0x5cc   : > { %1867 = vrot.lane.b32.xlu1 %v5975_v5, %s4867_s12  ;;  %v6105_v25 = vpop.permute.xlu0 %1881 }
 0x5cd   : > { %10072 = vst [vmem:[#allocation95_spill] sm:$0xff] %v6105_v25 }
 0x5ce   : > { %v6107_v8 = vpop.permute.xlu1 %1927  ;;  %1821 = vrot.lane.b32.xlu0 %v6008_v31, %s4866_s15 }
 0x5cf   : > { %10073 = vst [vmem:[#allocation96_spill] sm:$0xff] %v6107_v8  ;;  %v4605_v8 = vld [vmem:[%s9641_s7 + $0x4] ss:$12 sps:$4 sm:$0xff]  }
 0x5d0   : > { %1883 = vrot.lane.b32.xlu1 %v5993_v26, %s4867_s12  ;;  %v6113_v21 = vpop.permute.xlu0 %1929  ;;  %2220 = vmatprep.mubr.bf16.mxu1 %v4605_v8 }
 0x5d1   : > { %10074 = vst [vmem:[#allocation97_spill] sm:$0xff] %v6113_v21  ;;  %2326 = vmatprep.mubr.bf16.mxu0 %v4605_v8 }
 0x5d2   : > { %v6115_v53 = vpop.permute.xlu1 %1943  ;;  %1869 = vrot.lane.b32.xlu0 %v5984_v46, %s4867_s12 }
 0x5d3   : > { %10075 = vst [vmem:[#allocation98_spill] sm:$0xff] %v6115_v53 }
 0x5d4   : > { %1931 = vrot.lane.b32.xlu1 %v5975_v5, %s4868_s22  ;;  %v6121_v63 = vpop.permute.xlu0 %1945 }
 0x5d5   : > { %10076 = vst [vmem:[#allocation99_spill] sm:$0xff] %v6121_v63 }
 0x5d6   : > { %v6123_v25 = vpop.permute.xlu1 %1991  ;;  %1885 = vrot.lane.b32.xlu0 %v6008_v31, %s4867_s12 }
 0x5d7   : > { %10077 = vst [vmem:[#allocation100_spill] sm:$0xff] %v6123_v25 }
 0x5d8   : > { %1947 = vrot.lane.b32.xlu1 %v5993_v26, %s4868_s22  ;;  %v6132_v53 = vpop.permute.xlu0 %1993 }
 0x5d9   : > { %10078 = vst [vmem:[#allocation101_spill] sm:$0xff] %v6132_v53 }
 0x5da   : > { %v6134_v21 = vpop.permute.xlu1 %1539  ;;  %1933 = vrot.lane.b32.xlu0 %v5984_v46, %s4868_s22 }
 0x5dc   : > { %2007 = vrot.lane.b32.xlu1 %v5775_v11, %s4870_s16  ;;  %v6140_v25 = vpop.permute.xlu0 %1541 }
 0x5de   : > { %v6142_v63 = vpop.permute.xlu1 %1555  ;;  %1949 = vrot.lane.b32.xlu0 %v6008_v31, %s4868_s22 }
 0x5e0   : > { %1995 = vrot.lane.b32.xlu1 %v5975_v5, %s4870_s16  ;;  %v6148_v53 = vpop.permute.xlu0 %1557 }
 0x5e2   : > { %v6150_v8 = vpop.permute.xlu1 %1603  ;;  %2005 = vrot.lane.b32.xlu0 %v5869_v59, %s4870_s16 }
 0x5e3   : > { %10079 = vst [vmem:[#allocation102_spill] sm:$0xff] %v6150_v8 }
 0x5e4   : > { %2003 = vrot.lane.b32.xlu1 %v5863_v22, %s4870_s16  ;;  %v6156_v23 = vpop.permute.xlu0 %1605 }
 0x5e5   : > { %10080 = vst [vmem:[#allocation103_spill] sm:$0xff] %v6156_v23 }
 0x5e6   : > { %v6158_v40 = vpop.permute.xlu1 %1619  ;;  %1989 = vrot.lane.b32.xlu0 %v5855_v1, %s4870_s16 }
 0x5e7   : > { %10081 = vst [vmem:[#allocation104_spill] sm:$0xff] %v6158_v40 }
 0x5e8   : > { %1987 = vrot.lane.b32.xlu1 %v5847_v29, %s4870_s16  ;;  %v6164_v35 = vpop.permute.xlu0 %1621 }
 0x5e9   : > { %10082 = vst [vmem:[#allocation105_spill] sm:$0xff] %v6164_v35 }
 0x5ea   : > { %v6166_v36 = vpop.permute.xlu1 %1667  ;;  %1997 = vrot.lane.b32.xlu0 %v5984_v46, %s4870_s16 }
 0x5eb   : > { %10083 = vst [vmem:[#allocation106_spill] sm:$0xff] %v6166_v36  ;;  %v2128_v36 = vld [vmem:[%s9642_s8 + $0x8] sm:$0xff] }
 0x5ec   : > { %2011 = vrot.lane.b32.xlu1 %v5993_v26, %s4870_s16  ;;  %v6172_v55 = vpop.permute.xlu0 %1669  ;;  %v10102_v26 = vld [vmem:[#allocation48_spill] sm:$0xff] }
 0x5ed   : > { %10084 = vst [vmem:[#allocation107_spill] sm:$0xff] %v6172_v55  ;;  %v2129_v55 = vld [vmem:[%s9642_s8 + $0x10] sm:$0xff] }
 0x5ee   : > { %v6177_v40 = vpop.permute.xlu1 %1683  ;;  %2013 = vrot.lane.b32.xlu0 %v6008_v31, %s4870_s16 }
 0x5ef   : > { %10085 = vst [vmem:[#allocation108_spill] sm:$0xff] %v6177_v40  ;;  %v2130_v40 = vld [vmem:[%s9642_s8 + $0x18] sm:$0xff] }
 0x5f0   : > { %2133 = vperm.xlu1 %4600, %v2127_v37   ;;  %v6184_v28 = vpop.permute.xlu0 %1685 }
 0x5f1   : > { %10086 = vst [vmem:[#allocation109_spill] sm:$0xff] %v6184_v28 }
 0x5f2   : > { %v6189_v35 = vpop.permute.xlu1 %1731  ;;  %2138 = vperm.xlu0 %4599, %v2128_v36  }
 0x5f3   : > { %10087 = vst [vmem:[#allocation110_spill] sm:$0xff] %v6189_v35 }
 0x5f4   : > { %2143 = vperm.xlu1 %4600, %v2129_v55   ;;  %v6194_v23 = vpop.permute.xlu0 %1733 }
 0x5f6   : > { %v6196_v47 = vpop.permute.xlu1 %1747  ;;  %2148 = vperm.xlu0 %4599, %v2130_v40   ;;  %v1636_v40 = vsel %vm1020_vm11, %v6033_v15, %v5881_v58 }
 0x5f7   : > { %10088 = vst [vmem:[#allocation111_spill] sm:$0xff] %v6196_v47 }
 0x5f8   : > { %v6198_v37 = vpop.permute.xlu0 %1749 }
 0x5fa   : > { %v6200_v28 = vpop.permute.xlu1 %1811 }
 0x5fb   : > { %10089 = vst [vmem:[#allocation112_spill] sm:$0xff] %v6200_v28 }
 0x5fc   : > { %v6202_v8 = vpop.permute.xlu0 %1813 }
 0x5fd   : > { %10090 = vst [vmem:[#allocation113_spill] sm:$0xff] %v6202_v8 }
 0x5fe   : > { %v6204_v44 = vpop.permute.xlu1 %1795 }
 0x5ff   : > { %10091 = vst [vmem:[#allocation114_spill] sm:$0xff] %v6204_v44  ;;  %v1635_v44 = vsel %vm1020_vm11, %v6026_v52, %v5875_v24 }
 0x600   : > { %v6206_v35 = vpop.permute.xlu0 %1797 }
 0x601   : > { %10092 = vst [vmem:[#allocation115_spill] sm:$0xff] %v6206_v35  ;;  %v6239_v35 = vmul.f32 %v1636_v40, %v5429_v27  ;;  %v6256_v40 = vmul.f32 %v1635_v44, %v5429_v27  ;;  %v1643_v44 = vsel %vm1020_vm11, %v6035_v48, %v5865_v16 }
 0x602   : > { %v6208_v36 = vpop.permute.xlu1 %1875 }
 0x603   : > { %10093 = vst [vmem:[#allocation116_spill] sm:$0xff] %v6208_v36 }
 0x604   : > { %v6210_v39 = vpop.permute.xlu0 %1877 }
 0x605   : > { %10094 = vst [vmem:[#allocation117_spill] sm:$0xff] %v6210_v39  ;;  %v1644_v39 = vsel %vm1020_vm11, %v6041_v30, %v5873_v9 }
 0x606   : > { %v6212_v55 = vpop.permute.xlu1 %1859 }
 0x607   : > { %10095 = vst [vmem:[#allocation118_spill] sm:$0xff] %v6212_v55  ;;  %v1639_v55 = vsel %vm1020_vm11, %v5865_v16, %v6026_v52  ;;  %v1699_v16 = vsel %vm1053_vm10, %v6043_v4, %v5891_v13  ;;  %v1703_v52 = vsel %vm1053_vm10, %v5883_v12, %v6043_v4  ;;  %v1695_v4 = vsel %vm1053_vm10, %v5891_v13, %v6051_v57 }
 0x608   : > { %v6218_v47 = vpop.permute.xlu0 %1861  ;;  %v6269_v28 = vmul.f32 %v1639_v55, %v5373_v51  ;;  %v6291_v55 = vmul.f32 %v1644_v39, %v5406_v62  ;;  %v1708_v39 = vsel %vm1053_vm10, %v6057_v54, %v5889_v3 }
 0x609   : > { %10096 = vst [vmem:[#allocation119_spill] sm:$0xff] %v6218_v47  ;;  %v1640_v47 = vsel %vm1020_vm11, %v5873_v9, %v6033_v15  ;;  %v1700_v9 = vsel %vm1053_vm10, %v6049_v0, %v5897_v6 }
 0x60a   : > { %v6224_v8 = vpop.permute.xlu1 %1939  ;;  %v6272_v15 = vmul.f32 %v1640_v47, %v5373_v51  ;;  %v1631_v47 = vsel %vm1020_vm11, %v5875_v24, %v6035_v48  ;;  %v6314_v48 = vmul.f32 %v1643_v44, %v5406_v62  ;;  %v1696_v44 = vsel %vm1053_vm10, %v5897_v6, %v6057_v54 }
 0x60b   : > { %10097 = vst [vmem:[#allocation120_spill] sm:$0xff] %v6224_v8  ;;  %v1632_v8 = vsel %vm1020_vm11, %v5881_v58, %v6041_v30  ;;  %v1704_v58 = vsel %vm1053_vm10, %v5889_v3, %v6049_v0  ;;  %v6328_v3 = vmul.f32 %v1631_v47, %v5412_v17 }
 0x60c   : > { %v6247_v36 = vpop.permute.xlu0 %1941  ;;  %v6298_v0 = vmul.f32 %v1632_v8, %v5412_v17  ;;  %v6317_v8 = vmul.f32 %v1704_v58, %v5367_v49  ;;  %v2056_v13 = vpack.c.bf16 %v6272_v15, %v6269_v28  ;;  %v6356_v28 = vmul.f32 %v1695_v4, %v5402_v61 }
 0x60d   : > { %10098 = vst [vmem:[#allocation121_spill] sm:$0xff] %v6247_v36  ;;  %v6305_v36 = vmul.f32 %v1700_v9, %v5416_v19  ;;  %v1707_v9 = vsel %vm1053_vm10, %v6051_v57, %v5883_v12  ;;  %v6342_v12 = vmul.f32 %v1703_v52, %v5367_v49  ;;  %v6345_v57 = vmul.f32 %v1708_v39, %v5398_v60 }
 0x60e   : > { %v6282_v30 = vpop.permute.xlu1 %1923  ;;  %v6353_v54 = vmul.f32 %v1707_v9, %v5398_v60  ;;  %v2058_v52 = vpack.c.bf16 %v6298_v0, %v6328_v3  ;;  %v1767_v39 = vsel %vm1086_vm14, %v5899_v7, %v6059_v33  ;;  %v1764_v0 = vsel %vm1086_vm14, %v6065_v32, %v5913_v14 }
 0x60f   : > { %10099 = vst [vmem:[#allocation122_spill] sm:$0xff] %v6282_v30  ;;  %v1763_v4 = vsel %vm1086_vm14, %v6059_v33, %v5907_v42  ;;  %v6404_v29 = vmul.f32 %v1764_v0, %v5517_v38 }
 0x610   : > { %v6311_v24 = vpop.permute.xlu0 %1925  ;;  %v6418_v0 = vmul.f32 %v1763_v4, %v5517_v38 }
 0x611   : > { %10100 = vst [vmem:[#allocation123_spill] sm:$0xff] %v6311_v24  ;;  %v6331_v24 = vmul.f32 %v1699_v16, %v5416_v19  ;;  %v6361_v16 = vmul.f32 %v1696_v44, %v5402_v61 }
 0x612   : > { %v1548_v58 = vpop.permute.xlu1 %1547 }
 0x613   : > { %v1577_v47 = vsel %vm987_vm12, %v6134_v21, %v1548_v58  ;;  %v1573_v33 = vsel %vm987_vm12, %v1548_v58, %v6142_v63 }
 0x614   : > { %v1550_v15 = vpop.permute.xlu0 %1549  ;;  %v1592_v3 = vmul.f32 %v1577_v47, %v5434_v2 }
 0x615   : > { %v1578_v9 = vsel %vm987_vm12, %v6140_v25, %v1550_v15  ;;  %v1574_v44 = vsel %vm987_vm12, %v1550_v15, %v6148_v53  ;;  %v6394_v15 = vmul.f32 %v1767_v39, %v5468_v50 }
 0x616   : > { %v1596_v6 = vmul.f32 %v1578_v9, %v5434_v2  ;;  %v1564_v30 = vpop.permute.xlu1 %1563  ;;  %v1768_v9 = vsel %vm1086_vm14, %v5905_v41, %v6065_v32  ;;  %v1597_v1 = vmul.f32 %v1574_v44, %v5457_v43  ;;  %v10101_v32 = vld [vmem:[#allocation46_spill] sm:$0xff] }
 0x617   : > { %v1569_v59 = vsel %vm987_vm12, %v6142_v63, %v1564_v30  ;;  %v1581_v47 = vsel %vm987_vm12, %v1564_v30, %v6134_v21 }
 0x618   : > { %v1566_v22 = vpop.permute.xlu0 %1565  ;;  %v2052_v2 = vpack.c.bf16 %v1596_v6, %v1592_v3  ;;  %v1591_v39 = vmul.f32 %v1581_v47, %v10101_v32  ;;  %v1594_v31 = vmul.f32 %v1569_v59, %v10102_v26  ;;  %v1593_v3 = vmul.f32 %v1573_v33, %v5457_v43  ;;  %v10106_v43 = vld [vmem:[#allocation105_spill] sm:$0xff] }
 0x619   : > { %v1570_v21 = vsel %vm987_vm12, %v6148_v53, %v1566_v22  ;;  %v1582_v30 = vsel %vm987_vm12, %v1566_v22, %v6140_v25  ;;  %v10103_v53 = vld [vmem:[#allocation102_spill] sm:$0xff]  ;;  %v6427_v59 = vmul.f32 %v1768_v9, %v5468_v50  ;;  %v2073_v33 = vpack.c.bf16 %v6404_v29, %v6418_v0  ;;  %v10138_v0 = vld [vmem:[#allocation95_spill] sm:$0xff] }
 0x61a   : > { %v1595_v63 = vmul.f32 %v1582_v30, %v10101_v32  ;;  %v1598_v58 = vmul.f32 %v1570_v21, %v10102_v26  ;;  %v1612_v6 = vpop.permute.xlu1 %1611  ;;  %2190 = vmatprep.subr.bf16.mxu1 %v2052_v2  ;;  %v10104_v25 = vld [vmem:[#allocation86_spill] sm:$0xff]  ;;  %v2053_v22 = vpack.c.bf16 %v1597_v1, %v1593_v3  ;;  %v10105_v26 = vld [vmem:[#allocation103_spill] sm:$0xff] }
 0x61b   : > { %v1641_v44 = vsel %vm1020_vm11, %v10103_v53, %v1612_v6  ;;  %v1771_v2 = vsel %vm1086_vm14, %v10104_v25, %v5899_v7  ;;  %v1759_v30 = vsel %vm1086_vm14, %v5907_v42, %v10104_v25  ;;  %v10108_v42 = vld [vmem:[#allocation104_spill] sm:$0xff] }
 0x61c   : > { %v2051_v47 = vpack.c.bf16 %v1595_v63, %v1591_v39  ;;  %v1614_v4 = vpop.permute.xlu0 %1613  ;;  %v2054_v21 = vpack.c.bf16 %v1598_v58, %v1594_v31  ;;  %v1656_v32 = vmul.f32 %v1641_v44, %v5373_v51  ;;  %v10107_v63 = vld [vmem:[#allocation50_spill] sm:$0xff]  ;;  %v10109_v44 = vld [vmem:[#allocation52_spill] sm:$0xff] }
 0x61d   : > { %v1642_v9 = vsel %vm1020_vm11, %v10105_v26, %v1614_v4  ;;  %v1638_v7 = vsel %vm1020_vm11, %v1614_v4, %v10106_v43  ;;  %v6448_v58 = vmul.f32 %v1771_v2, %v10107_v63  ;;  %v6457_v25 = vmul.f32 %v1759_v30, %v10109_v44  ;;  %v10110_v4 = vld [vmem:[#allocation87_spill] sm:$0xff] }
 0x61e   : > { %v1660_v31 = vmul.f32 %v1642_v9, %v5373_v51  ;;  %v1628_v39 = vpop.permute.xlu1 %1627  ;;  %2191 = vmatpush1.bf16.msra.mxu1 %v2051_v47  ;;  %2296 = vmatprep.subr.bf16.mxu0 %v2054_v21  ;;  %v1772_v47 = vsel %vm1086_vm14, %v10110_v4, %v5905_v41  ;;  %v1637_v2 = vsel %vm1020_vm11, %v1612_v6, %v10108_v42 }
 0x61f   : > { %v1633_v1 = vsel %vm1020_vm11, %v10108_v42, %v1628_v39  ;;  %v1645_v3 = vsel %vm1020_vm11, %v1628_v39, %v10103_v53  ;;  %2192 = vmatprep.subr.bf16.mxu1 %v2056_v13  ;;  %2297 = vmatpush1.bf16.msra.mxu0 %v2053_v22  ;;  %v1760_v13 = vsel %vm1086_vm14, %v5913_v14, %v10110_v4  ;;  %v10112_v39 = vld [vmem:[#allocation106_spill] sm:$0xff] }
 0x620   : > { %2298 = vmatprep.subr.bf16.mxu0 %v2058_v52  ;;  %v1630_v21 = vpop.permute.xlu0 %1629  ;;  %v2060_v9 = vpack.c.bf16 %v1660_v31, %v1656_v32  ;;  %v1661_v53 = vmul.f32 %v1638_v7, %v5429_v27  ;;  %v1655_v6 = vmul.f32 %v1645_v3, %v5406_v62  ;;  %v1658_v52 = vmul.f32 %v1633_v1, %v5412_v17 }
 0x621   : > { %v1634_v22 = vsel %vm1020_vm11, %v10106_v43, %v1630_v21  ;;  %v1646_v41 = vsel %vm1020_vm11, %v1630_v21, %v10105_v26  ;;  %v10111_v14 = vpack.c.bf16 %v6291_v55, %v6314_v48  ;;  %v6485_v7 = vmul.f32 %v1772_v47, %v10107_v63  ;;  %v10114_v47 = vld [vmem:[#allocation70_spill] sm:$0xff] }
 0x622   : > { %v1659_v32 = vmul.f32 %v1646_v41, %v5406_v62  ;;  %v1662_v30 = vmul.f32 %v1634_v22, %v5412_v17  ;;  %v1676_v31 = vpop.permute.xlu1 %1675  ;;  %v1657_v43 = vmul.f32 %v1637_v2, %v5429_v27  ;;  %v10113_v42 = vpack.c.bf16 %v6239_v35, %v6256_v40  ;;  %v10115_v2 = vld [vmem:[#allocation88_spill] sm:$0xff]  ;;  %v10117_v22 = vld [vmem:[#allocation107_spill] sm:$0xff] }
 0x623   : > { %2193 = vmatpush1.bf16.msra.mxu1 %v10111_v14  ;;  %v1705_v26 = vsel %vm1053_vm10, %v10112_v39, %v1676_v31  ;;  %v6495_v1 = vmul.f32 %v1760_v13, %v10109_v44  ;;  %v2072_v4 = vpack.c.bf16 %v6427_v59, %v6394_v15  ;;  %v1827_v21 = vsel %vm1119_vm15, %v10115_v2, %v10114_v47 }
 0x624   : > { %2194 = vmatprep.subr.bf16.mxu1 %v2060_v9  ;;  %2299 = vmatpush1.bf16.msra.mxu0 %v10113_v42  ;;  %v2059_v3 = vpack.c.bf16 %v1659_v32, %v1655_v6  ;;  %v1678_v55 = vpop.permute.xlu0 %1677  ;;  %v2062_v48 = vpack.c.bf16 %v1662_v30, %v1658_v52  ;;  %v10116_v9 = vld [vmem:[#allocation72_spill] sm:$0xff]  ;;  %v2061_v40 = vpack.c.bf16 %v1661_v53, %v1657_v43  ;;  %v10118_v6 = vld [vmem:[#allocation109_spill] sm:$0xff] }
 0x625   : > { %v1831_v35 = vsel %vm1119_vm15, %v10116_v9, %v10115_v2  ;;  %v1706_v13 = vsel %vm1053_vm10, %v10117_v22, %v1678_v55  ;;  %v1720_v41 = vmul.f32 %v1705_v26, %v5367_v49  ;;  %v1702_v15 = vsel %vm1053_vm10, %v1678_v55, %v10118_v6  ;;  %v10119_v30 = vld [vmem:[#allocation108_spill] sm:$0xff]  ;;  %v10121_v26 = vld [vmem:[#allocation54_spill] sm:$0xff]  ;;  %v10123_v55 = vld [vmem:[#allocation89_spill] sm:$0xff] }
 0x626   : > { %v1724_v59 = vmul.f32 %v1706_v13, %v5367_v49  ;;  %v1692_v52 = vpop.permute.xlu1 %1691  ;;  %2300 = vmatprep.subr.bf16.mxu0 %v2062_v48  ;;  %v2071_v32 = vpack.c.bf16 %v6485_v7, %v6448_v58  ;;  %v10120_v43 = vpack.c.bf16 %v6317_v8, %v6342_v12  ;;  %v6527_v42 = vmul.f32 %v1831_v35, %v10121_v26  ;;  %v10125_v12 = vld [vmem:[#allocation73_spill] sm:$0xff] }
 0x627   : > { %2195 = vmatpush1.bf16.msra.mxu1 %v2059_v3  ;;  %v1697_v53 = vsel %vm1053_vm10, %v10119_v30, %v1692_v52  ;;  %v1709_v14 = vsel %vm1053_vm10, %v1692_v52, %v10112_v39  ;;  %v10122_v3 = vld [vmem:[#allocation71_spill] sm:$0xff]  ;;  %v1701_v7 = vsel %vm1053_vm10, %v1676_v31, %v10119_v30  ;;  %v10124_v39 = vpack.c.bf16 %v6361_v16, %v6356_v28  ;;  %v10127_v52 = vld [vmem:[#allocation49_spill] sm:$0xff] }
 0x628   : > { %2196 = vmatprep.subr.bf16.mxu1 %v10120_v43  ;;  %2301 = vmatpush1.bf16.msra.mxu0 %v2061_v40  ;;  %v1828_v58 = vsel %vm1119_vm15, %v10123_v55, %v10122_v3  ;;  %v1694_v48 = vpop.permute.xlu0 %1693  ;;  %v2068_v8 = vpack.c.bf16 %v1724_v59, %v1720_v41  ;;  %v1832_v2 = vsel %vm1119_vm15, %v10125_v12, %v10123_v55  ;;  %v10128_v43 = vld [vmem:[#allocation110_spill] sm:$0xff] }
 0x629   : > { %2302 = vmatprep.subr.bf16.mxu0 %v10124_v39  ;;  %v1725_v35 = vmul.f32 %v1702_v15, %v5416_v19  ;;  %v1698_v40 = vsel %vm1053_vm10, %v10118_v6, %v1694_v48  ;;  %v1710_v31 = vsel %vm1053_vm10, %v1694_v48, %v10117_v22  ;;  %v1719_v28 = vmul.f32 %v1709_v14, %v5398_v60  ;;  %v10130_v39 = vld [vmem:[#allocation90_spill] sm:$0xff] }
 0x62a   : > { %v1722_v16 = vmul.f32 %v1697_v53, %v5402_v61  ;;  %v1723_v13 = vmul.f32 %v1710_v31, %v5398_v60  ;;  %v1726_v41 = vmul.f32 %v1698_v40, %v5402_v61  ;;  %v1740_v59 = vpop.permute.xlu1 %1739  ;;  %v10126_v15 = vpack.c.bf16 %v6345_v57, %v6353_v54 }
 0x62b   : > { %v6558_v30 = vmul.f32 %v1827_v21, %v10127_v52  ;;  %v1721_v6 = vmul.f32 %v1701_v7, %v5416_v19  ;;  %v1769_v22 = vsel %vm1086_vm14, %v10128_v43, %v1740_v59  ;;  %v10129_v53 = vpack.c.bf16 %v6305_v36, %v6331_v24 }
 0x62c   : > { %2197 = vmatpush1.bf16.msra.mxu1 %v10126_v15  ;;  %v6568_v14 = vmul.f32 %v1832_v2, %v10121_v26  ;;  %v2067_v55 = vpack.c.bf16 %v1723_v13, %v1719_v28  ;;  %v1742_v57 = vpop.permute.xlu0 %1741  ;;  %v2070_v54 = vpack.c.bf16 %v1726_v41, %v1722_v16  ;;  %v2074_v21 = vpack.c.bf16 %v6495_v1, %v6457_v25  ;;  %v10132_v28 = vld [vmem:[#allocation91_spill] sm:$0xff] }
 0x62d   : > { %2198 = vmatprep.subr.bf16.mxu1 %v2068_v8  ;;  %2303 = vmatpush1.bf16.msra.mxu0 %v10129_v53  ;;  %v6573_v7 = vmul.f32 %v1828_v58, %v10127_v52  ;;  %v1823_v48 = vsel %vm1119_vm15, %v10114_v47, %v10130_v39  ;;  %v2069_v8 = vpack.c.bf16 %v1725_v35, %v1721_v6  ;;  %v10131_v58 = vld [vmem:[#allocation111_spill] sm:$0xff] }
 0x62e   : > { %v1770_v36 = vsel %vm1086_vm14, %v6194_v23, %v1742_v57  ;;  %v1784_v24 = vmul.f32 %v1769_v22, %v5468_v50  ;;  %v1766_v2 = vsel %vm1086_vm14, %v1742_v57, %v6198_v37  ;;  %v1756_v1 = vpop.permute.xlu1 %1755  ;;  %2304 = vmatprep.subr.bf16.mxu0 %v2070_v54  ;;  %v1835_v47 = vsel %vm1119_vm15, %v10130_v39, %v10116_v9  ;;  %v10134_v54 = vld [vmem:[#allocation55_spill] sm:$0xff]  ;;  %v10135_v39 = vld [vmem:[#allocation93_spill] sm:$0xff] }
 0x62f   : > { %v1788_v25 = vmul.f32 %v1770_v36, %v5468_v50  ;;  %v1761_v35 = vsel %vm1086_vm14, %v10131_v58, %v1756_v1  ;;  %v1773_v40 = vsel %vm1086_vm14, %v1756_v1, %v10128_v43  ;;  %v1824_v16 = vsel %vm1119_vm15, %v10122_v3, %v10132_v28 }
 0x630   : > { %2199 = vmatpush1.bf16.msra.mxu1 %v2067_v55  ;;  %v1765_v9 = vsel %vm1086_vm14, %v1740_v59, %v10131_v58  ;;  %v1758_v13 = vpop.permute.xlu0 %1757  ;;  %v1789_v15 = vmul.f32 %v1766_v2, %v5517_v38  ;;  %v1783_v59 = vmul.f32 %v1773_v40, %v10107_v63  ;;  %v1786_v43 = vmul.f32 %v1761_v35, %v10109_v44  ;;  %v10140_v58 = vld [vmem:[#allocation92_spill] sm:$0xff] }
 0x631   : > { %2200 = vmatprep.subr.bf16.mxu1 %v2072_v4  ;;  %2305 = vmatpush1.bf16.msra.mxu0 %v2069_v8  ;;  %v2076_v41 = vpack.c.bf16 %v1788_v25, %v1784_v24  ;;  %v1836_v4 = vsel %vm1119_vm15, %v10132_v28, %v10125_v12  ;;  %v1762_v6 = vsel %vm1086_vm14, %v6198_v37, %v1758_v13  ;;  %v10133_v12 = vld [vmem:[#allocation53_spill] sm:$0xff]  ;;  %v10137_v25 = vld [vmem:[#allocation75_spill] sm:$0xff]  ;;  %v10141_v40 = vld [vmem:[#allocation76_spill] sm:$0xff] }
 0x632   : > { %2306 = vmatprep.subr.bf16.mxu0 %v2074_v21  ;;  %v1774_v3 = vsel %vm1086_vm14, %v1758_v13, %v6194_v23  ;;  %v1790_v53 = vmul.f32 %v1762_v6, %v10109_v44  ;;  %v6621_v55 = vpop.permute.xlu1 %1983  ;;  %v6624_v57 = vmul.f32 %v1823_v48, %v10133_v12  ;;  %v6627_v37 = vmul.f32 %v1835_v47, %v10134_v54  ;;  %v10136_v8 = vld [vmem:[#allocation77_spill] sm:$0xff]  ;;  %v10139_v47 = vld [vmem:[#allocation74_spill] sm:$0xff]  ;;  %v10142_v13 = vld [vmem:[#allocation59_spill] sm:$0xff] }
 0x633   : > { %v1787_v22 = vmul.f32 %v1774_v3, %v10107_v63  ;;  %v1785_v21 = vmul.f32 %v1765_v9, %v5517_v38  ;;  %v6634_v23 = vmul.f32 %v1824_v16, %v10133_v12  ;;  %v1846_v2 = vmul.f32 %v1836_v4, %v10134_v54  ;;  %v10143_v4 = vld [vmem:[#allocation94_spill] sm:$0xff] }
 0x634   : > { %2201 = vmatpush1.bf16.msra.mxu1 %v2071_v32  ;;  %v1896_v32 = vsel %vm1152_vm0, %v10136_v8, %v10135_v39  ;;  %v6640_v36 = vpop.permute.xlu0 %1985  ;;  %v2078_v24 = vpack.c.bf16 %v1790_v53, %v1786_v43  ;;  %v1892_v29 = vsel %vm1152_vm0, %v10135_v39, %v10137_v25  ;;  %v1891_v35 = vsel %vm1152_vm0, %v10140_v58, %v10139_v47  ;;  %v10149_v39 = vld [vmem:[#allocation80_spill] sm:$0xff] }
 0x635   : > { %2202 = vmatprep.subr.bf16.mxu1 %v2076_v41  ;;  %2307 = vmatpush1.bf16.msra.mxu0 %v2073_v33  ;;  %v2075_v48 = vpack.c.bf16 %v1787_v22, %v1783_v59  ;;  %v1888_v33 = vsel %vm1152_vm0, %v10137_v25, %v10138_v0  ;;  %v2077_v1 = vpack.c.bf16 %v1789_v15, %v1785_v21  ;;  %v10146_v22 = vld [vmem:[#allocation58_spill] sm:$0xff] }
 0x636   : > { %v1895_v28 = vsel %vm1152_vm0, %v10141_v40, %v10140_v58  ;;  %v1804_v16 = vpop.permute.xlu1 %1803  ;;  %2308 = vmatprep.subr.bf16.mxu0 %v2078_v24  ;;  %v2088_v9 = vpack.c.bf16 %v6573_v7, %v6558_v30  ;;  %v6662_v41 = vmul.f32 %v1896_v32, %v10142_v13  ;;  %v1887_v15 = vsel %vm1152_vm0, %v10139_v47, %v10143_v4  ;;  %v10145_v7 = vld [vmem:[#allocation56_spill] sm:$0xff]  ;;  %v10151_v24 = vld [vmem:[#allocation78_spill] sm:$0xff] }
 0x637   : > { %v1900_v6 = vsel %vm1152_vm0, %v10138_v0, %v10136_v8  ;;  %v10144_v3 = vpack.c.bf16 %v5771_v34, %v5767_v18  ;;  %v2089_v30 = vpack.c.bf16 %v6634_v23, %v6624_v57  ;;  %v6678_v59 = vmul.f32 %v1892_v29, %v10145_v7  ;;  %v10148_v23 = vld [vmem:[#allocation96_spill] sm:$0xff]  ;;  %v10152_v29 = vld [vmem:[#allocation97_spill] sm:$0xff] }
 0x638   : > { %2203 = vmatpush1.bf16.msra.mxu1 %v2075_v48  ;;  %v1899_v43 = vsel %vm1152_vm0, %v10143_v4, %v10141_v40  ;;  %v6685_v53 = vmul.f32 %v1888_v33, %v10146_v22  ;;  %v10147_v21 = vpack.c.bf16 %v5779_v20, %v5775_v11  ;;  %v6690_v18 = vpop.permute.xlu0 %2009  ;;  %v6693_v34 = vmul.f32 %v1895_v28, %v10142_v13  ;;  %v10150_v11 = vld [vmem:[#allocation60_spill] sm:$0xff]  ;;  %v10153_v0 = vld [vmem:[#allocation81_spill] sm:$0xff] }
 0x639   : > { %2204 = vmatprep.subr.bf16.mxu1 %v10144_v3  ;;  %2309 = vmatpush1.bf16.msra.mxu0 %v2077_v1  ;;  %v6696_v57 = vmul.f32 %v1891_v35, %v10145_v7  ;;  %v1959_v8 = vsel %vm1185_vm1, %v10149_v39, %v10148_v23  ;;  %v2090_v32 = vpack.c.bf16 %v1846_v2, %v6627_v37  ;;  %v10155_v58 = vld [vmem:[#allocation112_spill] sm:$0xff]  ;;  %v10157_v28 = vld [vmem:[#allocation65_spill] sm:$0xff]  ;;  %v10161_v3 = vld [vmem:[#allocation79_spill] sm:$0xff] }
 0x63a   : > { %2310 = vmatprep.subr.bf16.mxu0 %v10147_v21  ;;  %v6704_v48 = vmul.f32 %v1887_v15, %v10146_v22  ;;  %v6707_v20 = vmul.f32 %v1900_v6, %v10150_v11  ;;  %v1955_v25 = vsel %vm1185_vm1, %v10148_v23, %v10151_v24  ;;  %v1960_v33 = vsel %vm1185_vm1, %v10153_v0, %v10152_v29  ;;  %v1820_v1 = vpop.permute.xlu1 %1819  ;;  %v10158_v4 = vld [vmem:[#allocation64_spill] sm:$0xff]  ;;  %v10162_v21 = vld [vmem:[#allocation85_spill] sm:$0xff] }
 0x63b   : > { %v10154_v37 = vpack.c.bf16 %v5687_v56, %v5683_v10  ;;  %v6723_v47 = vmul.f32 %v1899_v43, %v10150_v11  ;;  %v1829_v35 = vsel %vm1119_vm15, %v1804_v16, %v10155_v58  ;;  %v10156_v40 = vpack.c.bf16 %v5984_v46, %v5975_v5  ;;  %v10160_v56 = vld [vmem:[#allocation62_spill] sm:$0xff]  ;;  %v10163_v23 = vld [vmem:[#allocation84_spill] sm:$0xff]  ;;  %v10167_v10 = vld [vmem:[#allocation115_spill] sm:$0xff] }
 0x63c   : > { %v10159_v15 = vpack.c.bf16 %v10157_v28, %v10158_v4  ;;  %v6737_v6 = vmul.f32 %v1959_v8, %v10160_v56  ;;  %v1956_v43 = vsel %vm1185_vm1, %v10152_v29, %v10161_v3  ;;  %v1806_v46 = vpop.permute.xlu0 %1805  ;;  %v2096_v5 = vpack.c.bf16 %v6678_v59, %v6696_v57  ;;  %v10166_v8 = vld [vmem:[#allocation113_spill] sm:$0xff] }
 0x63d   : > { %2205 = vmatpush1.bf16.msra.mxu1 %v10154_v37  ;;  %v10164_v37 = vpack.c.bf16 %v10162_v21, %v10163_v23  ;;  %v6752_v4 = vmul.f32 %v1960_v33, %v10160_v56  ;;  %v1834_v29 = vsel %vm1119_vm15, %v10167_v10, %v1806_v46  ;;  %v10168_v21 = vld [vmem:[#allocation114_spill] sm:$0xff]  ;;  %v1848_v59 = vmul.f32 %v1829_v35, %v10127_v52  ;;  %v10172_v35 = vld [vmem:[#allocation69_spill] sm:$0xff] }
 0x63e   : > { %2206 = vmatprep.subr.bf16.mxu1 %v10156_v40  ;;  %2311 = vmatpush1.bf16.msra.mxu0 %v10159_v15  ;;  %v10165_v40 = vld [vmem:[#allocation57_spill] sm:$0xff]  ;;  %v1830_v15 = vsel %vm1119_vm15, %v1806_v46, %v10166_v8  ;;  %v1833_v23 = vsel %vm1119_vm15, %v10168_v21, %v1804_v16  ;;  %v10170_v33 = vld [vmem:[#allocation66_spill] sm:$0xff]  ;;  %v2098_v31 = vpack.c.bf16 %v6707_v20, %v6723_v47 }
 0x63f   : > { %2312 = vmatprep.subr.bf16.mxu0 %v10164_v37  ;;  %v6749_v28 = vmul.f32 %v1955_v25, %v10165_v40  ;;  %v1852_v57 = vmul.f32 %v1830_v15, %v10127_v52  ;;  %v1868_v25 = vpop.permute.xlu1 %1867  ;;  %v10169_v37 = vld [vmem:[#allocation67_spill] sm:$0xff]  ;;  %v6771_v44 = vmul.f32 %v1956_v43, %v10165_v40  ;;  %v1825_v46 = vsel %vm1119_vm15, %v10155_v58, %v1820_v1  ;;  %v10173_v15 = vld [vmem:[#allocation68_spill] sm:$0xff] }
 0x640   : > { %v10171_v2 = vpack.c.bf16 %v10169_v37, %v10170_v33  ;;  %v1837_v16 = vsel %vm1119_vm15, %v1820_v1, %v10168_v21  ;;  %v10174_v52 = vpack.c.bf16 %v10172_v35, %v10173_v15  ;;  %v1851_v58 = vmul.f32 %v1834_v29, %v10121_v26  ;;  %v1822_v43 = vpop.permute.xlu0 %1821  ;;  %v10177_v37 = vld [vmem:[#allocation61_spill] sm:$0xff] }
 0x641   : > { %v2092_v1 = vpack.c.bf16 %v1852_v57, %v1848_v59  ;;  %v1826_v21 = vsel %vm1119_vm15, %v10166_v8, %v1822_v43  ;;  %v1850_v29 = vmul.f32 %v1837_v16, %v10134_v54  ;;  %v10178_v8 = vld [vmem:[#allocation99_spill] sm:$0xff] }
 0x642   : > { %2207 = vmatpush1.bf16.msra.mxu1 %v10171_v2  ;;  %2313 = vmatpush1.bf16.msra.mxu0 %v10174_v52  ;;  %v10175_v2 = vld [vmem:[#allocation98_spill] sm:$0xff]  ;;  %v1847_v52 = vmul.f32 %v1833_v23, %v10121_v26  ;;  %v10176_v23 = vpack.c.bf16 %v6568_v14, %v6527_v42  ;;  %v1964_v42 = vsel %vm1185_vm1, %v10178_v8, %v10153_v0 }
 0x643   : > { %2208 = vmatprep.subr.bf16.mxu1 %v2088_v9  ;;  %v1951_v20 = vsel %vm1185_vm1, %v10151_v24, %v10175_v2  ;;  %v1963_v47 = vsel %vm1185_vm1, %v10175_v2, %v10149_v39  ;;  %2314 = vmatprep.subr.bf16.mxu0 %v2090_v32  ;;  %v2103_v9 = vpack.c.bf16 %v6752_v4, %v6737_v6  ;;  %v1884_v57 = vpop.permute.xlu1 %1883 }
 0x644   : > { %v1838_v24 = vsel %vm1119_vm15, %v1822_v43, %v10167_v10  ;;  %v1849_v39 = vmul.f32 %v1825_v46, %v10133_v12  ;;  %v1853_v32 = vmul.f32 %v1826_v21, %v10133_v12  ;;  %v6808_v33 = vmul.f32 %v1951_v20, %v10177_v37  ;;  %v10179_v46 = vld [vmem:[#allocation116_spill] sm:$0xff]  ;;  %v1870_v15 = vpop.permute.xlu0 %1869  ;;  %v10180_v20 = vld [vmem:[#allocation63_spill] sm:$0xff]  ;;  %v10181_v21 = vld [vmem:[#allocation118_spill] sm:$0xff] }
 0x645   : > { %v1854_v59 = vmul.f32 %v1838_v24, %v10134_v54  ;;  %v1952_v10 = vsel %vm1185_vm1, %v10161_v3, %v10178_v8  ;;  %v1893_v16 = vsel %vm1152_vm0, %v1868_v25, %v10179_v46  ;;  %v2091_v14 = vpack.c.bf16 %v1851_v58, %v1847_v52  ;;  %v10182_v24 = vld [vmem:[#allocation117_spill] sm:$0xff] }
 0x646   : > { %2209 = vmatpush1.bf16.msra.mxu1 %v10176_v23  ;;  %2315 = vmatpush1.bf16.msra.mxu0 %v2089_v30  ;;  %v2093_v35 = vpack.c.bf16 %v1853_v32, %v1849_v39  ;;  %v1970_v43 = vmul.f32 %v1963_v47, %v10180_v20  ;;  %v1897_v3 = vsel %vm1152_vm0, %v10181_v21, %v1868_v25  ;;  %v10183_v30 = vld [vmem:[#allocation119_spill] sm:$0xff]  ;;  %v10184_v32 = vld [vmem:[#allocation82_spill] sm:$0xff] }
 0x647   : > { %2210 = vmatprep.subr.bf16.mxu1 %v2092_v1  ;;  %v2094_v2 = vpack.c.bf16 %v1854_v59, %v1850_v29  ;;  %v1894_v1 = vsel %vm1152_vm0, %v1870_v15, %v10182_v24  ;;  %v1898_v23 = vsel %vm1152_vm0, %v10183_v30, %v1870_v15  ;;  %v1912_v0 = vmul.f32 %v1893_v16, %v10145_v7  ;;  %v1932_v52 = vpop.permute.xlu1 %1931  ;;  %v10185_v59 = vld [vmem:[#allocation100_spill] sm:$0xff] }
 0x648   : > { %v1889_v58 = vsel %vm1152_vm0, %v10179_v46, %v1884_v57  ;;  %v1916_v47 = vmul.f32 %v1894_v1, %v10145_v7  ;;  %v6837_v25 = vmul.f32 %v1952_v10, %v10177_v37  ;;  %v1974_v39 = vmul.f32 %v1964_v42, %v10180_v20  ;;  %v1886_v16 = vpop.permute.xlu0 %1885  ;;  %v6872_v1 = vld [vmem:[%s9638_s4 + $0x28] ss:$0 sm:$0xff] }
 0x649   : > { %2316 = vmatprep.subr.bf16.mxu0 %v2094_v2  ;;  %v1901_v29 = vsel %vm1152_vm0, %v1884_v57, %v10181_v21  ;;  %v2019_v8 = vsel %vm1218_vm2, %v10185_v59, %v10184_v32  ;;  %v1915_v46 = vmul.f32 %v1898_v23, %v10142_v13  ;;  %v2104_v10 = vpack.c.bf16 %v6771_v44, %v6749_v28 }
 0x64a   : > { %2211 = vmatpush1.bf16.msra.mxu1 %v2091_v14  ;;  %2317 = vmatpush1.bf16.msra.mxu0 %v2093_v35  ;;  %v2100_v14 = vpack.c.bf16 %v1916_v47, %v1912_v0  ;;  %v1911_v42 = vmul.f32 %v1897_v3, %v10142_v13  ;;  %v1913_v15 = vmul.f32 %v1889_v58, %v10146_v22  ;;  %v10189_v58 = vld [vmem:[#allocation83_spill] sm:$0xff]  ;;  %v10190_v47 = vld [vmem:[#allocation101_spill] sm:$0xff] }
 0x64b   : > { %2212 = vmatprep.subr.bf16.mxu1 %v2096_v5  ;;  %2318 = vmatprep.subr.bf16.mxu0 %v2098_v31  ;;  %v1890_v5 = vsel %vm1152_vm0, %v10182_v24, %v1886_v16  ;;  %v1902_v57 = vsel %vm1152_vm0, %v1886_v16, %v10183_v30  ;;  %v1914_v35 = vmul.f32 %v1901_v29, %v10150_v11  ;;  %v10186_v31 = vld [vmem:[#allocation120_spill] sm:$0xff]  ;;  %v1948_v21 = vpop.permute.xlu1 %1947  ;;  %v10191_v16 = vld [vmem:[#allocation122_spill] sm:$0xff] }
 0x64c   : > { %v1957_v2 = vsel %vm1185_vm1, %v1932_v52, %v10186_v31  ;;  %v1917_v44 = vmul.f32 %v1890_v5, %v10146_v22  ;;  %v1918_v28 = vmul.f32 %v1902_v57, %v10150_v11  ;;  %v10187_v3 = vpack.c.bf16 %v6662_v41, %v6693_v34 }
 0x64d   : > { %v2105_v24 = vpack.c.bf16 %v6837_v25, %v6808_v33  ;;  %v2032_v30 = vmul.f32 %v6872_v1, %v2019_v8  ;;  %v10188_v23 = vpack.c.bf16 %v6685_v53, %v6704_v48  ;;  %v2106_v0 = vpack.c.bf16 %v1974_v39, %v1970_v43  ;;  %v1934_v25 = vpop.permute.xlu0 %1933  ;;  %v10193_v48 = vld [vmem:[#allocation123_spill] sm:$0xff] }
 0x64e   : > { %2213 = vmatpush1.bf16.msra.mxu1 %v10187_v3  ;;  %v2020_v41 = vsel %vm1218_vm2, %v10190_v47, %v10189_v58  ;;  %v2099_v34 = vpack.c.bf16 %v1915_v46, %v1911_v42  ;;  %v2101_v33 = vpack.c.bf16 %v1917_v44, %v1913_v15  ;;  %v2102_v29 = vpack.c.bf16 %v1918_v28, %v1914_v35 }
 0x64f   : > { %2214 = vmatprep.subr.bf16.mxu1 %v2100_v14  ;;  %2319 = vmatpush1.bf16.msra.mxu0 %v10188_v23  ;;  %v1961_v5 = vsel %vm1185_vm1, %v10191_v16, %v1932_v52  ;;  %v1976_v8 = vmul.f32 %v1957_v2, %v10165_v40  ;;  %v10192_v14 = vld [vmem:[#allocation121_spill] sm:$0xff]  ;;  %v1962_v43 = vsel %vm1185_vm1, %v10193_v48, %v1934_v25  ;;  %v2008_v42 = vpop.permute.xlu1 %2007 }
 0x650   : > { %v1958_v53 = vsel %vm1185_vm1, %v1934_v25, %v10192_v14  ;;  %v1953_v39 = vsel %vm1185_vm1, %v10186_v31, %v1948_v21  ;;  %v1965_v46 = vsel %vm1185_vm1, %v1948_v21, %v10191_v16  ;;  %2320 = vmatprep.subr.bf16.mxu0 %v2102_v29  ;;  %v2036_v15 = vmul.f32 %v6872_v1, %v2020_v41  ;;  %v4621_v29 = vld [vmem:[%s9638_s4 + $0x20] ss:$0 sm:$0xff] }
 0x651   : > { %v1980_v52 = vmul.f32 %v1958_v53, %v10165_v40  ;;  %v2024_v57 = vsel %vm1218_vm2, %v6640_v36, %v10190_v47  ;;  %v2027_v35 = vsel %vm1218_vm2, %v2008_v42, %v6621_v55  ;;  %v2028_v31 = vsel %vm1218_vm2, %v6690_v18, %v6640_v36  ;;  %v1950_v28 = vpop.permute.xlu0 %1949 }
 0x652   : > { %2215 = vmatpush1.bf16.msra.mxu1 %v2099_v34  ;;  %v1975_v2 = vmul.f32 %v1961_v5, %v10160_v56  ;;  %v1979_v44 = vmul.f32 %v1962_v43, %v10160_v56  ;;  %v1977_v3 = vmul.f32 %v1953_v39, %v10177_v37  ;;  %v1978_v23 = vmul.f32 %v1965_v46, %v10180_v20  ;;  %v4606_v39 = vld [vmem:[%s9641_s7 + $0x1c] ss:$12 sps:$4 sm:$0xff]  }
 0x653   : > { %2216 = vmatprep.subr.bf16.mxu1 %v2104_v10  ;;  %2321 = vmatpush1.bf16.msra.mxu0 %v2101_v33  ;;  %v2108_v21 = vpack.c.bf16 %v1980_v52, %v1976_v8  ;;  %v1954_v10 = vsel %vm1185_vm1, %v10192_v14, %v1950_v28  ;;  %v1966_v47 = vsel %vm1185_vm1, %v1950_v28, %v10193_v48  ;;  %v1996_v25 = vpop.permute.xlu1 %1995  ;;  %v4603_v48 = vld [vmem:[%s9641_s7] ss:$12 sps:$4 sm:$0xff]  }
 0x654   : > { %2322 = vmatprep.subr.bf16.mxu0 %v2106_v0  ;;  %v2015_v36 = vsel %vm1218_vm2, %v10184_v32, %v2008_v42  ;;  %v6927_v0 = vld [vmem:[%s9638_s4 + $0x38] ss:$0 sm:$0xff]  ;;  %v1981_v34 = vmul.f32 %v1954_v10, %v10177_v37  ;;  %v1982_v33 = vmul.f32 %v1966_v47, %v10180_v20  ;;  %v2023_v32 = vsel %vm1218_vm2, %v6621_v55, %v10185_v59  ;;  %v4622_v55 = vld [vmem:[%s9638_s4 + $0x30] ss:$0 sm:$0xff] }
 0x655   : > { %v2034_v41 = vmul.f32 %v6927_v0, %v2027_v35  ;;  %v2035_v16 = vmul.f32 %v4621_v29, %v2024_v57  ;;  %v2016_v5 = vsel %vm1218_vm2, %v10189_v58, %v6690_v18  ;;  %v2038_v6 = vmul.f32 %v6927_v0, %v2028_v31  ;;  %v2006_v8 = vpop.permute.xlu0 %2005 }
 0x656   : > { %2217 = vmatpush1.bf16.msra.mxu1 %v2103_v9  ;;  %v2107_v4 = vpack.c.bf16 %v1979_v44, %v1975_v2  ;;  %v2109_v9 = vpack.c.bf16 %v1981_v34, %v1977_v3  ;;  %v2110_v14 = vpack.c.bf16 %v1982_v33, %v1978_v23  ;;  %v2033_v59 = vmul.f32 %v4622_v55, %v2015_v36  ;;  %v4608_v44 = vld [vmem:[%s9641_s7 + $0x18] ss:$12 sps:$4 sm:$0xff]  }
 0x657   : > { %2218 = vmatprep.subr.bf16.mxu1 %v2108_v21  ;;  %2323 = vmatpush1.bf16.msra.mxu0 %v2105_v24  ;;  %v2112_v53 = vpack.c.bf16 %v2036_v15, %v2032_v30  ;;  %v2031_v43 = vmul.f32 %v4621_v29, %v2023_v32  ;;  %v2004_v18 = vpop.permute.xlu1 %2003  ;;  %v2114_v24 = vpack.c.bf16 %v2038_v6, %v2034_v41  ;;  %v10194_v6 = vmov 0  }
 0x658   : > { %2324 = vmatprep.subr.bf16.mxu0 %v2110_v14  ;;  %v2037_v58 = vmul.f32 %v4622_v55, %v2016_v5  ;;  %v2021_v15 = vsel %vm1218_vm2, %v1996_v25, %v2004_v18 }
 0x659   : > { %v2111_v46 = vpack.c.bf16 %v2035_v16, %v2031_v43  ;;  %v1990_v52 = vpop.permute.xlu0 %1989  ;;  %v2040_v28 = vmul.f32 %v6872_v1, %v2021_v15 }
 0x65a   : > { %2219 = vmatpush1.bf16.msra.mxu1 %v2107_v4  ;;  %v2113_v30 = vpack.c.bf16 %v2037_v58, %v2033_v59 }
 0x65b   : > { %2241 = vmatprep.subr.bf16.mxu1 %v2112_v53  ;;  %2325 = vmatpush1.bf16.msra.mxu0 %v2109_v9  ;;  %v1988_v42 = vpop.permute.xlu1 %1987 }
 0x65c   : > { %2347 = vmatprep.subr.bf16.mxu0 %v2114_v24  ;;  %v2025_v57 = vsel %vm1218_vm2, %v1988_v42, %v1996_v25 }
 0x65d   : > { %2221 = vmatmul.mubr.bf16.vlgmr.msra.gmra.mrb[12].mxu1 %v4603_v48  ;;  %v1998_v35 = vpop.permute.xlu0 %1997  ;;  %v2039_v21 = vmul.f32 %v4621_v29, %v2025_v57 }
 0x65e   : > { %2242 = vmatpush1.bf16.msra.mxu1 %v2111_v46  ;;  %2327 = vmatmul.mubr.bf16.vlgmr.msra.gmra.mrb[12].mxu0 %v4603_v48  ;;  %v2022_v31 = vsel %vm1218_vm2, %v1998_v35, %v2006_v8  ;;  %v2026_v2 = vsel %vm1218_vm2, %v1990_v52, %v1998_v35 }
 0x65f   : > { %2348 = vmatpush1.bf16.msra.mxu0 %v2113_v30  ;;  %2230 = vmatprep.mubr.bf16.mxu1 %v4606_v39  ;;  %v2043_v3 = vmul.f32 %v4621_v29, %v2026_v2  ;;  %v2044_v23 = vmul.f32 %v6872_v1, %v2022_v31  ;;  %v2012_v10 = vpop.permute.xlu1 %2011 }
 0x660   : > { %2336 = vmatprep.mubr.bf16.mxu0 %v4606_v39  ;;  %v2017_v47 = vsel %vm1218_vm2, %v2004_v18, %v2012_v10  ;;  %v2029_v36 = vsel %vm1218_vm2, %v2012_v10, %v1988_v42 }
 0x661   : > { %v2115_v41 = vpack.c.bf16 %v2043_v3, %v2039_v21  ;;  %v2014_v34 = vpop.permute.xlu0 %2013  ;;  %v2116_v33 = vpack.c.bf16 %v2044_v23, %v2040_v28  ;;  %v2041_v25 = vmul.f32 %v4622_v55, %v2017_v47  ;;  %v2042_v1 = vmul.f32 %v6927_v0, %v2029_v36 }
 0x662   : > { %v2018_v32 = vsel %vm1218_vm2, %v2006_v8, %v2014_v34  ;;  %v2030_v16 = vsel %vm1218_vm2, %v2014_v34, %v1990_v52  ;;  %v4609_v8 = vld [vmem:[%s9641_s7 + $0x8] ss:$12 sps:$4 sm:$0xff]  }
 0x663   : > { %v2045_v29 = vmul.f32 %v4622_v55, %v2018_v32  ;;  %v2046_v5 = vmul.f32 %v6927_v0, %v2030_v16  ;;  %2243 = vmatprep.subr.bf16.mxu1 %v2116_v33  ;;  %v4610_v0 = vld [vmem:[%s9641_s7 + $0x20] ss:$12 sps:$4 sm:$0xff]  }
 0x664   : > { %2244 = vmatpush1.bf16.msra.mxu1 %v2115_v41 }
 0x665   : > { %2231 = vmatmul.mubr.bf16.gmra.mrb[16].mxu1 %v4608_v44  ;;  %v2117_v4 = vpack.c.bf16 %v2045_v29, %v2041_v25  ;;  %v2118_v9 = vpack.c.bf16 %v2046_v5, %v2042_v1 }
 0x666   : > { %2337 = vmatmul.mubr.bf16.gmra.mrb[16].mxu0 %v4608_v44  ;;  %2273 = vmatprep.mubr.bf16.mxu1 %v10194_v6 }
 0x667   : > { %2379 = vmatprep.mubr.bf16.mxu0 %v10194_v6  ;;  %2349 = vmatprep.subr.bf16.mxu0 %v2118_v9 }
 0x668   : > { %2350 = vmatpush1.bf16.msra.mxu0 %v2117_v4 }
 0x66d   : > { %4366 = vmatmul.mubr.msk.bf16.vlgmr.msra.gmra.mrb[12].mxu1 %vm2181_vm4, %v4609_v8 }
 0x66e   : > { %4368 = vmatmul.mubr.msk.bf16.vlgmr.msra.gmra.mrb[12].mxu0 %vm2181_vm4, %v4609_v8  ;;  %2283 = vmatprep.mubr.bf16.mxu1 %v10194_v6 }
 0x66f   : > { %2389 = vmatprep.mubr.bf16.mxu0 %v10194_v6  ;;  %v2134_v14 = vpop.permute.xlu1 %2133 }
 0x671   : > { %v2139_v55 = vpop.permute.xlu0 %2138 }
 0x673   : > { %v7137_v5 = vpop.permute.xlu1 %2143 }
 0x675   : > { %4367 = vmatmul.mubr.msk.bf16.gmra.mrb[16].mxu1 %vm2181_vm4, %v4610_v0  ;;  %v7141_v4 = vpop.permute.xlu0 %2148 }
 0x676   : > { %4369 = vmatmul.mubr.msk.bf16.gmra.mrb[16].mxu0 %vm2181_vm4, %v4610_v0 }
 0x740   : > { %v2275_v59 = vpop.f32.mrb[12].mxu1 }
 0x741   : > { %v4425_v53 = vadd.f32 %v2275_v59, %v2134_v14  ;;  %v2277_v48 = vpop.f32.mrb[13].mxu1  ;;  %v2381_v43 = vpop.f32.mrb[12].mxu0 }
 0x742   : > { %v4433_v18 = vadd.f32 %v2381_v43, %v2134_v14  ;;  %v2279_v24 = vpop.f32.mrb[14].mxu1  ;;  %v2383_v58 = vpop.f32.mrb[13].mxu0  ;;  %v4426_v41 = vadd.f32 %v2277_v48, %v2134_v14 }
 0x743   : > { %v6993_v39 = vmax.f32 %v4425_v53, 0.0  ;;  %v4427_v46 = vadd.f32 %v2279_v24, %v2139_v55  ;;  %v2281_v52 = vpop.f32.mrb[15].mxu1  ;;  %v2385_v30 = vpop.f32.mrb[14].mxu0  ;;  %v4434_v25 = vadd.f32 %v2383_v58, %v2134_v14 }
 0x744   : > { %v4435_v42 = vadd.f32 %v2385_v30, %v2139_v55  ;;  %v2387_v15 = vpop.f32.mrb[15].mxu0  ;;  %v6999_v35 = vmax.f32 %v4433_v18, 0.0  ;;  %v4428_v34 = vadd.f32 %v2281_v52, %v2139_v55  ;;  %v7077_v33 = vmax.f32 %v4426_v41, 0.0 }
 0x745   : > { %v6995_v57 = vmax.f32 %v4427_v46, 0.0  ;;  %2416 = vrot.lane.b32.xlu1 %v6993_v39, %s4864_s23  ;;  %v4436_v16 = vadd.f32 %v2387_v15, %v2139_v55  ;;  %v7085_v1 = vmax.f32 %v4434_v25, 0.0 }
 0x746   : > { %10195 = vst [vmem:[#allocation102_spill] sm:$0xff] %v6999_v35  ;;  %v7001_v31 = vmax.f32 %v4435_v42, 0.0  ;;  %v7081_v32 = vmax.f32 %v4428_v34, 0.0 }
 0x747   : > { %2418 = vrot.lane.b32.xlu0 %v6995_v57, %s4864_s23  ;;  %v7089_v29 = vmax.f32 %v4436_v16, 0.0 }
 0x748   : > { %10196 = vst [vmem:[#allocation86_spill] sm:$0xff] %v7001_v31  ;;  %v7005_v2 = vpop.f32.mrb[16].mxu1 }
 0x749   : > { %v7009_v28 = vpop.f32.mrb[17].mxu1  ;;  %v7011_v21 = vpop.f32.mrb[16].mxu0  ;;  %2432 = vrot.lane.b32.xlu1 %v6999_v35, %s4864_s23  ;;  %v4429_v9 = vadd.f32 %v7005_v2, %v7137_v5 }
 0x74a   : > { %v7015_v3 = vpop.f32.mrb[18].mxu1  ;;  %v7017_v23 = vpop.f32.mrb[17].mxu0  ;;  %v4437_v59 = vadd.f32 %v7011_v21, %v7137_v5 }
 0x74b   : > { %v7019_v10 = vpop.f32.mrb[19].mxu1  ;;  %v7021_v47 = vpop.f32.mrb[18].mxu0  ;;  %2434 = vrot.lane.b32.xlu0 %v7001_v31, %s4864_s23  ;;  %v4431_v0 = vadd.f32 %v7015_v3, %v7141_v4  ;;  %v7157_v55 = vmax.f32 %v4429_v9, 0.0 }
 0x74c   : > { %v7025_v36 = vpop.f32.mrb[19].mxu0  ;;  %v4439_v43 = vadd.f32 %v7021_v47, %v7141_v4  ;;  %v7173_v24 = vmax.f32 %v4437_v59, 0.0 }
 0x74d   : > { %2480 = vrot.lane.b32.xlu1 %v6993_v39, %s4863_s24  ;;  %10197 = vst [vmem:[#allocation103_spill] sm:$0xff] %v7157_v55  ;;  %v7165_v48 = vmax.f32 %v4431_v0, 0.0 }
 0x74e   : > { %10199 = vst [vmem:[#allocation104_spill] sm:$0xff] %v7173_v24  ;;  %v7179_v46 = vmax.f32 %v4439_v43, 0.0 }
 0x74f   : > { %2482 = vrot.lane.b32.xlu0 %v6995_v57, %s4863_s24  ;;  %10198 = vst [vmem:[#allocation105_spill] sm:$0xff] %v7165_v48 }
 0x750   : > { %10200 = vst [vmem:[#allocation87_spill] sm:$0xff] %v7179_v46 }
 0x751   : > { %2496 = vrot.lane.b32.xlu1 %v6999_v35, %s4863_s24 }
 0x753   : > { %2498 = vrot.lane.b32.xlu0 %v7001_v31, %s4863_s24 }
 0x755   : > { %2544 = vrot.lane.b32.xlu1 %v6993_v39, %s4862_s21 }
 0x757   : > { %2546 = vrot.lane.b32.xlu0 %v6995_v57, %s4862_s21 }
 0x759   : > { %2560 = vrot.lane.b32.xlu1 %v6999_v35, %s4862_s21 }
 0x75b   : > { %2562 = vrot.lane.b32.xlu0 %v7001_v31, %s4862_s21 }
 0x75d   : > { %2608 = vrot.lane.b32.xlu1 %v6993_v39, %s4865_s28 }
 0x75f   : > { %2610 = vrot.lane.b32.xlu0 %v6995_v57, %s4865_s28 }
 0x761   : > { %2624 = vrot.lane.b32.xlu1 %v6999_v35, %s4865_s28 }
 0x763   : > { %2626 = vrot.lane.b32.xlu0 %v7001_v31, %s4865_s28 }
 0x765   : > { %2688 = vrot.lane.b32.xlu1 %v6999_v35, %s4866_s15 }
 0x767   : > { %2690 = vrot.lane.b32.xlu0 %v7001_v31, %s4866_s15 }
 0x769   : > { %2672 = vrot.lane.b32.xlu1 %v6993_v39, %s4866_s15 }
 0x76b   : > { %2674 = vrot.lane.b32.xlu0 %v6995_v57, %s4866_s15 }
 0x76d   : > { %2752 = vrot.lane.b32.xlu1 %v6999_v35, %s4867_s12 }
 0x76f   : > { %2754 = vrot.lane.b32.xlu0 %v7001_v31, %s4867_s12 }
 0x771   : > { %2736 = vrot.lane.b32.xlu1 %v6993_v39, %s4867_s12 }
 0x773   : > { %2738 = vrot.lane.b32.xlu0 %v6995_v57, %s4867_s12 }
 0x775   : > { %2816 = vrot.lane.b32.xlu1 %v6999_v35, %s4868_s22 }
 0x777   : > { %2818 = vrot.lane.b32.xlu0 %v7001_v31, %s4868_s22 }
 0x779   : > { %2800 = vrot.lane.b32.xlu1 %v6993_v39, %s4868_s22 }
 0x77b   : > { %2802 = vrot.lane.b32.xlu0 %v6995_v57, %s4868_s22 }
 0x77d   : > { %2880 = vrot.lane.b32.xlu1 %v6999_v35, %s4870_s16 }
 0x77f   : > { %2882 = vrot.lane.b32.xlu0 %v7001_v31, %s4870_s16  ;;  %v4430_v31 = vadd.f32 %v7009_v28, %v7137_v5 }
 0x781   : > { %2424 = vrot.lane.b32.xlu1 %v7077_v33, %s4864_s23 }
 0x783   : > { %2426 = vrot.lane.b32.xlu0 %v7081_v32, %s4864_s23 }
 0x785   : > { %2440 = vrot.lane.b32.xlu1 %v7085_v1, %s4864_s23 }
 0x787   : > { %2442 = vrot.lane.b32.xlu0 %v7089_v29, %s4864_s23 }
 0x789   : > { %2488 = vrot.lane.b32.xlu1 %v7077_v33, %s4863_s24 }
 0x78b   : > { %2490 = vrot.lane.b32.xlu0 %v7081_v32, %s4863_s24 }
 0x78d   : > { %2504 = vrot.lane.b32.xlu1 %v7085_v1, %s4863_s24 }
 0x78f   : > { %2506 = vrot.lane.b32.xlu0 %v7089_v29, %s4863_s24 }
 0x791   : > { %2552 = vrot.lane.b32.xlu1 %v7077_v33, %s4862_s21 }
 0x793   : > { %2554 = vrot.lane.b32.xlu0 %v7081_v32, %s4862_s21 }
 0x795   : > { %2568 = vrot.lane.b32.xlu1 %v7085_v1, %s4862_s21 }
 0x797   : > { %2570 = vrot.lane.b32.xlu0 %v7089_v29, %s4862_s21 }
 0x799   : > { %2616 = vrot.lane.b32.xlu1 %v7077_v33, %s4865_s28 }
 0x79b   : > { %2618 = vrot.lane.b32.xlu0 %v7081_v32, %s4865_s28 }
 0x79d   : > { %2632 = vrot.lane.b32.xlu1 %v7085_v1, %s4865_s28 }
 0x79f   : > { %2634 = vrot.lane.b32.xlu0 %v7089_v29, %s4865_s28 }
 0x7a1   : > { %2680 = vrot.lane.b32.xlu1 %v7077_v33, %s4866_s15 }
 0x7a3   : > { %2682 = vrot.lane.b32.xlu0 %v7081_v32, %s4866_s15 }
 0x7a5   : > { %2696 = vrot.lane.b32.xlu1 %v7085_v1, %s4866_s15 }
 0x7a7   : > { %2698 = vrot.lane.b32.xlu0 %v7089_v29, %s4866_s15 }
 0x7a9   : > { %2744 = vrot.lane.b32.xlu1 %v7077_v33, %s4867_s12 }
 0x7ab   : > { %2746 = vrot.lane.b32.xlu0 %v7081_v32, %s4867_s12 }
 0x7ad   : > { %2760 = vrot.lane.b32.xlu1 %v7085_v1, %s4867_s12 }
 0x7af   : > { %2762 = vrot.lane.b32.xlu0 %v7089_v29, %s4867_s12 }
 0x7b1   : > { %2808 = vrot.lane.b32.xlu1 %v7077_v33, %s4868_s22 }
 0x7b3   : > { %2810 = vrot.lane.b32.xlu0 %v7081_v32, %s4868_s22 }
 0x7b5   : > { %2824 = vrot.lane.b32.xlu1 %v7085_v1, %s4868_s22 }
 0x7b7   : > { %v7147_v8 = vpop.permute.xlu1 %2416  ;;  %2826 = vrot.lane.b32.xlu0 %v7089_v29, %s4868_s22 }
 0x7b9   : > { %2872 = vrot.lane.b32.xlu1 %v7077_v33, %s4870_s16  ;;  %v7155_v14 = vpop.permute.xlu0 %2418 }
 0x7bb   : > { %v7161_v53 = vpop.permute.xlu1 %2432  ;;  %2874 = vrot.lane.b32.xlu0 %v7081_v32, %s4870_s16 }
 0x7bd   : > { %2420 = vrot.lane.b32.xlu1 %v7157_v55, %s4864_s23  ;;  %v7171_v18 = vpop.permute.xlu0 %2434 }
 0x7bf   : > { %v7175_v58 = vpop.permute.xlu1 %2480  ;;  %2422 = vrot.lane.b32.xlu0 %v7165_v48, %s4864_s23 }
 0x7c1   : > { %2436 = vrot.lane.b32.xlu1 %v7173_v24, %s4864_s23  ;;  %v7183_v52 = vpop.permute.xlu0 %2482 }
 0x7c3   : > { %v7185_v30 = vpop.permute.xlu1 %2496  ;;  %2438 = vrot.lane.b32.xlu0 %v7179_v46, %s4864_s23 }
 0x7c5   : > { %2484 = vrot.lane.b32.xlu1 %v7157_v55, %s4863_s24  ;;  %v7191_v42 = vpop.permute.xlu0 %2498 }
 0x7c7   : > { %v7193_v15 = vpop.permute.xlu1 %2544  ;;  %2486 = vrot.lane.b32.xlu0 %v7165_v48, %s4863_s24 }
 0x7c9   : > { %2500 = vrot.lane.b32.xlu1 %v7173_v24, %s4863_s24  ;;  %v7199_v2 = vpop.permute.xlu0 %2546 }
 0x7cb   : > { %v7201_v21 = vpop.permute.xlu1 %2560  ;;  %2502 = vrot.lane.b32.xlu0 %v7179_v46, %s4863_s24 }
 0x7cd   : > { %2548 = vrot.lane.b32.xlu1 %v7157_v55, %s4862_s21  ;;  %v7207_v3 = vpop.permute.xlu0 %2562 }
 0x7cf   : > { %v7209_v47 = vpop.permute.xlu1 %2608  ;;  %2550 = vrot.lane.b32.xlu0 %v7165_v48, %s4862_s21 }
 0x7d1   : > { %2564 = vrot.lane.b32.xlu1 %v7173_v24, %s4862_s21  ;;  %v7215_v41 = vpop.permute.xlu0 %2610 }
 0x7d3   : > { %v7217_v34 = vpop.permute.xlu1 %2624  ;;  %2566 = vrot.lane.b32.xlu0 %v7179_v46, %s4862_s21 }
 0x7d5   : > { %2612 = vrot.lane.b32.xlu1 %v7157_v55, %s4865_s28  ;;  %v7223_v25 = vpop.permute.xlu0 %2626 }
 0x7d7   : > { %v7225_v16 = vpop.permute.xlu1 %2688  ;;  %2614 = vrot.lane.b32.xlu0 %v7165_v48, %s4865_s28 }
 0x7d8   : > { %10201 = vst [vmem:[#allocation106_spill] sm:$0xff] %v7225_v16 }
 0x7d9   : > { %2628 = vrot.lane.b32.xlu1 %v7173_v24, %s4865_s28  ;;  %v7231_v9 = vpop.permute.xlu0 %2690 }
 0x7da   : > { %10202 = vst [vmem:[#allocation70_spill] sm:$0xff] %v7231_v9 }
 0x7db   : > { %v7233_v0 = vpop.permute.xlu1 %2672  ;;  %2630 = vrot.lane.b32.xlu0 %v7179_v46, %s4865_s28 }
 0x7dc   : > { %10203 = vst [vmem:[#allocation88_spill] sm:$0xff] %v7233_v0 }
 0x7dd   : > { %2692 = vrot.lane.b32.xlu1 %v7173_v24, %s4866_s15  ;;  %v7239_v59 = vpop.permute.xlu0 %2674 }
 0x7de   : > { %10204 = vst [vmem:[#allocation72_spill] sm:$0xff] %v7239_v59 }
 0x7df   : > { %v7241_v43 = vpop.permute.xlu1 %2752  ;;  %2694 = vrot.lane.b32.xlu0 %v7179_v46, %s4866_s15 }
 0x7e0   : > { %10205 = vst [vmem:[#allocation107_spill] sm:$0xff] %v7241_v43  ;;  %v10218_v43 = vld [vmem:[#allocation47_spill] sm:$0xff] }
 0x7e1   : > { %2676 = vrot.lane.b32.xlu1 %v7157_v55, %s4866_s15  ;;  %v7247_v44 = vpop.permute.xlu0 %2754 }
 0x7e2   : > { %10206 = vst [vmem:[#allocation109_spill] sm:$0xff] %v7247_v44 }
 0x7e3   : > { %v7249_v6 = vpop.permute.xlu1 %2736  ;;  %2678 = vrot.lane.b32.xlu0 %v7165_v48, %s4866_s15 }
 0x7e4   : > { %10207 = vst [vmem:[#allocation108_spill] sm:$0xff] %v7249_v6 }
 0x7e5   : > { %2756 = vrot.lane.b32.xlu1 %v7173_v24, %s4867_s12  ;;  %v7255_v20 = vpop.permute.xlu0 %2738 }
 0x7e6   : > { %10208 = vst [vmem:[#allocation71_spill] sm:$0xff] %v7255_v20  ;;  %v10219_v20 = vld [vmem:[#allocation46_spill] sm:$0xff] }
 0x7e7   : > { %v7257_v37 = vpop.permute.xlu1 %2816  ;;  %2758 = vrot.lane.b32.xlu0 %v7179_v46, %s4867_s12 }
 0x7e8   : > { %10209 = vst [vmem:[#allocation89_spill] sm:$0xff] %v7257_v37 }
 0x7e9   : > { %2740 = vrot.lane.b32.xlu1 %v7157_v55, %s4867_s12  ;;  %v7263_v40 = vpop.permute.xlu0 %2818 }
 0x7ea   : > { %10210 = vst [vmem:[#allocation73_spill] sm:$0xff] %v7263_v40  ;;  %v4432_v40 = vadd.f32 %v7019_v10, %v7141_v4  ;;  %v4440_v10 = vadd.f32 %v7025_v36, %v7141_v4 }
 0x7eb   : > { %v7265_v56 = vpop.permute.xlu1 %2800  ;;  %2742 = vrot.lane.b32.xlu0 %v7165_v48, %s4867_s12 }
 0x7ec   : > { %10211 = vst [vmem:[#allocation110_spill] sm:$0xff] %v7265_v56  ;;  %v7285_v56 = vmax.f32 %v4430_v31, 0.0  ;;  %v7318_v4 = vmax.f32 %v4440_v10, 0.0 }
 0x7ed   : > { %2820 = vrot.lane.b32.xlu1 %v7173_v24, %s4868_s22  ;;  %v7271_v35 = vpop.permute.xlu0 %2802 }
 0x7ee   : > { %10212 = vst [vmem:[#allocation90_spill] sm:$0xff] %v7271_v35  ;;  %v4438_v35 = vadd.f32 %v7017_v23, %v7137_v5  ;;  %10217 = vst [vmem:[#allocation77_spill] sm:$0xff] %v7318_v4 }
 0x7ef   : > { %v7275_v37 = vpop.permute.xlu1 %2880  ;;  %2822 = vrot.lane.b32.xlu0 %v7179_v46, %s4868_s22 }
 0x7f0   : > { %10213 = vst [vmem:[#allocation111_spill] sm:$0xff] %v7275_v37  ;;  %v7294_v37 = vmax.f32 %v4432_v40, 0.0  ;;  %v7303_v5 = vmax.f32 %v4438_v35, 0.0 }
 0x7f1   : > { %2804 = vrot.lane.b32.xlu1 %v7157_v55, %s4868_s22  ;;  %v7283_v11 = vpop.permute.xlu0 %2882 }
 0x7f2   : > { %10214 = vst [vmem:[#allocation91_spill] sm:$0xff] %v7283_v11  ;;  %10215 = vst [vmem:[#allocation93_spill] sm:$0xff] %v7303_v5  ;;  %v10216_v11 = vld [vmem:[#allocation45_spill] sm:$0xff] }
 0x7f3   : > { %v2425_v22 = vpop.permute.xlu1 %2424  ;;  %2806 = vrot.lane.b32.xlu0 %v7165_v48, %s4868_s22 }
 0x7f4   : > { %v2456_v28 = vsel %vm987_vm12, %v7147_v8, %v2425_v22 }
 0x7f5   : > { %2428 = vrot.lane.b32.xlu1 %v7285_v56, %s4864_s23  ;;  %v2427_v31 = vpop.permute.xlu0 %2426  ;;  %v2465_v7 = vmul.f32 %v2456_v28, %v10216_v11  ;;  %v2452_v28 = vsel %vm987_vm12, %v2425_v22, %v7161_v53 }
 0x7f6   : > { %v2457_v23 = vsel %vm987_vm12, %v7155_v14, %v2427_v31  ;;  %v2453_v40 = vsel %vm987_vm12, %v2427_v31, %v7171_v18 }
 0x7f7   : > { %v2469_v13 = vmul.f32 %v2457_v23, %v10216_v11  ;;  %v2441_v6 = vpop.permute.xlu1 %2440  ;;  %2430 = vrot.lane.b32.xlu0 %v7294_v37, %s4864_s23  ;;  %v2470_v44 = vmul.f32 %v2453_v40, %v10218_v43 }
 0x7f8   : > { %v2448_v36 = vsel %vm987_vm12, %v7161_v53, %v2441_v6  ;;  %v2460_v35 = vsel %vm987_vm12, %v2441_v6, %v7147_v8  ;;  %v10220_v8 = vld [vmem:[#allocation48_spill] sm:$0xff] }
 0x7f9   : > { %2444 = vrot.lane.b32.xlu1 %v7303_v5, %s4864_s23  ;;  %v2443_v31 = vpop.permute.xlu0 %2442  ;;  %v2929_v23 = vpack.c.bf16 %v2469_v13, %v2465_v7  ;;  %v2464_v54 = vmul.f32 %v2460_v35, %v10219_v20  ;;  %v2467_v10 = vmul.f32 %v2448_v36, %v10220_v8  ;;  %v2466_v13 = vmul.f32 %v2452_v28, %v10218_v43 }
 0x7fa   : > { %v2449_v12 = vsel %vm987_vm12, %v7171_v18, %v2443_v31  ;;  %v2461_v6 = vsel %vm987_vm12, %v2443_v31, %v7155_v14 }
 0x7fb   : > { %v2468_v22 = vmul.f32 %v2461_v6, %v10219_v20  ;;  %v2471_v53 = vmul.f32 %v2449_v12, %v10220_v8  ;;  %v7336_v59 = vpop.permute.xlu1 %2488  ;;  %2446 = vrot.lane.b32.xlu0 %v7318_v4, %s4864_s23  ;;  %3068 = vmatprep.subr.bf16.mxu1 %v2929_v23  ;;  %v2930_v40 = vpack.c.bf16 %v2470_v44, %v2466_v13 }
 0x7fd   : > { %v2928_v7 = vpack.c.bf16 %v2468_v22, %v2464_v54  ;;  %2492 = vrot.lane.b32.xlu1 %v7285_v56, %s4863_s24  ;;  %v7343_v18 = vpop.permute.xlu0 %2490  ;;  %v2931_v14 = vpack.c.bf16 %v2471_v53, %v2467_v10 }
 0x7ff   : > { %v7345_v36 = vpop.permute.xlu1 %2504  ;;  %2494 = vrot.lane.b32.xlu0 %v7294_v37, %s4863_s24  ;;  %3069 = vmatpush1.bf16.msra.mxu1 %v2928_v7 }
 0x800   : > { %3174 = vmatprep.subr.bf16.mxu0 %v2931_v14 }
 0x801   : > { %3175 = vmatpush1.bf16.msra.mxu0 %v2930_v40  ;;  %2508 = vrot.lane.b32.xlu1 %v7303_v5, %s4863_s24  ;;  %v7351_v12 = vpop.permute.xlu0 %2506 }
 0x803   : > { %v7353_v54 = vpop.permute.xlu1 %2552  ;;  %2510 = vrot.lane.b32.xlu0 %v7318_v4, %s4863_s24 }
 0x805   : > { %2556 = vrot.lane.b32.xlu1 %v7285_v56, %s4862_s21  ;;  %v7359_v44 = vpop.permute.xlu0 %2554 }
 0x807   : > { %v7361_v35 = vpop.permute.xlu1 %2568  ;;  %2558 = vrot.lane.b32.xlu0 %v7294_v37, %s4862_s21 }
 0x809   : > { %2572 = vrot.lane.b32.xlu1 %v7303_v5, %s4862_s21  ;;  %v7367_v28 = vpop.permute.xlu0 %2570 }
 0x80b   : > { %v7369_v31 = vpop.permute.xlu1 %2616  ;;  %2574 = vrot.lane.b32.xlu0 %v7318_v4, %s4862_s21 }
 0x80d   : > { %2620 = vrot.lane.b32.xlu1 %v7285_v56, %s4865_s28  ;;  %v7375_v23 = vpop.permute.xlu0 %2618 }
 0x80f   : > { %v7377_v6 = vpop.permute.xlu1 %2632  ;;  %2622 = vrot.lane.b32.xlu0 %v7294_v37, %s4865_s28 }
 0x810   : > { %10221 = vst [vmem:[#allocation75_spill] sm:$0xff] %v7377_v6 }
 0x811   : > { %2636 = vrot.lane.b32.xlu1 %v7303_v5, %s4865_s28  ;;  %v7383_v10 = vpop.permute.xlu0 %2634 }
 0x812   : > { %10222 = vst [vmem:[#allocation95_spill] sm:$0xff] %v7383_v10  ;;  %v3008_v10 = vld [vmem:[%s9644_s10] sm:$0xff] }
 0x813   : > { %v7385_v22 = vpop.permute.xlu1 %2680  ;;  %2638 = vrot.lane.b32.xlu0 %v7318_v4, %s4865_s28 }
 0x814   : > { %10223 = vst [vmem:[#allocation74_spill] sm:$0xff] %v7385_v22 }
 0x815   : > { %2864 = vrot.lane.b32.xlu1 %v6993_v39, %s4870_s16  ;;  %v7391_v53 = vpop.permute.xlu0 %2682 }
 0x816   : > { %10224 = vst [vmem:[#allocation92_spill] sm:$0xff] %v7391_v53 }
 0x817   : > { %v7393_v13 = vpop.permute.xlu1 %2696  ;;  %2866 = vrot.lane.b32.xlu0 %v6995_v57, %s4870_s16 }
 0x818   : > { %10225 = vst [vmem:[#allocation76_spill] sm:$0xff] %v7393_v13 }
 0x819   : > { %2684 = vrot.lane.b32.xlu1 %v7285_v56, %s4866_s15  ;;  %v7399_v7 = vpop.permute.xlu0 %2698 }
 0x81a   : > { %10226 = vst [vmem:[#allocation94_spill] sm:$0xff] %v7399_v7 }
 0x81b   : > { %v7401_v14 = vpop.permute.xlu1 %2744  ;;  %2890 = vrot.lane.b32.xlu0 %v7089_v29, %s4870_s16 }
 0x81c   : > { %10227 = vst [vmem:[#allocation96_spill] sm:$0xff] %v7401_v14 }
 0x81d   : > { %2700 = vrot.lane.b32.xlu1 %v7303_v5, %s4866_s15  ;;  %v7407_v40 = vpop.permute.xlu0 %2746 }
 0x81e   : > { %10228 = vst [vmem:[#allocation80_spill] sm:$0xff] %v7407_v40 }
 0x81f   : > { %v7409_v53 = vpop.permute.xlu1 %2760  ;;  %2686 = vrot.lane.b32.xlu0 %v7294_v37, %s4866_s15 }
 0x820   : > { %10229 = vst [vmem:[#allocation78_spill] sm:$0xff] %v7409_v53 }
 0x821   : > { %2748 = vrot.lane.b32.xlu1 %v7285_v56, %s4867_s12  ;;  %v7415_v13 = vpop.permute.xlu0 %2762 }
 0x822   : > { %10230 = vst [vmem:[#allocation97_spill] sm:$0xff] %v7415_v13 }
 0x823   : > { %v7417_v7 = vpop.permute.xlu1 %2808  ;;  %2702 = vrot.lane.b32.xlu0 %v7318_v4, %s4866_s15 }
 0x824   : > { %10231 = vst [vmem:[#allocation81_spill] sm:$0xff] %v7417_v7  ;;  %v4613_v7 = vld [vmem:[#allocation14 + $0x4] ss:$12 sps:$4 sm:$0xff]  }
 0x825   : > { %2764 = vrot.lane.b32.xlu1 %v7303_v5, %s4867_s12  ;;  %v7423_v14 = vpop.permute.xlu0 %2810  ;;  %3100 = vmatprep.mubr.bf16.mxu1 %v4613_v7 }
 0x826   : > { %10232 = vst [vmem:[#allocation112_spill] sm:$0xff] %v7423_v14  ;;  %3206 = vmatprep.mubr.bf16.mxu0 %v4613_v7 }
 0x827   : > { %v7425_v40 = vpop.permute.xlu1 %2824  ;;  %2750 = vrot.lane.b32.xlu0 %v7294_v37, %s4867_s12 }
 0x828   : > { %10233 = vst [vmem:[#allocation65_spill] sm:$0xff] %v7425_v40 }
 0x829   : > { %2812 = vrot.lane.b32.xlu1 %v7285_v56, %s4868_s22  ;;  %v7431_v53 = vpop.permute.xlu0 %2826 }
 0x82a   : > { %10234 = vst [vmem:[#allocation64_spill] sm:$0xff] %v7431_v53 }
 0x82b   : > { %v7433_v13 = vpop.permute.xlu1 %2872  ;;  %2766 = vrot.lane.b32.xlu0 %v7318_v4, %s4867_s12 }
 0x82c   : > { %10235 = vst [vmem:[#allocation79_spill] sm:$0xff] %v7433_v13 }
 0x82d   : > { %2828 = vrot.lane.b32.xlu1 %v7303_v5, %s4868_s22  ;;  %v7439_v14 = vpop.permute.xlu0 %2874 }
 0x82e   : > { %10236 = vst [vmem:[#allocation85_spill] sm:$0xff] %v7439_v14 }
 0x82f   : > { %v7441_v40 = vpop.permute.xlu1 %2420  ;;  %2814 = vrot.lane.b32.xlu0 %v7294_v37, %s4868_s22 }
 0x831   : > { %2888 = vrot.lane.b32.xlu1 %v7085_v1, %s4870_s16  ;;  %v7447_v13 = vpop.permute.xlu0 %2422 }
 0x833   : > { %v7449_v53 = vpop.permute.xlu1 %2436  ;;  %2830 = vrot.lane.b32.xlu0 %v7318_v4, %s4868_s22 }
 0x835   : > { %2876 = vrot.lane.b32.xlu1 %v7285_v56, %s4870_s16  ;;  %v7455_v14 = vpop.permute.xlu0 %2438 }
 0x837   : > { %v7457_v7 = vpop.permute.xlu1 %2484  ;;  %2886 = vrot.lane.b32.xlu0 %v7179_v46, %s4870_s16 }
 0x838   : > { %10237 = vst [vmem:[#allocation84_spill] sm:$0xff] %v7457_v7 }
 0x839   : > { %2884 = vrot.lane.b32.xlu1 %v7173_v24, %s4870_s16  ;;  %v7463_v9 = vpop.permute.xlu0 %2486 }
 0x83a   : > { %10238 = vst [vmem:[#allocation113_spill] sm:$0xff] %v7463_v9 }
 0x83b   : > { %v7465_v26 = vpop.permute.xlu1 %2500  ;;  %2870 = vrot.lane.b32.xlu0 %v7165_v48, %s4870_s16 }
 0x83c   : > { %10239 = vst [vmem:[#allocation115_spill] sm:$0xff] %v7465_v26 }
 0x83d   : > { %2868 = vrot.lane.b32.xlu1 %v7157_v55, %s4870_s16  ;;  %v7471_v0 = vpop.permute.xlu0 %2502 }
 0x83e   : > { %10240 = vst [vmem:[#allocation114_spill] sm:$0xff] %v7471_v0 }
 0x83f   : > { %v7473_v22 = vpop.permute.xlu1 %2548  ;;  %2878 = vrot.lane.b32.xlu0 %v7294_v37, %s4870_s16 }
 0x840   : > { %10241 = vst [vmem:[#allocation67_spill] sm:$0xff] %v7473_v22  ;;  %v3009_v22 = vld [vmem:[%s9644_s10 + $0x8] sm:$0xff] }
 0x841   : > { %2892 = vrot.lane.b32.xlu1 %v7303_v5, %s4870_s16  ;;  %v7479_v16 = vpop.permute.xlu0 %2550  ;;  %v10260_v5 = vld [vmem:[#allocation48_spill] sm:$0xff] }
 0x842   : > { %10242 = vst [vmem:[#allocation66_spill] sm:$0xff] %v7479_v16  ;;  %v3010_v16 = vld [vmem:[%s9644_s10 + $0x10] sm:$0xff] }
 0x843   : > { %v7484_v26 = vpop.permute.xlu1 %2564  ;;  %2894 = vrot.lane.b32.xlu0 %v7318_v4, %s4870_s16 }
 0x844   : > { %10243 = vst [vmem:[#allocation69_spill] sm:$0xff] %v7484_v26  ;;  %v3011_v26 = vld [vmem:[%s9644_s10 + $0x18] sm:$0xff] }
 0x845   : > { %3014 = vperm.xlu1 %4600, %v3008_v10   ;;  %v7491_v63 = vpop.permute.xlu0 %2566 }
 0x846   : > { %10244 = vst [vmem:[#allocation68_spill] sm:$0xff] %v7491_v63 }
 0x847   : > { %v7496_v0 = vpop.permute.xlu1 %2612  ;;  %3019 = vperm.xlu0 %4599, %v3009_v22  }
 0x848   : > { %10245 = vst [vmem:[#allocation98_spill] sm:$0xff] %v7496_v0 }
 0x849   : > { %3024 = vperm.xlu1 %4600, %v3010_v16   ;;  %v7501_v9 = vpop.permute.xlu0 %2614 }
 0x84b   : > { %v7503_v6 = vpop.permute.xlu1 %2628  ;;  %3029 = vperm.xlu0 %4599, %v3011_v26   ;;  %v2517_v26 = vsel %vm1020_vm11, %v7343_v18, %v7191_v42 }
 0x84c   : > { %10246 = vst [vmem:[#allocation99_spill] sm:$0xff] %v7503_v6 }
 0x84d   : > { %v7505_v10 = vpop.permute.xlu0 %2630 }
 0x84f   : > { %v7507_v63 = vpop.permute.xlu1 %2692 }
 0x850   : > { %10247 = vst [vmem:[#allocation116_spill] sm:$0xff] %v7507_v63 }
 0x851   : > { %v7509_v7 = vpop.permute.xlu0 %2694 }
 0x852   : > { %10248 = vst [vmem:[#allocation118_spill] sm:$0xff] %v7509_v7 }
 0x853   : > { %v7511_v8 = vpop.permute.xlu1 %2676 }
 0x854   : > { %10249 = vst [vmem:[#allocation117_spill] sm:$0xff] %v7511_v8  ;;  %v2516_v8 = vsel %vm1020_vm11, %v7336_v59, %v7185_v30 }
 0x855   : > { %v7513_v0 = vpop.permute.xlu0 %2678 }
 0x856   : > { %10250 = vst [vmem:[#allocation119_spill] sm:$0xff] %v7513_v0  ;;  %v7546_v0 = vmul.f32 %v2517_v26, %v5429_v27  ;;  %v7563_v26 = vmul.f32 %v2516_v8, %v5429_v27  ;;  %v2524_v8 = vsel %vm1020_vm11, %v7345_v36, %v7175_v58 }
 0x857   : > { %v7515_v22 = vpop.permute.xlu1 %2756 }
 0x858   : > { %10251 = vst [vmem:[#allocation82_spill] sm:$0xff] %v7515_v22 }
 0x859   : > { %v7517_v20 = vpop.permute.xlu0 %2758 }
 0x85a   : > { %10252 = vst [vmem:[#allocation100_spill] sm:$0xff] %v7517_v20  ;;  %v2525_v20 = vsel %vm1020_vm11, %v7351_v12, %v7183_v52 }
 0x85b   : > { %v7519_v16 = vpop.permute.xlu1 %2740 }
 0x85c   : > { %10253 = vst [vmem:[#allocation120_spill] sm:$0xff] %v7519_v16  ;;  %v2520_v16 = vsel %vm1020_vm11, %v7175_v58, %v7336_v59  ;;  %v2580_v58 = vsel %vm1053_vm10, %v7353_v54, %v7201_v21  ;;  %v2584_v59 = vsel %vm1053_vm10, %v7193_v15, %v7353_v54  ;;  %v2576_v54 = vsel %vm1053_vm10, %v7201_v21, %v7361_v35 }
 0x85d   : > { %v7525_v6 = vpop.permute.xlu0 %2742  ;;  %v7576_v63 = vmul.f32 %v2520_v16, %v5373_v51  ;;  %v7598_v16 = vmul.f32 %v2525_v20, %v5406_v62  ;;  %v2589_v20 = vsel %vm1053_vm10, %v7367_v28, %v7199_v2 }
 0x85e   : > { %10254 = vst [vmem:[#allocation83_spill] sm:$0xff] %v7525_v6  ;;  %v2521_v6 = vsel %vm1020_vm11, %v7183_v52, %v7343_v18  ;;  %v2581_v52 = vsel %vm1053_vm10, %v7359_v44, %v7207_v3 }
 0x85f   : > { %v7531_v7 = vpop.permute.xlu1 %2820  ;;  %v7579_v18 = vmul.f32 %v2521_v6, %v5373_v51  ;;  %v2512_v6 = vsel %vm1020_vm11, %v7185_v30, %v7345_v36  ;;  %v7621_v36 = vmul.f32 %v2524_v8, %v5406_v62  ;;  %v2577_v8 = vsel %vm1053_vm10, %v7207_v3, %v7367_v28 }
 0x860   : > { %10255 = vst [vmem:[#allocation101_spill] sm:$0xff] %v7531_v7  ;;  %v2513_v7 = vsel %vm1020_vm11, %v7191_v42, %v7351_v12  ;;  %v2585_v42 = vsel %vm1053_vm10, %v7199_v2, %v7359_v44  ;;  %v7635_v2 = vmul.f32 %v2512_v6, %v5412_v17 }
 0x861   : > { %v7554_v22 = vpop.permute.xlu0 %2822  ;;  %v7605_v44 = vmul.f32 %v2513_v7, %v5412_v17  ;;  %v7624_v7 = vmul.f32 %v2585_v42, %v5367_v49  ;;  %v2937_v21 = vpack.c.bf16 %v7579_v18, %v7576_v63  ;;  %v7663_v63 = vmul.f32 %v2576_v54, %v5402_v61 }
 0x862   : > { %10256 = vst [vmem:[#allocation122_spill] sm:$0xff] %v7554_v22  ;;  %v7612_v22 = vmul.f32 %v2581_v52, %v5416_v19  ;;  %v2588_v52 = vsel %vm1053_vm10, %v7361_v35, %v7193_v15  ;;  %v7649_v15 = vmul.f32 %v2584_v59, %v5367_v49  ;;  %v7652_v35 = vmul.f32 %v2589_v20, %v5398_v60 }
 0x863   : > { %v7589_v12 = vpop.permute.xlu1 %2804  ;;  %v7660_v28 = vmul.f32 %v2588_v52, %v5398_v60  ;;  %v2939_v59 = vpack.c.bf16 %v7605_v44, %v7635_v2  ;;  %v2648_v20 = vsel %vm1086_vm14, %v7209_v47, %v7369_v31  ;;  %v2645_v44 = vsel %vm1086_vm14, %v7375_v23, %v7223_v25 }
 0x864   : > { %10257 = vst [vmem:[#allocation121_spill] sm:$0xff] %v7589_v12  ;;  %v2644_v54 = vsel %vm1086_vm14, %v7369_v31, %v7217_v34  ;;  %v7711_v55 = vmul.f32 %v2645_v44, %v5517_v38 }
 0x865   : > { %v7618_v30 = vpop.permute.xlu0 %2806  ;;  %v7725_v44 = vmul.f32 %v2644_v54, %v5517_v38 }
 0x866   : > { %10258 = vst [vmem:[#allocation123_spill] sm:$0xff] %v7618_v30  ;;  %v7638_v30 = vmul.f32 %v2580_v58, %v5416_v19  ;;  %v7668_v58 = vmul.f32 %v2577_v8, %v5402_v61 }
 0x867   : > { %v2429_v42 = vpop.permute.xlu1 %2428 }
 0x868   : > { %v2458_v6 = vsel %vm987_vm12, %v7441_v40, %v2429_v42  ;;  %v2454_v31 = vsel %vm987_vm12, %v2429_v42, %v7449_v53 }
 0x869   : > { %v2431_v18 = vpop.permute.xlu0 %2430  ;;  %v2473_v2 = vmul.f32 %v2458_v6, %v10216_v11 }
 0x86a   : > { %v2459_v52 = vsel %vm987_vm12, %v7447_v13, %v2431_v18  ;;  %v2455_v8 = vsel %vm987_vm12, %v2431_v18, %v7455_v14  ;;  %v7701_v18 = vmul.f32 %v2648_v20, %v5468_v50 }
 0x86b   : > { %v2477_v3 = vmul.f32 %v2459_v52, %v10216_v11  ;;  %v2445_v12 = vpop.permute.xlu1 %2444  ;;  %v2649_v52 = vsel %vm1086_vm14, %v7215_v41, %v7375_v23  ;;  %v2478_v48 = vmul.f32 %v2455_v8, %v10218_v43  ;;  %v10259_v23 = vld [vmem:[#allocation46_spill] sm:$0xff] }
 0x86c   : > { %v2450_v46 = vsel %vm987_vm12, %v7449_v53, %v2445_v12  ;;  %v2462_v6 = vsel %vm987_vm12, %v2445_v12, %v7441_v40 }
 0x86d   : > { %v2447_v24 = vpop.permute.xlu0 %2446  ;;  %v2933_v11 = vpack.c.bf16 %v2477_v3, %v2473_v2  ;;  %v2472_v20 = vmul.f32 %v2462_v6, %v10259_v23  ;;  %v2475_v4 = vmul.f32 %v2450_v46, %v10260_v5  ;;  %v2474_v2 = vmul.f32 %v2454_v31, %v10218_v43  ;;  %v10264_v43 = vld [vmem:[#allocation114_spill] sm:$0xff] }
 0x86e   : > { %v2451_v40 = vsel %vm987_vm12, %v7455_v14, %v2447_v24  ;;  %v2463_v12 = vsel %vm987_vm12, %v2447_v24, %v7447_v13  ;;  %v10261_v14 = vld [vmem:[#allocation84_spill] sm:$0xff]  ;;  %v7734_v46 = vmul.f32 %v2649_v52, %v5468_v50  ;;  %v10262_v13 = vld [vmem:[#allocation75_spill] sm:$0xff]  ;;  %v2954_v31 = vpack.c.bf16 %v7711_v55, %v7725_v44  ;;  %v10296_v44 = vld [vmem:[#allocation97_spill] sm:$0xff] }
 0x86f   : > { %v2476_v53 = vmul.f32 %v2463_v12, %v10259_v23  ;;  %v2479_v42 = vmul.f32 %v2451_v40, %v10260_v5  ;;  %v2493_v3 = vpop.permute.xlu1 %2492  ;;  %3070 = vmatprep.subr.bf16.mxu1 %v2933_v11  ;;  %v2652_v11 = vsel %vm1086_vm14, %v10262_v13, %v7209_v47  ;;  %v2640_v12 = vsel %vm1086_vm14, %v7217_v34, %v10262_v13  ;;  %v10263_v5 = vld [vmem:[#allocation113_spill] sm:$0xff]  ;;  %v10266_v34 = vld [vmem:[#allocation115_spill] sm:$0xff] }
 0x870   : > { %v2522_v8 = vsel %vm1020_vm11, %v10261_v14, %v2493_v3  ;;  %v2934_v24 = vpack.c.bf16 %v2478_v48, %v2474_v2 }
 0x871   : > { %v2932_v6 = vpack.c.bf16 %v2476_v53, %v2472_v20  ;;  %v2495_v54 = vpop.permute.xlu0 %2494  ;;  %v2935_v40 = vpack.c.bf16 %v2479_v42, %v2475_v4  ;;  %v2537_v23 = vmul.f32 %v2522_v8, %v5373_v51  ;;  %v10265_v53 = vld [vmem:[#allocation50_spill] sm:$0xff]  ;;  %v10267_v8 = vld [vmem:[#allocation52_spill] sm:$0xff] }
 0x872   : > { %v2523_v52 = vsel %vm1020_vm11, %v10263_v5, %v2495_v54  ;;  %v2519_v47 = vsel %vm1020_vm11, %v2495_v54, %v10264_v43  ;;  %v7755_v42 = vmul.f32 %v2652_v11, %v10265_v53  ;;  %v7764_v13 = vmul.f32 %v2640_v12, %v10267_v8  ;;  %v10268_v54 = vld [vmem:[#allocation95_spill] sm:$0xff] }
 0x873   : > { %v2541_v4 = vmul.f32 %v2523_v52, %v5373_v51  ;;  %v2509_v20 = vpop.permute.xlu1 %2508  ;;  %3071 = vmatpush1.bf16.msra.mxu1 %v2932_v6  ;;  %3176 = vmatprep.subr.bf16.mxu0 %v2935_v40  ;;  %v2653_v6 = vsel %vm1086_vm14, %v10268_v54, %v7215_v41  ;;  %v2518_v11 = vsel %vm1020_vm11, %v2493_v3, %v10266_v34 }
 0x874   : > { %v2514_v48 = vsel %vm1020_vm11, %v10266_v34, %v2509_v20  ;;  %v2526_v2 = vsel %vm1020_vm11, %v2509_v20, %v10261_v14  ;;  %3072 = vmatprep.subr.bf16.mxu1 %v2937_v21  ;;  %3177 = vmatpush1.bf16.msra.mxu0 %v2934_v24  ;;  %v2641_v21 = vsel %vm1086_vm14, %v7223_v25, %v10268_v54  ;;  %v10270_v20 = vld [vmem:[#allocation67_spill] sm:$0xff] }
 0x875   : > { %3178 = vmatprep.subr.bf16.mxu0 %v2939_v59  ;;  %v2511_v40 = vpop.permute.xlu0 %2510  ;;  %v2941_v52 = vpack.c.bf16 %v2541_v4, %v2537_v23  ;;  %v2542_v14 = vmul.f32 %v2519_v47, %v5429_v27  ;;  %v2536_v3 = vmul.f32 %v2526_v2, %v5406_v62  ;;  %v2539_v59 = vmul.f32 %v2514_v48, %v5412_v17 }
 0x876   : > { %v2515_v24 = vsel %vm1020_vm11, %v10264_v43, %v2511_v40  ;;  %v2527_v41 = vsel %vm1020_vm11, %v2511_v40, %v10263_v5  ;;  %v10269_v25 = vpack.c.bf16 %v7598_v16, %v7621_v36  ;;  %v7792_v47 = vmul.f32 %v2653_v6, %v10265_v53  ;;  %v10272_v6 = vld [vmem:[#allocation106_spill] sm:$0xff] }
 0x877   : > { %v2540_v23 = vmul.f32 %v2527_v41, %v5406_v62  ;;  %v2543_v12 = vmul.f32 %v2515_v24, %v5412_v17  ;;  %v2557_v4 = vpop.permute.xlu1 %2556  ;;  %v2538_v43 = vmul.f32 %v2518_v11, %v5429_v27  ;;  %v10271_v34 = vpack.c.bf16 %v7546_v0, %v7563_v26  ;;  %v10273_v11 = vld [vmem:[#allocation74_spill] sm:$0xff] }
 0x878   : > { %3073 = vmatpush1.bf16.msra.mxu1 %v10269_v25  ;;  %v2586_v5 = vsel %vm1053_vm10, %v10270_v20, %v2557_v4  ;;  %v7802_v48 = vmul.f32 %v2641_v21, %v10267_v8  ;;  %v2953_v54 = vpack.c.bf16 %v7734_v46, %v7701_v18  ;;  %v2708_v40 = vsel %vm1119_vm15, %v10273_v11, %v10272_v6  ;;  %v10275_v24 = vld [vmem:[#allocation66_spill] sm:$0xff] }
 0x879   : > { %3074 = vmatprep.subr.bf16.mxu1 %v2941_v52  ;;  %3179 = vmatpush1.bf16.msra.mxu0 %v10271_v34  ;;  %v2940_v2 = vpack.c.bf16 %v2540_v23, %v2536_v3  ;;  %v2559_v16 = vpop.permute.xlu0 %2558  ;;  %v2943_v36 = vpack.c.bf16 %v2543_v12, %v2539_v59  ;;  %v10274_v52 = vld [vmem:[#allocation88_spill] sm:$0xff]  ;;  %v2942_v26 = vpack.c.bf16 %v2542_v14, %v2538_v43  ;;  %v10277_v12 = vld [vmem:[#allocation69_spill] sm:$0xff] }
 0x87a   : > { %v2712_v0 = vsel %vm1119_vm15, %v10274_v52, %v10273_v11  ;;  %v2587_v21 = vsel %vm1053_vm10, %v10275_v24, %v2559_v16  ;;  %v2601_v41 = vmul.f32 %v2586_v5, %v5367_v49  ;;  %v10276_v3 = vld [vmem:[#allocation68_spill] sm:$0xff]  ;;  %v2952_v23 = vpack.c.bf16 %v7792_v47, %v7755_v42  ;;  %v10279_v5 = vld [vmem:[#allocation54_spill] sm:$0xff] }
 0x87b   : > { %v2583_v18 = vsel %vm1053_vm10, %v2559_v16, %v10276_v3  ;;  %v2605_v46 = vmul.f32 %v2587_v21, %v5367_v49  ;;  %v2573_v59 = vpop.permute.xlu1 %2572  ;;  %3180 = vmatprep.subr.bf16.mxu0 %v2943_v36  ;;  %v10278_v43 = vpack.c.bf16 %v7624_v7, %v7649_v15  ;;  %v7834_v34 = vmul.f32 %v2712_v0, %v10279_v5  ;;  %v10281_v16 = vld [vmem:[#allocation92_spill] sm:$0xff] }
 0x87c   : > { %3075 = vmatpush1.bf16.msra.mxu1 %v2940_v2  ;;  %v2578_v14 = vsel %vm1053_vm10, %v10277_v12, %v2573_v59  ;;  %v2590_v25 = vsel %vm1053_vm10, %v2573_v59, %v10270_v20  ;;  %v10280_v2 = vld [vmem:[#allocation70_spill] sm:$0xff]  ;;  %v2582_v47 = vsel %vm1053_vm10, %v2557_v4, %v10277_v12  ;;  %v10282_v20 = vpack.c.bf16 %v7668_v58, %v7663_v63  ;;  %v10283_v15 = vld [vmem:[#allocation72_spill] sm:$0xff]  ;;  %v10285_v59 = vld [vmem:[#allocation49_spill] sm:$0xff] }
 0x87d   : > { %3076 = vmatprep.subr.bf16.mxu1 %v10278_v43  ;;  %3181 = vmatpush1.bf16.msra.mxu0 %v2942_v26  ;;  %v2709_v42 = vsel %vm1119_vm15, %v10281_v16, %v10280_v2  ;;  %v2575_v36 = vpop.permute.xlu0 %2574  ;;  %v2949_v7 = vpack.c.bf16 %v2605_v46, %v2601_v41  ;;  %v2713_v11 = vsel %vm1119_vm15, %v10283_v15, %v10281_v16  ;;  %v10286_v43 = vld [vmem:[#allocation98_spill] sm:$0xff] }
 0x87e   : > { %3182 = vmatprep.subr.bf16.mxu0 %v10282_v20  ;;  %v2606_v0 = vmul.f32 %v2583_v18, %v5416_v19  ;;  %v2579_v26 = vsel %vm1053_vm10, %v10276_v3, %v2575_v36  ;;  %v2591_v4 = vsel %vm1053_vm10, %v2575_v36, %v10275_v24  ;;  %v2600_v63 = vmul.f32 %v2590_v25, %v5398_v60  ;;  %v10288_v20 = vld [vmem:[#allocation76_spill] sm:$0xff] }
 0x87f   : > { %v2603_v58 = vmul.f32 %v2578_v14, %v5402_v61  ;;  %v2604_v21 = vmul.f32 %v2591_v4, %v5398_v60  ;;  %v2607_v41 = vmul.f32 %v2579_v26, %v5402_v61  ;;  %v2621_v46 = vpop.permute.xlu1 %2620  ;;  %v10284_v18 = vpack.c.bf16 %v7652_v35, %v7660_v28 }
 0x880   : > { %v7865_v12 = vmul.f32 %v2708_v40, %v10285_v59  ;;  %v2602_v3 = vmul.f32 %v2582_v47, %v5416_v19  ;;  %v2650_v24 = vsel %vm1086_vm14, %v10286_v43, %v2621_v46  ;;  %v10287_v14 = vpack.c.bf16 %v7612_v22, %v7638_v30 }
 0x881   : > { %3077 = vmatpush1.bf16.msra.mxu1 %v10284_v18  ;;  %v7875_v25 = vmul.f32 %v2713_v11, %v10279_v5  ;;  %v2948_v16 = vpack.c.bf16 %v2604_v21, %v2600_v63  ;;  %v2623_v35 = vpop.permute.xlu0 %2622  ;;  %v2951_v28 = vpack.c.bf16 %v2607_v41, %v2603_v58  ;;  %v2955_v40 = vpack.c.bf16 %v7802_v48, %v7764_v13  ;;  %v10290_v63 = vld [vmem:[#allocation94_spill] sm:$0xff] }
 0x882   : > { %3078 = vmatprep.subr.bf16.mxu1 %v2949_v7  ;;  %3183 = vmatpush1.bf16.msra.mxu0 %v10287_v14  ;;  %v7880_v47 = vmul.f32 %v2709_v42, %v10285_v59  ;;  %v2704_v36 = vsel %vm1119_vm15, %v10272_v6, %v10288_v20  ;;  %v2950_v7 = vpack.c.bf16 %v2606_v0, %v2602_v3  ;;  %v10289_v42 = vld [vmem:[#allocation99_spill] sm:$0xff] }
 0x883   : > { %v2651_v22 = vsel %vm1086_vm14, %v7501_v9, %v2623_v35  ;;  %v2665_v30 = vmul.f32 %v2650_v24, %v5468_v50  ;;  %v2647_v11 = vsel %vm1086_vm14, %v2623_v35, %v7505_v10  ;;  %v2637_v48 = vpop.permute.xlu1 %2636  ;;  %3184 = vmatprep.subr.bf16.mxu0 %v2951_v28  ;;  %v2716_v6 = vsel %vm1119_vm15, %v10288_v20, %v10274_v52  ;;  %v10292_v28 = vld [vmem:[#allocation55_spill] sm:$0xff]  ;;  %v10293_v20 = vld [vmem:[#allocation80_spill] sm:$0xff] }
 0x884   : > { %v2669_v13 = vmul.f32 %v2651_v22, %v5468_v50  ;;  %v2642_v0 = vsel %vm1086_vm14, %v10289_v42, %v2637_v48  ;;  %v2654_v26 = vsel %vm1086_vm14, %v2637_v48, %v10286_v43  ;;  %v2705_v58 = vsel %vm1119_vm15, %v10280_v2, %v10290_v63 }
 0x885   : > { %3079 = vmatpush1.bf16.msra.mxu1 %v2948_v16  ;;  %v2646_v52 = vsel %vm1086_vm14, %v2621_v46, %v10289_v42  ;;  %v2639_v21 = vpop.permute.xlu0 %2638  ;;  %v2670_v18 = vmul.f32 %v2647_v11, %v5517_v38  ;;  %v2664_v46 = vmul.f32 %v2654_v26, %v10265_v53  ;;  %v2667_v43 = vmul.f32 %v2642_v0, %v10267_v8  ;;  %v10298_v42 = vld [vmem:[#allocation96_spill] sm:$0xff] }
 0x886   : > { %3080 = vmatprep.subr.bf16.mxu1 %v2953_v54  ;;  %3185 = vmatpush1.bf16.msra.mxu0 %v2950_v7  ;;  %v2957_v41 = vpack.c.bf16 %v2669_v13, %v2665_v30  ;;  %v2717_v54 = vsel %vm1119_vm15, %v10290_v63, %v10283_v15  ;;  %v2643_v3 = vsel %vm1086_vm14, %v7505_v10, %v2639_v21  ;;  %v10291_v15 = vld [vmem:[#allocation53_spill] sm:$0xff]  ;;  %v10294_v7 = vld [vmem:[#allocation71_spill] sm:$0xff]  ;;  %v10299_v26 = vld [vmem:[#allocation108_spill] sm:$0xff] }
 0x887   : > { %3186 = vmatprep.subr.bf16.mxu0 %v2955_v40  ;;  %v2655_v2 = vsel %vm1086_vm14, %v2639_v21, %v7501_v9  ;;  %v2671_v14 = vmul.f32 %v2643_v3, %v10267_v8  ;;  %v7928_v16 = vpop.permute.xlu1 %2864  ;;  %v7931_v35 = vmul.f32 %v2704_v36, %v10291_v15  ;;  %v7934_v10 = vmul.f32 %v2716_v6, %v10292_v28  ;;  %v10295_v13 = vld [vmem:[#allocation109_spill] sm:$0xff]  ;;  %v10297_v6 = vld [vmem:[#allocation107_spill] sm:$0xff] }
 0x888   : > { %v2668_v24 = vmul.f32 %v2655_v2, %v10265_v53  ;;  %v2666_v40 = vmul.f32 %v2646_v52, %v5517_v38  ;;  %v7941_v9 = vmul.f32 %v2705_v58, %v10291_v15  ;;  %v2727_v11 = vmul.f32 %v2717_v54, %v10292_v28  ;;  %v10300_v21 = vld [vmem:[#allocation59_spill] sm:$0xff]  ;;  %v10301_v54 = vld [vmem:[#allocation78_spill] sm:$0xff] }
 0x889   : > { %3081 = vmatpush1.bf16.msra.mxu1 %v2952_v23  ;;  %v2777_v23 = vsel %vm1152_vm0, %v10294_v7, %v10293_v20  ;;  %v7947_v22 = vpop.permute.xlu0 %2866  ;;  %v2959_v30 = vpack.c.bf16 %v2671_v14, %v2667_v43  ;;  %v2773_v55 = vsel %vm1152_vm0, %v10293_v20, %v10295_v13  ;;  %v2772_v0 = vsel %vm1152_vm0, %v10298_v42, %v10297_v6  ;;  %v10307_v20 = vld [vmem:[#allocation110_spill] sm:$0xff] }
 0x88a   : > { %3082 = vmatprep.subr.bf16.mxu1 %v2957_v41  ;;  %3187 = vmatpush1.bf16.msra.mxu0 %v2954_v31  ;;  %v2956_v36 = vpack.c.bf16 %v2668_v24, %v2664_v46  ;;  %v2769_v31 = vsel %vm1152_vm0, %v10295_v13, %v10296_v44  ;;  %v2958_v48 = vpack.c.bf16 %v2670_v18, %v2666_v40  ;;  %v10304_v24 = vld [vmem:[#allocation58_spill] sm:$0xff] }
 0x88b   : > { %v2776_v63 = vsel %vm1152_vm0, %v10299_v26, %v10298_v42  ;;  %v2685_v58 = vpop.permute.xlu1 %2684  ;;  %3188 = vmatprep.subr.bf16.mxu0 %v2959_v30  ;;  %v2969_v52 = vpack.c.bf16 %v7880_v47, %v7865_v12  ;;  %v7969_v41 = vmul.f32 %v2777_v23, %v10300_v21  ;;  %v2768_v18 = vsel %vm1152_vm0, %v10297_v6, %v10301_v54  ;;  %v10303_v47 = vld [vmem:[#allocation56_spill] sm:$0xff]  ;;  %v10309_v30 = vld [vmem:[#allocation89_spill] sm:$0xff] }
 0x88c   : > { %v2781_v3 = vsel %vm1152_vm0, %v10296_v44, %v10294_v7  ;;  %v10302_v2 = vpack.c.bf16 %v7081_v32, %v7077_v33  ;;  %v2970_v12 = vpack.c.bf16 %v7941_v9, %v7931_v35  ;;  %v7985_v46 = vmul.f32 %v2773_v55, %v10303_v47  ;;  %v10306_v9 = vld [vmem:[#allocation81_spill] sm:$0xff]  ;;  %v10310_v55 = vld [vmem:[#allocation112_spill] sm:$0xff]  ;;  %v10311_v44 = vld [vmem:[#allocation90_spill] sm:$0xff] }
 0x88d   : > { %3083 = vmatpush1.bf16.msra.mxu1 %v2956_v36  ;;  %v2780_v43 = vsel %vm1152_vm0, %v10301_v54, %v10299_v26  ;;  %v7992_v14 = vmul.f32 %v2769_v31, %v10304_v24  ;;  %v10305_v40 = vpack.c.bf16 %v7089_v29, %v7085_v1  ;;  %v7997_v33 = vpop.permute.xlu0 %2890  ;;  %v8000_v32 = vmul.f32 %v2776_v63, %v10300_v21  ;;  %v10308_v1 = vld [vmem:[#allocation60_spill] sm:$0xff]  ;;  %v10315_v63 = vld [vmem:[#allocation86_spill] sm:$0xff] }
 0x88e   : > { %3084 = vmatprep.subr.bf16.mxu1 %v10302_v2  ;;  %3189 = vmatpush1.bf16.msra.mxu0 %v2958_v48  ;;  %v8003_v35 = vmul.f32 %v2772_v0, %v10303_v47  ;;  %v2840_v7 = vsel %vm1185_vm1, %v10307_v20, %v10306_v9  ;;  %v2971_v23 = vpack.c.bf16 %v2727_v11, %v7934_v10  ;;  %v10313_v42 = vld [vmem:[#allocation116_spill] sm:$0xff]  ;;  %v10316_v54 = vld [vmem:[#allocation102_spill] sm:$0xff]  ;;  %v10319_v2 = vld [vmem:[#allocation73_spill] sm:$0xff] }
 0x88f   : > { %3190 = vmatprep.subr.bf16.mxu0 %v10305_v40  ;;  %v8011_v36 = vmul.f32 %v2768_v18, %v10304_v24  ;;  %v8014_v29 = vmul.f32 %v2781_v3, %v10308_v1  ;;  %v2836_v13 = vsel %vm1185_vm1, %v10306_v9, %v10309_v30  ;;  %v2841_v31 = vsel %vm1185_vm1, %v10311_v44, %v10310_v55  ;;  %v2701_v48 = vpop.permute.xlu1 %2700  ;;  %v10320_v40 = vld [vmem:[#allocation77_spill] sm:$0xff] }
 0x890   : > { %v10312_v10 = vpack.c.bf16 %v6995_v57, %v6993_v39  ;;  %v8030_v6 = vmul.f32 %v2780_v43, %v10308_v1  ;;  %v2710_v0 = vsel %vm1119_vm15, %v2685_v58, %v10313_v42  ;;  %v10314_v26 = vpack.c.bf16 %v7294_v37, %v7285_v56  ;;  %v10318_v57 = vld [vmem:[#allocation62_spill] sm:$0xff]  ;;  %v10321_v9 = vld [vmem:[#allocation93_spill] sm:$0xff]  ;;  %v10325_v39 = vld [vmem:[#allocation119_spill] sm:$0xff] }
 0x891   : > { %v10317_v18 = vpack.c.bf16 %v10315_v63, %v10316_v54  ;;  %v8044_v3 = vmul.f32 %v2840_v7, %v10318_v57  ;;  %v2837_v43 = vsel %vm1185_vm1, %v10310_v55, %v10319_v2  ;;  %v2687_v56 = vpop.permute.xlu0 %2686  ;;  %v2977_v37 = vpack.c.bf16 %v7985_v46, %v8003_v35  ;;  %v10324_v7 = vld [vmem:[#allocation118_spill] sm:$0xff] }
 0x892   : > { %3085 = vmatpush1.bf16.msra.mxu1 %v10312_v10  ;;  %v10322_v10 = vpack.c.bf16 %v10320_v40, %v10321_v9  ;;  %v8059_v54 = vmul.f32 %v2841_v31, %v10318_v57  ;;  %v2715_v55 = vsel %vm1119_vm15, %v10325_v39, %v2687_v56  ;;  %v10326_v40 = vld [vmem:[#allocation117_spill] sm:$0xff]  ;;  %v2729_v46 = vmul.f32 %v2710_v0, %v10285_v59  ;;  %v10328_v31 = vld [vmem:[#allocation103_spill] sm:$0xff] }
 0x893   : > { %3086 = vmatprep.subr.bf16.mxu1 %v10314_v26  ;;  %3191 = vmatpush1.bf16.msra.mxu0 %v10317_v18  ;;  %v10323_v26 = vld [vmem:[#allocation57_spill] sm:$0xff]  ;;  %v2711_v18 = vsel %vm1119_vm15, %v2687_v56, %v10324_v7  ;;  %v2714_v9 = vsel %vm1119_vm15, %v10326_v40, %v2685_v58  ;;  %v2979_v4 = vpack.c.bf16 %v8014_v29, %v8030_v6  ;;  %v10330_v0 = vld [vmem:[#allocation87_spill] sm:$0xff] }
 0x894   : > { %3192 = vmatprep.subr.bf16.mxu0 %v10322_v10  ;;  %v8056_v63 = vmul.f32 %v2836_v13, %v10323_v26  ;;  %v2733_v35 = vmul.f32 %v2711_v18, %v10285_v59  ;;  %v2749_v13 = vpop.permute.xlu1 %2748  ;;  %v10327_v10 = vld [vmem:[#allocation105_spill] sm:$0xff]  ;;  %v8078_v8 = vmul.f32 %v2837_v43, %v10323_v26  ;;  %v2706_v56 = vsel %vm1119_vm15, %v10313_v42, %v2701_v48  ;;  %v10331_v18 = vld [vmem:[#allocation104_spill] sm:$0xff] }
 0x895   : > { %v10329_v11 = vpack.c.bf16 %v10327_v10, %v10328_v31  ;;  %v2718_v58 = vsel %vm1119_vm15, %v2701_v48, %v10326_v40  ;;  %v10332_v59 = vpack.c.bf16 %v10330_v0, %v10331_v18  ;;  %v2732_v42 = vmul.f32 %v2715_v55, %v10279_v5  ;;  %v2703_v43 = vpop.permute.xlu0 %2702  ;;  %v10335_v10 = vld [vmem:[#allocation61_spill] sm:$0xff] }
 0x896   : > { %v2973_v48 = vpack.c.bf16 %v2733_v35, %v2729_v46  ;;  %v2707_v40 = vsel %vm1119_vm15, %v10324_v7, %v2703_v43  ;;  %v2731_v55 = vmul.f32 %v2718_v58, %v10292_v28  ;;  %v10336_v7 = vld [vmem:[#allocation64_spill] sm:$0xff] }
 0x897   : > { %3087 = vmatpush1.bf16.msra.mxu1 %v10329_v11  ;;  %3193 = vmatpush1.bf16.msra.mxu0 %v10332_v59  ;;  %v10333_v11 = vld [vmem:[#allocation65_spill] sm:$0xff]  ;;  %v2728_v59 = vmul.f32 %v2714_v9, %v10279_v5  ;;  %v10334_v9 = vpack.c.bf16 %v7875_v25, %v7834_v34  ;;  %v2845_v34 = vsel %vm1185_vm1, %v10336_v7, %v10311_v44 }
 0x898   : > { %3088 = vmatprep.subr.bf16.mxu1 %v2969_v52  ;;  %v2832_v29 = vsel %vm1185_vm1, %v10309_v30, %v10333_v11  ;;  %v2844_v6 = vsel %vm1185_vm1, %v10333_v11, %v10307_v20  ;;  %3194 = vmatprep.subr.bf16.mxu0 %v2971_v23  ;;  %v2984_v52 = vpack.c.bf16 %v8059_v54, %v8044_v3  ;;  %v2765_v35 = vpop.permute.xlu1 %2764 }
 0x899   : > { %v2719_v30 = vsel %vm1119_vm15, %v2703_v43, %v10325_v39  ;;  %v2730_v20 = vmul.f32 %v2706_v56, %v10291_v15  ;;  %v2734_v23 = vmul.f32 %v2707_v40, %v10291_v15  ;;  %v8115_v31 = vmul.f32 %v2832_v29, %v10335_v10  ;;  %v10337_v56 = vld [vmem:[#allocation82_spill] sm:$0xff]  ;;  %v2751_v18 = vpop.permute.xlu0 %2750  ;;  %v10338_v29 = vld [vmem:[#allocation63_spill] sm:$0xff]  ;;  %v10339_v40 = vld [vmem:[#allocation120_spill] sm:$0xff] }
 0x89a   : > { %v2735_v46 = vmul.f32 %v2719_v30, %v10292_v28  ;;  %v2833_v39 = vsel %vm1185_vm1, %v10319_v2, %v10336_v7  ;;  %v2774_v58 = vsel %vm1152_vm0, %v2749_v13, %v10337_v56  ;;  %v2972_v25 = vpack.c.bf16 %v2732_v42, %v2728_v59  ;;  %v10340_v30 = vld [vmem:[#allocation100_spill] sm:$0xff] }
 0x89b   : > { %3089 = vmatpush1.bf16.msra.mxu1 %v10334_v9  ;;  %3195 = vmatpush1.bf16.msra.mxu0 %v2970_v12  ;;  %v2974_v0 = vpack.c.bf16 %v2734_v23, %v2730_v20  ;;  %v2851_v43 = vmul.f32 %v2844_v6, %v10338_v29  ;;  %v2778_v2 = vsel %vm1152_vm0, %v10339_v40, %v2749_v13  ;;  %v10341_v12 = vld [vmem:[#allocation83_spill] sm:$0xff] }
 0x89c   : > { %3090 = vmatprep.subr.bf16.mxu1 %v2973_v48  ;;  %v2975_v11 = vpack.c.bf16 %v2735_v46, %v2731_v55  ;;  %v2775_v48 = vsel %vm1152_vm0, %v2751_v18, %v10340_v30  ;;  %v2779_v9 = vsel %vm1152_vm0, %v10341_v12, %v2751_v18  ;;  %v2793_v44 = vmul.f32 %v2774_v58, %v10303_v47  ;;  %v2813_v59 = vpop.permute.xlu1 %2812  ;;  %v10342_v23 = vld [vmem:[#allocation111_spill] sm:$0xff] }
 0x89d   : > { %v2770_v42 = vsel %vm1152_vm0, %v10337_v56, %v2765_v35  ;;  %v2797_v6 = vmul.f32 %v2775_v48, %v10303_v47  ;;  %v8144_v13 = vmul.f32 %v2833_v39, %v10335_v10  ;;  %v2855_v20 = vmul.f32 %v2845_v34, %v10338_v29  ;;  %v10343_v46 = vld [vmem:[#allocation79_spill] sm:$0xff]  ;;  %v2767_v58 = vpop.permute.xlu0 %2766  ;;  %v8179_v48 = vld [vmem:[%s9638_s4 + $0x28] ss:$0 sm:$0xff] }
 0x89e   : > { %3196 = vmatprep.subr.bf16.mxu0 %v2975_v11  ;;  %v2782_v55 = vsel %vm1152_vm0, %v2765_v35, %v10339_v40  ;;  %v2900_v7 = vsel %vm1218_vm2, %v10343_v46, %v10342_v23  ;;  %v2796_v56 = vmul.f32 %v2779_v9, %v10300_v21  ;;  %v2985_v39 = vpack.c.bf16 %v8078_v8, %v8056_v63 }
 0x89f   : > { %3091 = vmatpush1.bf16.msra.mxu1 %v2972_v25  ;;  %3197 = vmatpush1.bf16.msra.mxu0 %v2974_v0  ;;  %v2981_v25 = vpack.c.bf16 %v2797_v6, %v2793_v44  ;;  %v2792_v34 = vmul.f32 %v2778_v2, %v10300_v21  ;;  %v2794_v18 = vmul.f32 %v2770_v42, %v10304_v24  ;;  %v10348_v42 = vld [vmem:[#allocation91_spill] sm:$0xff]  ;;  %v10349_v6 = vld [vmem:[#allocation85_spill] sm:$0xff] }
 0x8a0   : > { %3092 = vmatprep.subr.bf16.mxu1 %v2977_v37  ;;  %3198 = vmatprep.subr.bf16.mxu0 %v2979_v4  ;;  %v2771_v37 = vsel %vm1152_vm0, %v10340_v30, %v2767_v58  ;;  %v2783_v35 = vsel %vm1152_vm0, %v2767_v58, %v10341_v12  ;;  %v2795_v0 = vmul.f32 %v2782_v55, %v10308_v1  ;;  %v10344_v4 = vld [vmem:[#allocation101_spill] sm:$0xff]  ;;  %v2829_v40 = vpop.permute.xlu1 %2828 }
 0x8a1   : > { %v2838_v11 = vsel %vm1185_vm1, %v2813_v59, %v10344_v4  ;;  %v2798_v8 = vmul.f32 %v2771_v37, %v10304_v24  ;;  %v2799_v63 = vmul.f32 %v2783_v35, %v10308_v1  ;;  %v10345_v2 = vpack.c.bf16 %v7969_v41, %v8000_v32  ;;  %10346 = vst [vmem:[#allocation84_spill] sm:$0xff] %v8179_v48  ;;  %v10350_v58 = vld [vmem:[#allocation121_spill] sm:$0xff] }
 0x8a2   : > { %v2986_v30 = vpack.c.bf16 %v8144_v13, %v8115_v31  ;;  %v2913_v12 = vmul.f32 %v8179_v48, %v2900_v7  ;;  %v10347_v9 = vpack.c.bf16 %v7992_v14, %v8011_v36  ;;  %v2987_v44 = vpack.c.bf16 %v2855_v20, %v2851_v43  ;;  %v2815_v13 = vpop.permute.xlu0 %2814  ;;  %v10352_v36 = vld [vmem:[#allocation123_spill] sm:$0xff] }
 0x8a3   : > { %3093 = vmatpush1.bf16.msra.mxu1 %v10345_v2  ;;  %v2901_v41 = vsel %vm1218_vm2, %v10349_v6, %v10348_v42  ;;  %v2980_v32 = vpack.c.bf16 %v2796_v56, %v2792_v34  ;;  %v2982_v31 = vpack.c.bf16 %v2798_v8, %v2794_v18  ;;  %v2983_v55 = vpack.c.bf16 %v2799_v63, %v2795_v0 }
 0x8a4   : > { %3094 = vmatprep.subr.bf16.mxu1 %v2981_v25  ;;  %3199 = vmatpush1.bf16.msra.mxu0 %v10347_v9  ;;  %v2842_v37 = vsel %vm1185_vm1, %v10350_v58, %v2813_v59  ;;  %v2857_v7 = vmul.f32 %v2838_v11, %v10323_v26  ;;  %v10351_v25 = vld [vmem:[#allocation122_spill] sm:$0xff]  ;;  %v2843_v43 = vsel %vm1185_vm1, %v10352_v36, %v2815_v13  ;;  %v2889_v34 = vpop.permute.xlu1 %2888 }
 0x8a5   : > { %v2839_v14 = vsel %vm1185_vm1, %v2815_v13, %v10351_v25  ;;  %v2834_v20 = vsel %vm1185_vm1, %v10344_v4, %v2829_v40  ;;  %v2846_v56 = vsel %vm1185_vm1, %v2829_v40, %v10350_v58  ;;  %3200 = vmatprep.subr.bf16.mxu0 %v2983_v55  ;;  %v2917_v18 = vmul.f32 %v8179_v48, %v2901_v41  ;;  %v8249_v55 = vld [vmem:[%s9638_s4 + $0x20] ss:$0 sm:$0xff] }
 0x8a6   : > { %v2861_v59 = vmul.f32 %v2839_v14, %v10323_v26  ;;  %v2905_v35 = vsel %vm1218_vm2, %v7947_v22, %v10349_v6  ;;  %v2908_v0 = vsel %vm1218_vm2, %v2889_v34, %v7928_v16  ;;  %v2909_v4 = vsel %vm1218_vm2, %v7997_v33, %v7947_v22  ;;  %v2831_v63 = vpop.permute.xlu0 %2830  ;;  %10353 = vst [vmem:[#allocation75_spill] sm:$0xff] %v8249_v55 }
 0x8a7   : > { %3095 = vmatpush1.bf16.msra.mxu1 %v2980_v32  ;;  %v2856_v11 = vmul.f32 %v2842_v37, %v10318_v57  ;;  %v2860_v8 = vmul.f32 %v2843_v43, %v10318_v57  ;;  %v2858_v2 = vmul.f32 %v2834_v20, %v10335_v10  ;;  %v2859_v9 = vmul.f32 %v2846_v56, %v10338_v29  ;;  %v10381_v57 = vld [vmem:[#allocation46_spill] sm:$0xff] }
 0x8a8   : > { %3096 = vmatprep.subr.bf16.mxu1 %v2985_v39  ;;  %3201 = vmatpush1.bf16.msra.mxu0 %v2982_v31  ;;  %v2989_v40 = vpack.c.bf16 %v2861_v59, %v2857_v7  ;;  %v2835_v39 = vsel %vm1185_vm1, %v10351_v25, %v2831_v63  ;;  %v2847_v6 = vsel %vm1185_vm1, %v2831_v63, %v10352_v36  ;;  %v2877_v13 = vpop.permute.xlu1 %2876  ;;  %v4611_v36 = vld [vmem:[#allocation14] ss:$12 sps:$4 sm:$0xff]  }
 0x8a9   : > { %3202 = vmatprep.subr.bf16.mxu0 %v2987_v44  ;;  %v2896_v22 = vsel %vm1218_vm2, %v10342_v23, %v2889_v34  ;;  %v8234_v44 = vld [vmem:[%s9638_s4 + $0x38] ss:$0 sm:$0xff]  ;;  %v2862_v32 = vmul.f32 %v2835_v39, %v10335_v10  ;;  %v2863_v31 = vmul.f32 %v2847_v6, %v10338_v29  ;;  %v2904_v23 = vsel %vm1218_vm2, %v7928_v16, %v10343_v46  ;;  %v4626_v46 = vld [vmem:[%s9638_s4 + $0x30] ss:$0 sm:$0xff] }
 0x8aa   : > { %v2915_v41 = vmul.f32 %v8234_v44, %v2908_v0  ;;  %v2916_v58 = vmul.f32 %v8249_v55, %v2905_v35  ;;  %v2897_v37 = vsel %vm1218_vm2, %v10348_v42, %v7997_v33  ;;  %v2919_v3 = vmul.f32 %v8234_v44, %v2909_v4  ;;  %v2887_v7 = vpop.permute.xlu0 %2886  ;;  %v4614_v42 = vld [vmem:[#allocation14 + $0x1c] ss:$12 sps:$4 sm:$0xff]  }
 0x8ab   : > { %3097 = vmatpush1.bf16.msra.mxu1 %v2984_v52  ;;  %v2988_v54 = vpack.c.bf16 %v2860_v8, %v2856_v11  ;;  %v2990_v52 = vpack.c.bf16 %v2862_v32, %v2858_v2  ;;  %v2991_v16 = vpack.c.bf16 %v2863_v31, %v2859_v9  ;;  %v2914_v25 = vmul.f32 %v4626_v46, %v2896_v22  ;;  %v4616_v8 = vld [vmem:[#allocation14 + $0x18] ss:$12 sps:$4 sm:$0xff]  }
 0x8ac   : > { %3098 = vmatprep.subr.bf16.mxu1 %v2989_v40  ;;  %3203 = vmatpush1.bf16.msra.mxu0 %v2986_v30  ;;  %v2993_v14 = vpack.c.bf16 %v2917_v18, %v2913_v12  ;;  %v2912_v43 = vmul.f32 %v8249_v55, %v2904_v23  ;;  %v2885_v20 = vpop.permute.xlu1 %2884  ;;  %v2995_v33 = vpack.c.bf16 %v2919_v3, %v2915_v41 }
 0x8ad   : > { %3204 = vmatprep.subr.bf16.mxu0 %v2991_v16  ;;  %v2918_v30 = vmul.f32 %v4626_v46, %v2897_v37  ;;  %v2902_v12 = vsel %vm1218_vm2, %v2877_v13, %v2885_v20 }
 0x8ae   : > { %v2992_v56 = vpack.c.bf16 %v2916_v58, %v2912_v43  ;;  %v2871_v59 = vpop.permute.xlu0 %2870  ;;  %v2921_v63 = vmul.f32 %v8179_v48, %v2902_v12 }
 0x8af   : > { %3099 = vmatpush1.bf16.msra.mxu1 %v2988_v54  ;;  %v2994_v34 = vpack.c.bf16 %v2918_v30, %v2914_v25 }
 0x8b0   : > { %3121 = vmatprep.subr.bf16.mxu1 %v2993_v14  ;;  %3205 = vmatpush1.bf16.msra.mxu0 %v2990_v52  ;;  %v2869_v35 = vpop.permute.xlu1 %2868  ;;  %v10354_v52 = vmov 0   ;;  %v4617_v14 = vld [vmem:[#allocation14 + $0x8] ss:$12 sps:$4 sm:$0xff]  }
 0x8b1   : > { %3227 = vmatprep.subr.bf16.mxu0 %v2995_v33  ;;  %v2906_v18 = vsel %vm1218_vm2, %v2869_v35, %v2877_v13 }
 0x8b2   : > { %3101 = vmatmul.mubr.bf16.vlgmr.msra.gmra.mrb[20].mxu1 %v4611_v36  ;;  %v2879_v0 = vpop.permute.xlu0 %2878  ;;  %v2920_v40 = vmul.f32 %v8249_v55, %v2906_v18 }
 0x8b3   : > { %3122 = vmatpush1.bf16.msra.mxu1 %v2992_v56  ;;  %3207 = vmatmul.mubr.bf16.vlgmr.msra.gmra.mrb[20].mxu0 %v4611_v36  ;;  %v2903_v4 = vsel %vm1218_vm2, %v2879_v0, %v2887_v7  ;;  %v2907_v11 = vsel %vm1218_vm2, %v2871_v59, %v2879_v0 }
 0x8b4   : > { %3228 = vmatpush1.bf16.msra.mxu0 %v2994_v34  ;;  %3110 = vmatprep.mubr.bf16.mxu1 %v4614_v42  ;;  %v2924_v2 = vmul.f32 %v8249_v55, %v2907_v11  ;;  %v2925_v9 = vmul.f32 %v8179_v48, %v2903_v4  ;;  %v2893_v39 = vpop.permute.xlu1 %2892 }
 0x8b5   : > { %3216 = vmatprep.mubr.bf16.mxu0 %v4614_v42  ;;  %v2898_v6 = vsel %vm1218_vm2, %v2885_v20, %v2893_v39  ;;  %v2910_v22 = vsel %vm1218_vm2, %v2893_v39, %v2869_v35 }
 0x8b6   : > { %v2996_v41 = vpack.c.bf16 %v2924_v2, %v2920_v40  ;;  %v2895_v32 = vpop.permute.xlu0 %2894  ;;  %v2997_v31 = vpack.c.bf16 %v2925_v9, %v2921_v63  ;;  %v2922_v13 = vmul.f32 %v4626_v46, %v2898_v6  ;;  %v2923_v37 = vmul.f32 %v8234_v44, %v2910_v22 }
 0x8b7   : > { %v2899_v23 = vsel %vm1218_vm2, %v2887_v7, %v2895_v32  ;;  %v2911_v58 = vsel %vm1218_vm2, %v2895_v32, %v2871_v59 }
 0x8b8   : > { %v2926_v3 = vmul.f32 %v4626_v46, %v2899_v23  ;;  %v2927_v54 = vmul.f32 %v8234_v44, %v2911_v58  ;;  %3123 = vmatprep.subr.bf16.mxu1 %v2997_v31  ;;  %v4618_v44 = vld [vmem:[#allocation14 + $0x20] ss:$12 sps:$4 sm:$0xff]  }
 0x8b9   : > { %3124 = vmatpush1.bf16.msra.mxu1 %v2996_v41 }
 0x8ba   : > { %3111 = vmatmul.mubr.bf16.gmra.mrb[24].mxu1 %v4616_v8  ;;  %v2998_v16 = vpack.c.bf16 %v2926_v3, %v2922_v13  ;;  %v2999_v25 = vpack.c.bf16 %v2927_v54, %v2923_v37 }
 0x8bb   : > { %3217 = vmatmul.mubr.bf16.gmra.mrb[24].mxu0 %v4616_v8  ;;  %3153 = vmatprep.mubr.bf16.mxu1 %v10354_v52 }
 0x8bc   : > { %3259 = vmatprep.mubr.bf16.mxu0 %v10354_v52  ;;  %3229 = vmatprep.subr.bf16.mxu0 %v2999_v25 }
 0x8bd   : > { %3230 = vmatpush1.bf16.msra.mxu0 %v2998_v16 }
 0x8c2   : > { %4376 = vmatmul.mubr.msk.bf16.vlgmr.msra.gmra.mrb[20].mxu1 %vm2181_vm4, %v4617_v14 }
 0x8c3   : > { %4378 = vmatmul.mubr.msk.bf16.vlgmr.msra.gmra.mrb[20].mxu0 %vm2181_vm4, %v4617_v14  ;;  %3163 = vmatprep.mubr.bf16.mxu1 %v10354_v52 }
 0x8c4   : > { %3269 = vmatprep.mubr.bf16.mxu0 %v10354_v52  ;;  %v3015_v7 = vpop.permute.xlu1 %3014 }
 0x8c6   : > { %v8291_v46 = vpop.permute.xlu0 %3019 }
 0x8c8   : > { %v8443_v14 = vpop.permute.xlu1 %3024 }
 0x8ca   : > { %4377 = vmatmul.mubr.msk.bf16.gmra.mrb[24].mxu1 %vm2181_vm4, %v4618_v44 }
 0x8cb   : > { %4379 = vmatmul.mubr.msk.bf16.gmra.mrb[24].mxu0 %vm2181_vm4, %v4618_v44  ;;  %v8447_v44 = vpop.permute.xlu0 %3029 }
 0x995   : > { %v3155_v36 = vpop.f32.mrb[20].mxu1 }
 0x996   : > { %v4441_v43 = vadd.f32 %v3155_v36, %v3015_v7  ;;  %v3157_v20 = vpop.f32.mrb[21].mxu1  ;;  %v3261_v33 = vpop.f32.mrb[20].mxu0 }
 0x997   : > { %v4449_v30 = vadd.f32 %v3261_v33, %v3015_v7  ;;  %v3159_v42 = vpop.f32.mrb[22].mxu1  ;;  %v3263_v56 = vpop.f32.mrb[21].mxu0  ;;  %v4442_v13 = vadd.f32 %v3157_v20, %v3015_v7 }
 0x998   : > { %v8293_v59 = vmax.f32 %v4441_v43, 0.0  ;;  %v4443_v34 = vadd.f32 %v3159_v42, %v8291_v46  ;;  %v3161_v35 = vpop.f32.mrb[23].mxu1  ;;  %v3265_v12 = vpop.f32.mrb[22].mxu0  ;;  %v4450_v37 = vadd.f32 %v3263_v56, %v3015_v7 }
 0x999   : > { %v4451_v18 = vadd.f32 %v3265_v12, %v8291_v46  ;;  %v3267_v0 = vpop.f32.mrb[23].mxu0  ;;  %v8301_v11 = vmax.f32 %v4449_v30, 0.0  ;;  %v4444_v23 = vadd.f32 %v3161_v35, %v8291_v46  ;;  %v8386_v58 = vmax.f32 %v4442_v13, 0.0 }
 0x99a   : > { %10355 = vst [vmem:[#allocation113_spill] sm:$0xff] %v8293_v59  ;;  %v8297_v4 = vmax.f32 %v4443_v34, 0.0  ;;  %3296 = vrot.lane.b32.xlu1 %v8293_v59, %s4864_s23  ;;  %v4452_v54 = vadd.f32 %v3267_v0, %v8291_v46  ;;  %v8395_v16 = vmax.f32 %v4450_v37, 0.0 }
 0x99b   : > { %10357 = vst [vmem:[#allocation115_spill] sm:$0xff] %v8301_v11  ;;  %v8303_v8 = vmax.f32 %v4451_v18, 0.0  ;;  %10359 = vst [vmem:[#allocation67_spill] sm:$0xff] %v8386_v58  ;;  %v8390_v3 = vmax.f32 %v4444_v23, 0.0 }
 0x99c   : > { %10356 = vst [vmem:[#allocation114_spill] sm:$0xff] %v8297_v4  ;;  %3298 = vrot.lane.b32.xlu0 %v8297_v4, %s4864_s23  ;;  %10361 = vst [vmem:[#allocation74_spill] sm:$0xff] %v8395_v16  ;;  %v8399_v25 = vmax.f32 %v4452_v54, 0.0 }
 0x99d   : > { %10358 = vst [vmem:[#allocation95_spill] sm:$0xff] %v8303_v8  ;;  %v8309_v40 = vpop.f32.mrb[24].mxu1  ;;  %10360 = vst [vmem:[#allocation106_spill] sm:$0xff] %v8390_v3 }
 0x99e   : > { %v8313_v9 = vpop.f32.mrb[25].mxu1  ;;  %3360 = vrot.lane.b32.xlu1 %v8293_v59, %s4863_s24  ;;  %v8317_v39 = vpop.f32.mrb[24].mxu0  ;;  %10362 = vst [vmem:[#allocation88_spill] sm:$0xff] %v8399_v25  ;;  %v4445_v7 = vadd.f32 %v8309_v40, %v8443_v14 }
 0x99f   : > { %v8319_v6 = vpop.f32.mrb[26].mxu1  ;;  %v8321_v22 = vpop.f32.mrb[25].mxu0  ;;  %v4453_v56 = vadd.f32 %v8317_v39, %v8443_v14 }
 0x9a0   : > { %v8323_v41 = vpop.f32.mrb[27].mxu1  ;;  %v8325_v32 = vpop.f32.mrb[26].mxu0  ;;  %3362 = vrot.lane.b32.xlu0 %v8297_v4, %s4863_s24  ;;  %v4447_v36 = vadd.f32 %v8319_v6, %v8447_v44  ;;  %v8463_v20 = vmax.f32 %v4445_v7, 0.0  ;;  %v4454_v24 = vadd.f32 %v8321_v22, %v8443_v14 }
 0x9a1   : > { %v8329_v31 = vpop.f32.mrb[27].mxu0  ;;  %v4455_v35 = vadd.f32 %v8325_v32, %v8447_v44  ;;  %v8487_v18 = vmax.f32 %v4453_v56, 0.0  ;;  %v4448_v48 = vadd.f32 %v8323_v41, %v8447_v44 }
 0x9a2   : > { %3312 = vrot.lane.b32.xlu1 %v8301_v11, %s4864_s23  ;;  %10363 = vst [vmem:[#allocation66_spill] sm:$0xff] %v8463_v20  ;;  %v8469_v30 = vmax.f32 %v4447_v36, 0.0  ;;  %v4456_v41 = vadd.f32 %v8329_v31, %v8447_v44 }
 0x9a3   : > { %10365 = vst [vmem:[#allocation69_spill] sm:$0xff] %v8487_v18  ;;  %v8493_v40 = vmax.f32 %v4455_v35, 0.0 }
 0x9a4   : > { %3314 = vrot.lane.b32.xlu0 %v8303_v8, %s4864_s23  ;;  %10364 = vst [vmem:[#allocation68_spill] sm:$0xff] %v8469_v30 }
 0x9a5   : > { %10366 = vst [vmem:[#allocation70_spill] sm:$0xff] %v8493_v40 }
 0x9a6   : > { %3424 = vrot.lane.b32.xlu1 %v8293_v59, %s4862_s21 }
 0x9a8   : > { %3426 = vrot.lane.b32.xlu0 %v8297_v4, %s4862_s21 }
 0x9aa   : > { %3376 = vrot.lane.b32.xlu1 %v8301_v11, %s4863_s24 }
 0x9ac   : > { %3378 = vrot.lane.b32.xlu0 %v8303_v8, %s4863_s24 }
 0x9ae   : > { %3488 = vrot.lane.b32.xlu1 %v8293_v59, %s4865_s28 }
 0x9b0   : > { %3490 = vrot.lane.b32.xlu0 %v8297_v4, %s4865_s28 }
 0x9b2   : > { %3440 = vrot.lane.b32.xlu1 %v8301_v11, %s4862_s21 }
 0x9b4   : > { %3442 = vrot.lane.b32.xlu0 %v8303_v8, %s4862_s21 }
 0x9b6   : > { %3504 = vrot.lane.b32.xlu1 %v8301_v11, %s4865_s28 }
 0x9b8   : > { %3506 = vrot.lane.b32.xlu0 %v8303_v8, %s4865_s28 }
 0x9ba   : > { %3568 = vrot.lane.b32.xlu1 %v8301_v11, %s4866_s15 }
 0x9bc   : > { %3570 = vrot.lane.b32.xlu0 %v8303_v8, %s4866_s15 }
 0x9be   : > { %3552 = vrot.lane.b32.xlu1 %v8293_v59, %s4866_s15 }
 0x9c0   : > { %3554 = vrot.lane.b32.xlu0 %v8297_v4, %s4866_s15 }
 0x9c2   : > { %3632 = vrot.lane.b32.xlu1 %v8301_v11, %s4867_s12 }
 0x9c4   : > { %3634 = vrot.lane.b32.xlu0 %v8303_v8, %s4867_s12 }
 0x9c6   : > { %3616 = vrot.lane.b32.xlu1 %v8293_v59, %s4867_s12 }
 0x9c8   : > { %3618 = vrot.lane.b32.xlu0 %v8297_v4, %s4867_s12 }
 0x9ca   : > { %3696 = vrot.lane.b32.xlu1 %v8301_v11, %s4868_s22 }
 0x9cc   : > { %3698 = vrot.lane.b32.xlu0 %v8303_v8, %s4868_s22 }
 0x9ce   : > { %3680 = vrot.lane.b32.xlu1 %v8293_v59, %s4868_s22 }
 0x9d0   : > { %3682 = vrot.lane.b32.xlu0 %v8297_v4, %s4868_s22 }
 0x9d2   : > { %3760 = vrot.lane.b32.xlu1 %v8301_v11, %s4870_s16 }
 0x9d4   : > { %3762 = vrot.lane.b32.xlu0 %v8303_v8, %s4870_s16 }
 0x9d6   : > { %3744 = vrot.lane.b32.xlu1 %v8293_v59, %s4870_s16 }
 0x9d8   : > { %3746 = vrot.lane.b32.xlu0 %v8297_v4, %s4870_s16 }
 0x9da   : > { %3304 = vrot.lane.b32.xlu1 %v8386_v58, %s4864_s23 }
 0x9dc   : > { %3306 = vrot.lane.b32.xlu0 %v8390_v3, %s4864_s23 }
 0x9de   : > { %3320 = vrot.lane.b32.xlu1 %v8395_v16, %s4864_s23 }
 0x9e0   : > { %3322 = vrot.lane.b32.xlu0 %v8399_v25, %s4864_s23 }
 0x9e2   : > { %3368 = vrot.lane.b32.xlu1 %v8386_v58, %s4863_s24 }
 0x9e4   : > { %3370 = vrot.lane.b32.xlu0 %v8390_v3, %s4863_s24 }
 0x9e6   : > { %3384 = vrot.lane.b32.xlu1 %v8395_v16, %s4863_s24 }
 0x9e8   : > { %3386 = vrot.lane.b32.xlu0 %v8399_v25, %s4863_s24 }
 0x9ea   : > { %3432 = vrot.lane.b32.xlu1 %v8386_v58, %s4862_s21 }
 0x9ec   : > { %3434 = vrot.lane.b32.xlu0 %v8390_v3, %s4862_s21 }
 0x9ee   : > { %3448 = vrot.lane.b32.xlu1 %v8395_v16, %s4862_s21 }
 0x9f0   : > { %3450 = vrot.lane.b32.xlu0 %v8399_v25, %s4862_s21 }
 0x9f2   : > { %3496 = vrot.lane.b32.xlu1 %v8386_v58, %s4865_s28 }
 0x9f4   : > { %3498 = vrot.lane.b32.xlu0 %v8390_v3, %s4865_s28 }
 0x9f6   : > { %3512 = vrot.lane.b32.xlu1 %v8395_v16, %s4865_s28 }
 0x9f8   : > { %3514 = vrot.lane.b32.xlu0 %v8399_v25, %s4865_s28 }
 0x9fa   : > { %3560 = vrot.lane.b32.xlu1 %v8386_v58, %s4866_s15 }
 0x9fc   : > { %3562 = vrot.lane.b32.xlu0 %v8390_v3, %s4866_s15 }
 0x9fe   : > { %3624 = vrot.lane.b32.xlu1 %v8386_v58, %s4867_s12 }
 0xa00   : > { %3626 = vrot.lane.b32.xlu0 %v8390_v3, %s4867_s12 }
 0xa02   : > { %3576 = vrot.lane.b32.xlu1 %v8395_v16, %s4866_s15 }
 0xa04   : > { %3578 = vrot.lane.b32.xlu0 %v8399_v25, %s4866_s15 }
 0xa06   : > { %3688 = vrot.lane.b32.xlu1 %v8386_v58, %s4868_s22 }
 0xa08   : > { %3690 = vrot.lane.b32.xlu0 %v8390_v3, %s4868_s22 }
 0xa0a   : > { %3640 = vrot.lane.b32.xlu1 %v8395_v16, %s4867_s12 }
 0xa0c   : > { %v8453_v46 = vpop.permute.xlu1 %3296  ;;  %3642 = vrot.lane.b32.xlu0 %v8399_v25, %s4867_s12 }
 0xa0e   : > { %3752 = vrot.lane.b32.xlu1 %v8386_v58, %s4870_s16  ;;  %v8461_v43 = vpop.permute.xlu0 %3298  ;;  %v4446_v58 = vadd.f32 %v8313_v9, %v8443_v14  ;;  %v8599_v9 = vmax.f32 %v4448_v48, 0.0  ;;  %v8614_v48 = vmax.f32 %v4456_v41, 0.0 }
 0xa10   : > { %v8465_v33 = vpop.permute.xlu1 %3360  ;;  %3754 = vrot.lane.b32.xlu0 %v8390_v3, %s4870_s16  ;;  %v8591_v1 = vmax.f32 %v4446_v58, 0.0  ;;  %10375 = vst [vmem:[#allocation109_spill] sm:$0xff] %v8599_v9  ;;  %v8607_v58 = vmax.f32 %v4454_v24, 0.0  ;;  %10378 = vst [vmem:[#allocation96_spill] sm:$0xff] %v8614_v48  ;;  %v10379_v24 = vld [vmem:[#allocation45_spill] sm:$0xff] }
 0xa12   : > { %3300 = vrot.lane.b32.xlu1 %v8463_v20, %s4864_s23  ;;  %v8473_v42 = vpop.permute.xlu0 %3362  ;;  %10373 = vst [vmem:[#allocation80_spill] sm:$0xff] %v8591_v1  ;;  %10377 = vst [vmem:[#allocation107_spill] sm:$0xff] %v8607_v58 }
 0xa14   : > { %v8477_v34 = vpop.permute.xlu1 %3312  ;;  %3302 = vrot.lane.b32.xlu0 %v8469_v30, %s4864_s23 }
 0xa16   : > { %3364 = vrot.lane.b32.xlu1 %v8463_v20, %s4863_s24  ;;  %v8485_v12 = vpop.permute.xlu0 %3314 }
 0xa18   : > { %v8489_v0 = vpop.permute.xlu1 %3424  ;;  %3366 = vrot.lane.b32.xlu0 %v8469_v30, %s4863_s24 }
 0xa1a   : > { %3316 = vrot.lane.b32.xlu1 %v8487_v18, %s4864_s23  ;;  %v8497_v39 = vpop.permute.xlu0 %3426 }
 0xa1c   : > { %v8499_v6 = vpop.permute.xlu1 %3376  ;;  %3318 = vrot.lane.b32.xlu0 %v8493_v40, %s4864_s23 }
 0xa1e   : > { %3428 = vrot.lane.b32.xlu1 %v8463_v20, %s4862_s21  ;;  %v8505_v32 = vpop.permute.xlu0 %3378 }
 0xa20   : > { %v8507_v13 = vpop.permute.xlu1 %3488  ;;  %3430 = vrot.lane.b32.xlu0 %v8469_v30, %s4862_s21 }
 0xa22   : > { %3380 = vrot.lane.b32.xlu1 %v8487_v18, %s4863_s24  ;;  %v8513_v23 = vpop.permute.xlu0 %3490 }
 0xa24   : > { %v8515_v37 = vpop.permute.xlu1 %3440  ;;  %3382 = vrot.lane.b32.xlu0 %v8493_v40, %s4863_s24 }
 0xa26   : > { %3492 = vrot.lane.b32.xlu1 %v8463_v20, %s4865_s28  ;;  %v8521_v54 = vpop.permute.xlu0 %3442 }
 0xa28   : > { %v8523_v7 = vpop.permute.xlu1 %3504  ;;  %3494 = vrot.lane.b32.xlu0 %v8469_v30, %s4865_s28 }
 0xa2a   : > { %3444 = vrot.lane.b32.xlu1 %v8487_v18, %s4862_s21  ;;  %v8529_v36 = vpop.permute.xlu0 %3506 }
 0xa2c   : > { %v8531_v56 = vpop.permute.xlu1 %3568  ;;  %3446 = vrot.lane.b32.xlu0 %v8493_v40, %s4862_s21 }
 0xa2e   : > { %3508 = vrot.lane.b32.xlu1 %v8487_v18, %s4865_s28  ;;  %v8537_v35 = vpop.permute.xlu0 %3570 }
 0xa30   : > { %v8539_v2 = vpop.permute.xlu1 %3552  ;;  %3510 = vrot.lane.b32.xlu0 %v8493_v40, %s4865_s28 }
 0xa32   : > { %3572 = vrot.lane.b32.xlu1 %v8487_v18, %s4866_s15  ;;  %v8545_v63 = vpop.permute.xlu0 %3554 }
 0xa34   : > { %v8547_v52 = vpop.permute.xlu1 %3632  ;;  %3574 = vrot.lane.b32.xlu0 %v8493_v40, %s4866_s15 }
 0xa36   : > { %3556 = vrot.lane.b32.xlu1 %v8463_v20, %s4866_s15  ;;  %v8553_v29 = vpop.permute.xlu0 %3634 }
 0xa38   : > { %v8555_v10 = vpop.permute.xlu1 %3616  ;;  %3558 = vrot.lane.b32.xlu0 %v8469_v30, %s4866_s15 }
 0xa3a   : > { %3636 = vrot.lane.b32.xlu1 %v8487_v18, %s4867_s12  ;;  %v8561_v11 = vpop.permute.xlu0 %3618 }
 0xa3c   : > { %v8563_v8 = vpop.permute.xlu1 %3696  ;;  %3638 = vrot.lane.b32.xlu0 %v8493_v40, %s4867_s12 }
 0xa3d   : > { %10367 = vst [vmem:[#allocation92_spill] sm:$0xff] %v8563_v8 }
 0xa3e   : > { %3620 = vrot.lane.b32.xlu1 %v8463_v20, %s4867_s12  ;;  %v8569_v59 = vpop.permute.xlu0 %3698 }
 0xa3f   : > { %10368 = vst [vmem:[#allocation72_spill] sm:$0xff] %v8569_v59 }
 0xa40   : > { %v8571_v4 = vpop.permute.xlu1 %3680  ;;  %3622 = vrot.lane.b32.xlu0 %v8469_v30, %s4867_s12 }
 0xa41   : > { %10369 = vst [vmem:[#allocation98_spill] sm:$0xff] %v8571_v4 }
 0xa42   : > { %3700 = vrot.lane.b32.xlu1 %v8487_v18, %s4868_s22  ;;  %v8577_v3 = vpop.permute.xlu0 %3682 }
 0xa43   : > { %10370 = vst [vmem:[#allocation76_spill] sm:$0xff] %v8577_v3 }
 0xa44   : > { %v8581_v16 = vpop.permute.xlu1 %3760  ;;  %3702 = vrot.lane.b32.xlu0 %v8493_v40, %s4868_s22 }
 0xa45   : > { %10371 = vst [vmem:[#allocation99_spill] sm:$0xff] %v8581_v16 }
 0xa46   : > { %3684 = vrot.lane.b32.xlu1 %v8463_v20, %s4868_s22  ;;  %v8589_v55 = vpop.permute.xlu0 %3762 }
 0xa47   : > { %10372 = vst [vmem:[#allocation94_spill] sm:$0xff] %v8589_v55 }
 0xa48   : > { %v8595_v26 = vpop.permute.xlu1 %3744  ;;  %3686 = vrot.lane.b32.xlu0 %v8469_v30, %s4868_s22 }
 0xa49   : > { %10374 = vst [vmem:[#allocation71_spill] sm:$0xff] %v8595_v26 }
 0xa4a   : > { %3308 = vrot.lane.b32.xlu1 %v8591_v1, %s4864_s23  ;;  %v8605_v20 = vpop.permute.xlu0 %3746 }
 0xa4b   : > { %10376 = vst [vmem:[#allocation97_spill] sm:$0xff] %v8605_v20 }
 0xa4c   : > { %v3305_v55 = vpop.permute.xlu1 %3304  ;;  %3310 = vrot.lane.b32.xlu0 %v8599_v9, %s4864_s23 }
 0xa4d   : > { %v3336_v22 = vsel %vm987_vm12, %v8453_v46, %v3305_v55 }
 0xa4e   : > { %3324 = vrot.lane.b32.xlu1 %v8607_v58, %s4864_s23  ;;  %v3307_v31 = vpop.permute.xlu0 %3306  ;;  %v3345_v44 = vmul.f32 %v3336_v22, %v10379_v24  ;;  %v3332_v22 = vsel %vm987_vm12, %v3305_v55, %v8477_v34 }
 0xa4f   : > { %v3337_v14 = vsel %vm987_vm12, %v8461_v43, %v3307_v31  ;;  %v3333_v20 = vsel %vm987_vm12, %v3307_v31, %v8485_v12 }
 0xa50   : > { %v3349_v26 = vmul.f32 %v3337_v14, %v10379_v24  ;;  %v3321_v16 = vpop.permute.xlu1 %3320  ;;  %3326 = vrot.lane.b32.xlu0 %v8614_v48, %s4864_s23  ;;  %v10380_v24 = vld [vmem:[#allocation47_spill] sm:$0xff] }
 0xa51   : > { %v3328_v41 = vsel %vm987_vm12, %v8477_v34, %v3321_v16  ;;  %v3340_v3 = vsel %vm987_vm12, %v3321_v16, %v8453_v46  ;;  %v3350_v59 = vmul.f32 %v3333_v20, %v10380_v24  ;;  %v10382_v46 = vld [vmem:[#allocation48_spill] sm:$0xff] }
 0xa52   : > { %3372 = vrot.lane.b32.xlu1 %v8591_v1, %s4863_s24  ;;  %v3323_v31 = vpop.permute.xlu0 %3322  ;;  %v3809_v14 = vpack.c.bf16 %v3349_v26, %v3345_v44  ;;  %v3344_v4 = vmul.f32 %v3340_v3, %v10381_v57  ;;  %v3347_v28 = vmul.f32 %v3328_v41, %v10382_v46  ;;  %v3346_v26 = vmul.f32 %v3332_v22, %v10380_v24 }
 0xa53   : > { %v3329_v8 = vsel %vm987_vm12, %v8485_v12, %v3323_v31  ;;  %v3341_v16 = vsel %vm987_vm12, %v3323_v31, %v8461_v43 }
 0xa54   : > { %v3348_v55 = vmul.f32 %v3341_v16, %v10381_v57  ;;  %v3351_v34 = vmul.f32 %v3329_v8, %v10382_v46  ;;  %v3369_v15 = vpop.permute.xlu1 %3368  ;;  %3374 = vrot.lane.b32.xlu0 %v8599_v9, %s4863_s24  ;;  %3920 = vmatprep.subr.bf16.mxu1 %v3809_v14  ;;  %v3810_v44 = vpack.c.bf16 %v3350_v59, %v3346_v26 }
 0xa55   : > { %v3396_v3 = vsel %vm1020_vm11, %v3369_v15, %v8499_v6  ;;  %v3400_v43 = vsel %vm1020_vm11, %v8465_v33, %v3369_v15 }
 0xa56   : > { %v3808_v20 = vpack.c.bf16 %v3348_v55, %v3344_v4  ;;  %3388 = vrot.lane.b32.xlu1 %v8607_v58, %s4863_s24  ;;  %v3371_v8 = vpop.permute.xlu0 %3370  ;;  %v3811_v12 = vpack.c.bf16 %v3351_v34, %v3347_v28  ;;  %v8668_v4 = vmul.f32 %v3396_v3, %v5429_v27  ;;  %v8679_v28 = vmul.f32 %v3400_v43, %v5373_v51 }
 0xa57   : > { %v3397_v41 = vsel %vm1020_vm11, %v3371_v8, %v8505_v32  ;;  %v3401_v22 = vsel %vm1020_vm11, %v8473_v42, %v3371_v8 }
 0xa58   : > { %v8671_v31 = vmul.f32 %v3401_v22, %v5373_v51  ;;  %v8674_v15 = vmul.f32 %v3397_v41, %v5429_v27  ;;  %v3385_v14 = vpop.permute.xlu1 %3384  ;;  %3390 = vrot.lane.b32.xlu0 %v8614_v48, %s4863_s24  ;;  %3921 = vmatpush1.bf16.msra.mxu1 %v3808_v20 }
 0xa59   : > { %v3392_v59 = vsel %vm1020_vm11, %v8499_v6, %v3385_v14  ;;  %v3404_v16 = vsel %vm1020_vm11, %v3385_v14, %v8465_v33  ;;  %4002 = vmatprep.subr.bf16.mxu0 %v3811_v12 }
 0xa5a   : > { %4003 = vmatpush1.bf16.msra.mxu0 %v3810_v44  ;;  %3436 = vrot.lane.b32.xlu1 %v8591_v1, %s4862_s21  ;;  %v3387_v34 = vpop.permute.xlu0 %3386  ;;  %v8700_v3 = vmul.f32 %v3404_v16, %v5406_v62  ;;  %v8703_v20 = vmul.f32 %v3392_v59, %v5412_v17 }
 0xa5b   : > { %v3393_v26 = vsel %vm1020_vm11, %v8505_v32, %v3387_v34  ;;  %v3405_v6 = vsel %vm1020_vm11, %v3387_v34, %v8473_v42 }
 0xa5c   : > { %v8706_v43 = vmul.f32 %v3405_v6, %v5406_v62  ;;  %v8709_v8 = vmul.f32 %v3393_v26, %v5412_v17  ;;  %v3433_v32 = vpop.permute.xlu1 %3432  ;;  %3438 = vrot.lane.b32.xlu0 %v8599_v9, %s4862_s21 }
 0xa5d   : > { %v3460_v42 = vsel %vm1053_vm10, %v3433_v32, %v8515_v37  ;;  %v3464_v12 = vsel %vm1053_vm10, %v8489_v0, %v3433_v32 }
 0xa5e   : > { %3452 = vrot.lane.b32.xlu1 %v8607_v58, %s4862_s21  ;;  %v3435_v41 = vpop.permute.xlu0 %3434  ;;  %v8732_v16 = vmul.f32 %v3464_v12, %v5367_v49  ;;  %v8735_v34 = vmul.f32 %v3460_v42, %v5416_v19 }
 0xa5f   : > { %v3461_v14 = vsel %vm1053_vm10, %v3435_v41, %v8521_v54  ;;  %v3465_v59 = vsel %vm1053_vm10, %v8497_v39, %v3435_v41 }
 0xa60   : > { %v8738_v26 = vmul.f32 %v3465_v59, %v5367_v49  ;;  %v8741_v6 = vmul.f32 %v3461_v14, %v5416_v19  ;;  %v3449_v32 = vpop.permute.xlu1 %3448  ;;  %3454 = vrot.lane.b32.xlu0 %v8614_v48, %s4862_s21 }
 0xa61   : > { %v3456_v41 = vsel %vm1053_vm10, %v8515_v37, %v3449_v32  ;;  %v3468_v12 = vsel %vm1053_vm10, %v3449_v32, %v8489_v0 }
 0xa62   : > { %3500 = vrot.lane.b32.xlu1 %v8591_v1, %s4865_s28  ;;  %v3451_v14 = vpop.permute.xlu0 %3450  ;;  %v8764_v0 = vmul.f32 %v3468_v12, %v5398_v60  ;;  %v8767_v32 = vmul.f32 %v3456_v41, %v5402_v61 }
 0xa63   : > { %v3457_v55 = vsel %vm1053_vm10, %v8521_v54, %v3451_v14  ;;  %v3469_v37 = vsel %vm1053_vm10, %v3451_v14, %v8497_v39 }
 0xa64   : > { %v8770_v42 = vmul.f32 %v3469_v37, %v5398_v60  ;;  %v8773_v44 = vmul.f32 %v3457_v55, %v5402_v61  ;;  %v3497_v59 = vpop.permute.xlu1 %3496  ;;  %3502 = vrot.lane.b32.xlu0 %v8599_v9, %s4865_s28 }
 0xa65   : > { %v3524_v39 = vsel %vm1086_vm14, %v3497_v59, %v8523_v7  ;;  %v3528_v54 = vsel %vm1086_vm14, %v8507_v13, %v3497_v59 }
 0xa66   : > { %3516 = vrot.lane.b32.xlu1 %v8607_v58, %s4865_s28  ;;  %v3499_v55 = vpop.permute.xlu0 %3498  ;;  %v8796_v59 = vmul.f32 %v3528_v54, %v5468_v50  ;;  %v8799_v41 = vmul.f32 %v3524_v39, %v5517_v38 }
 0xa67   : > { %v3525_v14 = vsel %vm1086_vm14, %v3499_v55, %v8529_v36  ;;  %v3529_v37 = vsel %vm1086_vm14, %v8513_v23, %v3499_v55 }
 0xa68   : > { %10383 = vst [vmem:[#allocation108_spill] sm:$0xff] %v8799_v41  ;;  %v8802_v22 = vmul.f32 %v3529_v37, %v5468_v50  ;;  %v8805_v33 = vmul.f32 %v3525_v14, %v5517_v38  ;;  %v3513_v12 = vpop.permute.xlu1 %3512  ;;  %3518 = vrot.lane.b32.xlu0 %v8614_v48, %s4865_s28 }
 0xa69   : > { %v3520_v55 = vsel %vm1086_vm14, %v8523_v7, %v3513_v12  ;;  %v3532_v54 = vsel %vm1086_vm14, %v3513_v12, %v8507_v13  ;;  %v10386_v12 = vld [vmem:[#allocation52_spill] sm:$0xff] }
 0xa6a   : > { %10384 = vst [vmem:[#allocation78_spill] sm:$0xff] %v8805_v33  ;;  %3764 = vrot.lane.b32.xlu1 %v8487_v18, %s4870_s16  ;;  %v3515_v14 = vpop.permute.xlu0 %3514  ;;  %v8828_v13 = vmul.f32 %v3532_v54, %v10265_v53  ;;  %v8831_v39 = vmul.f32 %v3520_v55, %v10386_v12 }
 0xa6b   : > { %v3521_v38 = vsel %vm1086_vm14, %v8529_v36, %v3515_v14  ;;  %v3533_v7 = vsel %vm1086_vm14, %v3515_v14, %v8513_v23 }
 0xa6c   : > { %10385 = vst [vmem:[#allocation81_spill] sm:$0xff] %v8828_v13  ;;  %10387 = vst [vmem:[#allocation110_spill] sm:$0xff] %v8831_v39  ;;  %v8834_v18 = vmul.f32 %v3533_v7, %v10265_v53  ;;  %v8837_v41 = vmul.f32 %v3521_v38, %v10386_v12  ;;  %v3561_v37 = vpop.permute.xlu1 %3560  ;;  %3766 = vrot.lane.b32.xlu0 %v8493_v40, %s4870_s16  ;;  %v10390_v40 = vld [vmem:[#allocation49_spill] sm:$0xff] }
 0xa6d   : > { %v3588_v23 = vsel %vm1119_vm15, %v3561_v37, %v8531_v56  ;;  %v3592_v36 = vsel %vm1119_vm15, %v8539_v2, %v3561_v37 }
 0xa6e   : > { %10388 = vst [vmem:[#allocation89_spill] sm:$0xff] %v8834_v18  ;;  %3564 = vrot.lane.b32.xlu1 %v8591_v1, %s4866_s15  ;;  %v3563_v38 = vpop.permute.xlu0 %3562  ;;  %v8860_v37 = vmul.f32 %v3592_v36, %v10279_v5  ;;  %v8863_v55 = vmul.f32 %v3588_v23, %v10390_v40 }
 0xa6f   : > { %v3589_v14 = vsel %vm1119_vm15, %v3563_v38, %v8537_v35  ;;  %v3593_v7 = vsel %vm1119_vm15, %v8545_v63, %v3563_v38 }
 0xa70   : > { %10389 = vst [vmem:[#allocation112_spill] sm:$0xff] %v8860_v37  ;;  %10391 = vst [vmem:[#allocation90_spill] sm:$0xff] %v8863_v55  ;;  %v8866_v33 = vmul.f32 %v3593_v7, %v10279_v5  ;;  %v8869_v13 = vmul.f32 %v3589_v14, %v10390_v40  ;;  %v3625_v54 = vpop.permute.xlu1 %3624  ;;  %3750 = vrot.lane.b32.xlu0 %v8469_v30, %s4870_s16 }
 0xa71   : > { %v3652_v38 = vsel %vm1152_vm0, %v3625_v54, %v8547_v52  ;;  %v3656_v36 = vsel %vm1152_vm0, %v8555_v10, %v3625_v54 }
 0xa72   : > { %10392 = vst [vmem:[#allocation116_spill] sm:$0xff] %v8866_v33  ;;  %10393 = vst [vmem:[#allocation86_spill] sm:$0xff] %v8869_v13  ;;  %3628 = vrot.lane.b32.xlu1 %v8591_v1, %s4867_s12  ;;  %v3627_v14 = vpop.permute.xlu0 %3626  ;;  %v8892_v54 = vmul.f32 %v3656_v36, %v10300_v21  ;;  %v8895_v23 = vmul.f32 %v3652_v38, %v10303_v47 }
 0xa73   : > { %v3653_v40 = vsel %vm1152_vm0, %v3627_v14, %v8553_v29  ;;  %v3657_v5 = vsel %vm1152_vm0, %v8561_v11, %v3627_v14 }
 0xa74   : > { %10394 = vst [vmem:[#allocation102_spill] sm:$0xff] %v8892_v54  ;;  %10395 = vst [vmem:[#allocation73_spill] sm:$0xff] %v8895_v23  ;;  %v8898_v37 = vmul.f32 %v3657_v5, %v10300_v21  ;;  %v8901_v33 = vmul.f32 %v3653_v40, %v10303_v47  ;;  %v3577_v7 = vpop.permute.xlu1 %3576  ;;  %3706 = vrot.lane.b32.xlu0 %v8399_v25, %s4868_s22  ;;  %v10398_v21 = vld [vmem:[#allocation53_spill] sm:$0xff]  ;;  %v10408_v23 = vld [vmem:[#allocation72_spill] sm:$0xff] }
 0xa75   : > { %v3584_v14 = vsel %vm1119_vm15, %v8531_v56, %v3577_v7  ;;  %v3596_v36 = vsel %vm1119_vm15, %v3577_v7, %v8539_v2  ;;  %v10400_v7 = vld [vmem:[#allocation55_spill] sm:$0xff] }
 0xa76   : > { %10396 = vst [vmem:[#allocation77_spill] sm:$0xff] %v8898_v37  ;;  %10397 = vst [vmem:[#allocation93_spill] sm:$0xff] %v8901_v33  ;;  %3580 = vrot.lane.b32.xlu1 %v8607_v58, %s4866_s15  ;;  %v3579_v5 = vpop.permute.xlu0 %3578  ;;  %v8924_v2 = vmul.f32 %v3584_v14, %v10398_v21  ;;  %v8927_v38 = vmul.f32 %v3596_v36, %v10400_v7  ;;  %v10409_v33 = vld [vmem:[#allocation76_spill] sm:$0xff] }
 0xa77   : > { %v3585_v47 = vsel %vm1119_vm15, %v8537_v35, %v3579_v5  ;;  %v3597_v56 = vsel %vm1119_vm15, %v3579_v5, %v8545_v63  ;;  %v10404_v35 = vld [vmem:[#allocation92_spill] sm:$0xff]  ;;  %v10405_v5 = vld [vmem:[#allocation98_spill] sm:$0xff] }
 0xa78   : > { %10399 = vst [vmem:[#allocation118_spill] sm:$0xff] %v8924_v2  ;;  %10401 = vst [vmem:[#allocation119_spill] sm:$0xff] %v8927_v38  ;;  %v8930_v54 = vmul.f32 %v3585_v47, %v10398_v21  ;;  %v8933_v37 = vmul.f32 %v3597_v56, %v10400_v7  ;;  %v3689_v40 = vpop.permute.xlu1 %3688  ;;  %3566 = vrot.lane.b32.xlu0 %v8599_v9, %s4866_s15  ;;  %v10406_v7 = vld [vmem:[#allocation62_spill] sm:$0xff] }
 0xa79   : > { %v3716_v63 = vsel %vm1185_vm1, %v3689_v40, %v10404_v35  ;;  %v3720_v14 = vsel %vm1185_vm1, %v10405_v5, %v3689_v40  ;;  %v10410_v5 = vld [vmem:[#allocation57_spill] sm:$0xff] }
 0xa7a   : > { %10402 = vst [vmem:[#allocation117_spill] sm:$0xff] %v8930_v54  ;;  %10403 = vst [vmem:[#allocation105_spill] sm:$0xff] %v8933_v37  ;;  %3692 = vrot.lane.b32.xlu1 %v8591_v1, %s4868_s22  ;;  %v3691_v47 = vpop.permute.xlu0 %3690  ;;  %v8950_v21 = vmul.f32 %v3720_v14, %v10406_v7  ;;  %v8959_v36 = vmul.f32 %v3716_v63, %v10410_v5  ;;  %v4871_v14 = vmov 1966171168  }
 0xa7b   : > { %v3717_v35 = vsel %vm1185_vm1, %v3691_v47, %v10408_v23  ;;  %v3721_v40 = vsel %vm1185_vm1, %v10409_v33, %v3691_v47  ;;  %v3901_v38 = vunpack.c.l.s4 %v4871_v14  ;;  %v10426_v33 = vld [vmem:[#allocation97_spill] sm:$0xff] }
 0xa7c   : > { %10407 = vst [vmem:[#allocation103_spill] sm:$0xff] %v8950_v21  ;;  %10411 = vst [vmem:[#allocation87_spill] sm:$0xff] %v8959_v36  ;;  %v8962_v2 = vmul.f32 %v3721_v40, %v10406_v7  ;;  %v8965_v54 = vmul.f32 %v3717_v35, %v10410_v5  ;;  %v3641_v56 = vpop.permute.xlu1 %3640  ;;  %3770 = vrot.lane.b32.xlu0 %v8399_v25, %s4870_s16  ;;  %v10414_v5 = vld [vmem:[#allocation58_spill] sm:$0xff]  ;;  %v10417_v21 = vld [vmem:[#allocation60_spill] sm:$0xff] }
 0xa7d   : > { %v3648_v23 = vsel %vm1152_vm0, %v8547_v52, %v3641_v56  ;;  %v3660_v63 = vsel %vm1152_vm0, %v3641_v56, %v8555_v10  ;;  %v8993_v56 = vld.sshfl [vmem:[%s9645_s11] sm:$0x13 pattern:$0x75316420]  ;;  %v3902_v47 = vunpack.c.0.s8 %v3901_v38 }
 0xa7e   : > { %10412 = vst [vmem:[#allocation104_spill] sm:$0xff] %v8962_v2  ;;  %10413 = vst [vmem:[#allocation65_spill] sm:$0xff] %v8965_v54  ;;  %3644 = vrot.lane.b32.xlu1 %v8607_v58, %s4867_s12  ;;  %v3643_v35 = vpop.permute.xlu0 %3642  ;;  %v8982_v14 = vmul.f32 %v3648_v23, %v10414_v5  ;;  %v8996_v2 = vmul.f32 %v3660_v63, %v10417_v21  ;;  %v10422_v7 = vld [vmem:[#allocation71_spill] sm:$0xff]  ;;  %v10425_v54 = vld [vmem:[#allocation94_spill] sm:$0xff] }
 0xa7f   : > { %v3649_v52 = vsel %vm1152_vm0, %v8553_v29, %v3643_v35  ;;  %v3661_v10 = vsel %vm1152_vm0, %v3643_v35, %v8561_v11  ;;  %10416 = vst [vmem:[#allocation82_spill] sm:$0xff] %v8993_v56  ;;  %v3899_v11 = vcombine.high %v8993_v56, %v8993_v56  ;;  %v10421_v35 = vld [vmem:[#allocation99_spill] sm:$0xff] }
 0xa80   : > { %10415 = vst [vmem:[#allocation64_spill] sm:$0xff] %v8982_v14  ;;  %10418 = vst [vmem:[#allocation120_spill] sm:$0xff] %v8996_v2  ;;  %v8999_v23 = vmul.f32 %v3649_v52, %v10414_v5  ;;  %v9002_v40 = vmul.f32 %v3661_v10, %v10417_v21  ;;  %v3753_v29 = vpop.permute.xlu1 %3752  ;;  %3630 = vrot.lane.b32.xlu0 %v8599_v9, %s4867_s12  ;;  %v10423_v52 = vld [vmem:[#allocation31_spill] sm:$0xff]  ;;  %v10429_v10 = vld [vmem:[#allocation84_spill] sm:$0xff] }
 0xa81   : > { %v3780_v38 = vsel %vm1218_vm2, %v3753_v29, %v10421_v35  ;;  %v3784_v63 = vsel %vm1218_vm2, %v10422_v7, %v3753_v29  ;;  %v9015_v5 = vsub.s32 %v3902_v47, %v10423_v52  ;;  %v10427_v52 = vld [vmem:[#allocation75_spill] sm:$0xff] }
 0xa82   : > { %10419 = vst [vmem:[#allocation100_spill] sm:$0xff] %v8999_v23  ;;  %10420 = vst [vmem:[#allocation83_spill] sm:$0xff] %v9002_v40  ;;  %3756 = vrot.lane.b32.xlu1 %v8591_v1, %s4870_s16  ;;  %v3755_v21 = vpop.permute.xlu0 %3754  ;;  %v9031_v7 = vmul.f32 %v10427_v52, %v3784_v63  ;;  %v9034_v14 = vmul.f32 %v10429_v10, %v3780_v38 }
 0xa83   : > { %10424 = vst [vmem:[#allocation111_spill] sm:$0xff] %v9015_v5  ;;  %v3781_v35 = vsel %vm1218_vm2, %v3755_v21, %v10425_v54  ;;  %v3785_v29 = vsel %vm1218_vm2, %v10426_v33, %v3755_v21  ;;  %v3913_v47 = vrot.slane %v3899_v11, %v9015_v5  ;;  %v10433_v11 = vld [vmem:[#allocation66_spill] sm:$0xff] }
 0xa84   : > { %10428 = vst [vmem:[#allocation79_spill] sm:$0xff] %v9031_v7  ;;  %10430 = vst [vmem:[#allocation101_spill] sm:$0xff] %v9034_v14  ;;  %v9037_v23 = vmul.f32 %v10427_v52, %v3785_v29  ;;  %v9040_v36 = vmul.f32 %v10429_v10, %v3781_v35  ;;  %v3301_v2 = vpop.permute.xlu1 %3300  ;;  %3582 = vrot.lane.b32.xlu0 %v8614_v48, %s4866_s15  ;;  %v10434_v35 = vld [vmem:[#allocation74_spill] sm:$0xff] }
 0xa85   : > { %3952 = vmatprep.mubr.bf16.mxu1 %v3913_v47  ;;  %4034 = vmatprep.mubr.bf16.mxu0 %v3913_v47 }
 0xa86   : > { %10431 = vst [vmem:[#allocation91_spill] sm:$0xff] %v9037_v23  ;;  %10432 = vst [vmem:[#allocation85_spill] sm:$0xff] %v9040_v36  ;;  %3748 = vrot.lane.b32.xlu1 %v10433_v11, %s4870_s16  ;;  %v3303_v38 = vpop.permute.xlu0 %3302  ;;  %v3881_v23 = vld [vmem:[#allocation7] sm:$0x1] }
 0xa88   : > { %v9050_v29 = vpop.permute.xlu1 %3364  ;;  %3694 = vrot.lane.b32.xlu0 %v8599_v9, %s4868_s22 }
 0xa8a   : > { %3704 = vrot.lane.b32.xlu1 %v10434_v35, %s4868_s22  ;;  %v9056_v10 = vpop.permute.xlu0 %3366 }
 0xa8c   : > { %v3317_v47 = vpop.permute.xlu1 %3316  ;;  %3646 = vrot.lane.b32.xlu0 %v8614_v48, %s4867_s12 }
 0xa8e   : > { %3768 = vrot.lane.b32.xlu1 %v10434_v35, %s4870_s16  ;;  %v3319_v52 = vpop.permute.xlu0 %3318 }
 0xa90   : > { %v9062_v21 = vpop.permute.xlu1 %3428  ;;  %3758 = vrot.lane.b32.xlu0 %v8599_v9, %s4870_s16 }
 0xa92   : > { %3708 = vrot.lane.b32.xlu1 %v8607_v58, %s4868_s22  ;;  %v9068_v63 = vpop.permute.xlu0 %3430 }
 0xa94   : > { %v9070_v54 = vpop.permute.xlu1 %3380  ;;  %3710 = vrot.lane.b32.xlu0 %v8614_v48, %s4868_s22 }
 0xa96   : > { %3772 = vrot.lane.b32.xlu1 %v8607_v58, %s4870_s16  ;;  %v9076_v7 = vpop.permute.xlu0 %3382 }
 0xa98   : > { %v9078_v14 = vpop.permute.xlu1 %3492  ;;  %3774 = vrot.lane.b32.xlu0 %v8614_v48, %s4870_s16 }
 0xa9a   : > { %3884 = vperm.xlu1 %4600, %v3881_v23   ;;  %v9082_v36 = vpop.permute.xlu0 %3494 }
 0xa9c   : > { %v9084_v33 = vpop.permute.xlu1 %3444 }
 0xa9e   : > { %v9086_v40 = vpop.permute.xlu0 %3446 }
 0xaa0   : > { %v9088_v56 = vpop.permute.xlu1 %3508 }
 0xaa2   : > { %v9090_v5 = vpop.permute.xlu0 %3510 }
 0xaa4   : > { %v9092_v37 = vpop.permute.xlu1 %3572 }
 0xaa5   : > { %10435 = vst [vmem:[#allocation121_spill] sm:$0xff] %v9092_v37 }
 0xaa6   : > { %v9094_v55 = vpop.permute.xlu0 %3574 }
 0xaa7   : > { %10436 = vst [vmem:[#allocation122_spill] sm:$0xff] %v9094_v55 }
 0xaa8   : > { %v9096_v13 = vpop.permute.xlu1 %3556 }
 0xaa9   : > { %10437 = vst [vmem:[#allocation123_spill] sm:$0xff] %v9096_v13 }
 0xaaa   : > { %v9098_v30 = vpop.permute.xlu0 %3558 }
 0xaab   : > { %10438 = vst [vmem:[#allocation47_spill] sm:$0xff] %v9098_v30 }
 0xaac   : > { %v9100_v11 = vpop.permute.xlu1 %3636 }
 0xaad   : > { %10439 = vst [vmem:[#allocation46_spill] sm:$0xff] %v9100_v11  ;;  %v10447_v11 = vld [vmem:[#allocation45_spill] sm:$0xff] }
 0xaae   : > { %v9102_v23 = vpop.permute.xlu0 %3638 }
 0xaaf   : > { %10440 = vst [vmem:[#allocation48_spill] sm:$0xff] %v9102_v23 }
 0xab0   : > { %v9104_v48 = vpop.permute.xlu1 %3620 }
 0xab1   : > { %10441 = vst [vmem:[#allocation31_spill] sm:$0xff] %v9104_v48 }
 0xab2   : > { %v9106_v58 = vpop.permute.xlu0 %3622 }
 0xab3   : > { %10442 = vst [vmem:[#allocation75_spill] sm:$0xff] %v9106_v58 }
 0xab4   : > { %v9108_v9 = vpop.permute.xlu1 %3700 }
 0xab5   : > { %10443 = vst [vmem:[#allocation84_spill] sm:$0xff] %v9108_v9 }
 0xab6   : > { %v9110_v1 = vpop.permute.xlu0 %3702 }
 0xab7   : > { %10444 = vst [vmem:[#allocation124_spill] sm:$0xff] %v9110_v1 }
 0xab8   : > { %v9112_v25 = vpop.permute.xlu1 %3684 }
 0xab9   : > { %10445 = vst [vmem:[#allocation125_spill] sm:$0xff] %v9112_v25 }
 0xaba   : > { %v9114_v37 = vpop.permute.xlu0 %3686 }
 0xabb   : > { %10446 = vst [vmem:[#allocation126_spill] sm:$0xff] %v9114_v37 }
 0xabc   : > { %v3309_v55 = vpop.permute.xlu1 %3308 }
 0xabd   : > { %v3338_v30 = vsel %vm987_vm12, %v3301_v2, %v3309_v55  ;;  %v3334_v35 = vsel %vm987_vm12, %v3309_v55, %v3317_v47 }
 0xabe   : > { %v3311_v13 = vpop.permute.xlu0 %3310  ;;  %v3353_v48 = vmul.f32 %v3338_v30, %v10447_v11 }
 0xabf   : > { %v3339_v23 = vsel %vm987_vm12, %v3303_v38, %v3311_v13  ;;  %v3335_v58 = vsel %vm987_vm12, %v3311_v13, %v3319_v52 }
 0xac0   : > { %v3357_v9 = vmul.f32 %v3339_v23, %v10447_v11  ;;  %v3325_v1 = vpop.permute.xlu1 %3324  ;;  %v3358_v53 = vmul.f32 %v3335_v58, %v10380_v24 }
 0xac1   : > { %v3330_v25 = vsel %vm987_vm12, %v3317_v47, %v3325_v1  ;;  %v3342_v37 = vsel %vm987_vm12, %v3325_v1, %v3301_v2 }
 0xac2   : > { %v3327_v18 = vpop.permute.xlu0 %3326  ;;  %v3813_v12 = vpack.c.bf16 %v3357_v9, %v3353_v48  ;;  %v3352_v11 = vmul.f32 %v3342_v37, %v10381_v57  ;;  %v3355_v23 = vmul.f32 %v3330_v25, %v10382_v46  ;;  %v3354_v9 = vmul.f32 %v3334_v35, %v10380_v24 }
 0xac3   : > { %v3331_v30 = vsel %vm987_vm12, %v3319_v52, %v3327_v18  ;;  %v3343_v13 = vsel %vm987_vm12, %v3327_v18, %v3303_v38  ;;  %v10448_v37 = vpack.c.bf16 %v8671_v31, %v8679_v28  ;;  %v10449_v38 = vpack.c.bf16 %v8709_v8, %v8703_v20 }
 0xac4   : > { %v3356_v39 = vmul.f32 %v3343_v13, %v10381_v57  ;;  %v3359_v1 = vmul.f32 %v3331_v30, %v10382_v46  ;;  %v3373_v2 = vpop.permute.xlu1 %3372  ;;  %3922 = vmatprep.subr.bf16.mxu1 %v3813_v12  ;;  %v3814_v18 = vpack.c.bf16 %v3358_v53, %v3354_v9 }
 0xac5   : > { %v3402_v58 = vsel %vm1020_vm11, %v9050_v29, %v3373_v2 }
 0xac6   : > { %v3812_v48 = vpack.c.bf16 %v3356_v39, %v3352_v11  ;;  %v3375_v55 = vpop.permute.xlu0 %3374  ;;  %v3815_v47 = vpack.c.bf16 %v3359_v1, %v3355_v23  ;;  %v3417_v57 = vmul.f32 %v3402_v58, %v5373_v51  ;;  %v10450_v11 = vpack.c.bf16 %v8706_v43, %v8700_v3 }
 0xac7   : > { %v3403_v25 = vsel %vm1020_vm11, %v9056_v10, %v3375_v55  ;;  %v3399_v46 = vsel %vm1020_vm11, %v3375_v55, %v9076_v7  ;;  %v10453_v55 = vpack.c.bf16 %v8773_v44, %v8767_v32 }
 0xac8   : > { %v3421_v24 = vmul.f32 %v3403_v25, %v5373_v51  ;;  %v3389_v12 = vpop.permute.xlu1 %3388  ;;  %3923 = vmatpush1.bf16.msra.mxu1 %v3812_v48  ;;  %4004 = vmatprep.subr.bf16.mxu0 %v3815_v47  ;;  %v3398_v51 = vsel %vm1020_vm11, %v3373_v2, %v9070_v54  ;;  %v3422_v30 = vmul.f32 %v3399_v46, %v5429_v27 }
 0xac9   : > { %v3394_v39 = vsel %vm1020_vm11, %v9070_v54, %v3389_v12  ;;  %v3406_v53 = vsel %vm1020_vm11, %v3389_v12, %v9050_v29  ;;  %3924 = vmatprep.subr.bf16.mxu1 %v10448_v37  ;;  %4005 = vmatpush1.bf16.msra.mxu0 %v3814_v18  ;;  %v3418_v23 = vmul.f32 %v3398_v51, %v5429_v27 }
 0xaca   : > { %4006 = vmatprep.subr.bf16.mxu0 %v10449_v38  ;;  %v3391_v35 = vpop.permute.xlu0 %3390  ;;  %v3821_v52 = vpack.c.bf16 %v3421_v24, %v3417_v57  ;;  %v3416_v28 = vmul.f32 %v3406_v53, %v5406_v62  ;;  %v3419_v54 = vmul.f32 %v3394_v39, %v5412_v17  ;;  %v10452_v48 = vpack.c.bf16 %v8738_v26, %v8732_v16  ;;  %v10457_v38 = vld [vmem:[#allocation110_spill] sm:$0xff] }
 0xacb   : > { %v3395_v29 = vsel %vm1020_vm11, %v9076_v7, %v3391_v35  ;;  %v3407_v31 = vsel %vm1020_vm11, %v3391_v35, %v9056_v10  ;;  %v10451_v10 = vpack.c.bf16 %v8674_v15, %v8668_v4  ;;  %v10454_v46 = vpack.c.bf16 %v8770_v42, %v8764_v0 }
 0xacc   : > { %v3420_v13 = vmul.f32 %v3407_v31, %v5406_v62  ;;  %v3423_v20 = vmul.f32 %v3395_v29, %v5412_v17  ;;  %v3437_v8 = vpop.permute.xlu1 %3436  ;;  %3925 = vmatpush1.bf16.msra.mxu1 %v10450_v11  ;;  %v3822_v17 = vpack.c.bf16 %v3422_v30, %v3418_v23  ;;  %v10456_v51 = vpack.c.bf16 %v8802_v22, %v8796_v59  ;;  %v10459_v29 = vld [vmem:[#allocation51_spill] sm:$0xff]  ;;  %v10460_v59 = vld [vmem:[#allocation50_spill] sm:$0xff]  ;;  %v10463_v11 = vld [vmem:[#allocation81_spill] sm:$0xff] }
 0xacd   : > { %v3466_v7 = vsel %vm1053_vm10, %v9062_v21, %v3437_v8  ;;  %3926 = vmatprep.subr.bf16.mxu1 %v3821_v52  ;;  %4007 = vmatpush1.bf16.msra.mxu0 %v10451_v10  ;;  %v10458_v35 = vpack.c.bf16 %v8837_v41, %v10457_v38  ;;  %v10466_v10 = vld [vmem:[#allocation108_spill] sm:$0xff]  ;;  %v10492_v38 = vld [vmem:[#allocation119_spill] sm:$0xff] }
 0xace   : > { %v3820_v1 = vpack.c.bf16 %v3420_v13, %v3416_v28  ;;  %v3439_v62 = vpop.permute.xlu0 %3438  ;;  %v3823_v2 = vpack.c.bf16 %v3423_v20, %v3419_v54  ;;  %v3481_v43 = vmul.f32 %v3466_v7, %v5367_v49  ;;  %v10461_v54 = vld [vmem:[#allocation52_spill] sm:$0xff]  ;;  %v10465_v7 = vld [vmem:[#allocation78_spill] sm:$0xff] }
 0xacf   : > { %v3467_v3 = vsel %vm1053_vm10, %v9068_v63, %v3439_v62  ;;  %v3463_v27 = vsel %vm1053_vm10, %v3439_v62, %v9086_v40 }
 0xad0   : > { %v3485_v9 = vmul.f32 %v3467_v3, %v5367_v49  ;;  %v3453_v58 = vpop.permute.xlu1 %3452  ;;  %3927 = vmatpush1.bf16.msra.mxu1 %v3820_v1  ;;  %4008 = vmatprep.subr.bf16.mxu0 %v3823_v2  ;;  %v3462_v49 = vsel %vm1053_vm10, %v3437_v8, %v9084_v33  ;;  %v3486_v25 = vmul.f32 %v3463_v27, %v5416_v19  ;;  %v10462_v8 = vld [vmem:[#allocation89_spill] sm:$0xff]  ;;  %v10468_v3 = vld [vmem:[#allocation67_spill] sm:$0xff] }
 0xad1   : > { %v3458_v4 = vsel %vm1053_vm10, %v9084_v33, %v3453_v58  ;;  %v3470_v15 = vsel %vm1053_vm10, %v3453_v58, %v9062_v21  ;;  %3928 = vmatprep.subr.bf16.mxu1 %v10452_v48  ;;  %4009 = vmatpush1.bf16.msra.mxu0 %v3822_v17  ;;  %v3482_v24 = vmul.f32 %v3462_v49, %v5416_v19  ;;  %v10470_v58 = vld [vmem:[#allocation74_spill] sm:$0xff]  ;;  %v10472_v49 = vld [vmem:[#allocation80_spill] sm:$0xff] }
 0xad2   : > { %4010 = vmatprep.subr.bf16.mxu0 %v10453_v55  ;;  %v3455_v47 = vpop.permute.xlu0 %3454  ;;  %v3829_v18 = vpack.c.bf16 %v3485_v9, %v3481_v43  ;;  %v3480_v26 = vmul.f32 %v3470_v15, %v5398_v60  ;;  %v3483_v33 = vmul.f32 %v3458_v4, %v5402_v61  ;;  %v10464_v23 = vpack.c.bf16 %v10462_v8, %v10463_v11  ;;  %v10469_v43 = vld [vmem:[#allocation106_spill] sm:$0xff]  ;;  %v10471_v4 = vld [vmem:[#allocation88_spill] sm:$0xff]  ;;  %v10473_v55 = vld [vmem:[#allocation109_spill] sm:$0xff] }
 0xad3   : > { %v3459_v21 = vsel %vm1053_vm10, %v9086_v40, %v3455_v47  ;;  %v3471_v16 = vsel %vm1053_vm10, %v3455_v47, %v9068_v63  ;;  %v10455_v63 = vpack.c.bf16 %v8741_v6, %v8735_v34  ;;  %v3841_v27 = vpack.c.bf16 %v10469_v43, %v10468_v3  ;;  %v10498_v8 = vld [vmem:[#allocation116_spill] sm:$0xff]  ;;  %v10504_v3 = vld [vmem:[#allocation46_spill] sm:$0xff] }
 0xad4   : > { %v3484_v57 = vmul.f32 %v3471_v16, %v5398_v60  ;;  %v3487_v44 = vmul.f32 %v3459_v21, %v5402_v61  ;;  %v3501_v32 = vpop.permute.xlu1 %3500  ;;  %3929 = vmatpush1.bf16.msra.mxu1 %v10454_v46  ;;  %v3830_v61 = vpack.c.bf16 %v3486_v25, %v3482_v24  ;;  %v3843_v15 = vpack.c.bf16 %v10471_v4, %v10470_v58  ;;  %v10474_v25 = vld [vmem:[#allocation114_spill] sm:$0xff]  ;;  %v10475_v21 = vld [vmem:[#allocation113_spill] sm:$0xff]  ;;  %v10499_v11 = vld [vmem:[#allocation112_spill] sm:$0xff] }
 0xad5   : > { %v3530_v40 = vsel %vm1086_vm14, %v9078_v14, %v3501_v32  ;;  %3930 = vmatprep.subr.bf16.mxu1 %v3829_v18  ;;  %4011 = vmatpush1.bf16.msra.mxu0 %v10455_v63  ;;  %v3845_v47 = vpack.c.bf16 %v10473_v55, %v10472_v49  ;;  %v10476_v16 = vpack.c.bf16 %v10474_v25, %v10475_v21  ;;  %v10483_v63 = vld [vmem:[#allocation68_spill] sm:$0xff]  ;;  %v10506_v58 = vld [vmem:[#allocation93_spill] sm:$0xff]  ;;  %v10510_v25 = vld [vmem:[#allocation75_spill] sm:$0xff] }
 0xad6   : > { %v3828_v12 = vpack.c.bf16 %v3484_v57, %v3480_v26  ;;  %v3503_v60 = vpop.permute.xlu0 %3502  ;;  %v3831_v39 = vpack.c.bf16 %v3487_v44, %v3483_v33  ;;  %v3545_v0 = vmul.f32 %v3530_v40, %v5468_v50  ;;  %v10477_v26 = vld [vmem:[#allocation107_spill] sm:$0xff]  ;;  %v10478_v33 = vld [vmem:[#allocation96_spill] sm:$0xff]  ;;  %v10482_v40 = vld [vmem:[#allocation66_spill] sm:$0xff] }
 0xad7   : > { %v3531_v42 = vsel %vm1086_vm14, %v9082_v36, %v3503_v60  ;;  %v3527_v19 = vsel %vm1086_vm14, %v3503_v60, %v9090_v5  ;;  %v3847_v57 = vpack.c.bf16 %v10478_v33, %v10477_v26  ;;  %v10479_v44 = vld [vmem:[#allocation95_spill] sm:$0xff]  ;;  %v10484_v60 = vld [vmem:[#allocation69_spill] sm:$0xff]  ;;  %v10509_v55 = vld [vmem:[#allocation48_spill] sm:$0xff] }
 0xad8   : > { %v3549_v53 = vmul.f32 %v3531_v42, %v5468_v50  ;;  %v3517_v37 = vpop.permute.xlu1 %3516  ;;  %3931 = vmatpush1.bf16.msra.mxu1 %v3828_v12  ;;  %4012 = vmatprep.subr.bf16.mxu0 %v3831_v39  ;;  %v3526_v50 = vsel %vm1086_vm14, %v3501_v32, %v9088_v56  ;;  %v3550_v31 = vmul.f32 %v3527_v19, %v10459_v29  ;;  %v10480_v32 = vld [vmem:[#allocation115_spill] sm:$0xff]  ;;  %v10485_v39 = vld [vmem:[#allocation70_spill] sm:$0xff]  ;;  %v10507_v4 = vld [vmem:[#allocation73_spill] sm:$0xff] }
 0xad9   : > { %v3522_v34 = vsel %vm1086_vm14, %v9088_v56, %v3517_v37  ;;  %v3534_v6 = vsel %vm1086_vm14, %v3517_v37, %v9078_v14  ;;  %3932 = vmatprep.subr.bf16.mxu1 %v10456_v51  ;;  %4013 = vmatpush1.bf16.msra.mxu0 %v3830_v61  ;;  %v10481_v46 = vpack.c.bf16 %v10479_v44, %v10480_v32  ;;  %v10512_v33 = vld [vmem:[#allocation56_spill] sm:$0xff] }
 0xada   : > { %4014 = vmatprep.subr.bf16.mxu0 %v10458_v35  ;;  %v3519_v52 = vpop.permute.xlu0 %3518  ;;  %v3837_v30 = vpack.c.bf16 %v3549_v53, %v3545_v0  ;;  %v3544_v28 = vmul.f32 %v3534_v6, %v10460_v59  ;;  %v3547_v56 = vmul.f32 %v3522_v34, %v10461_v54  ;;  %v3844_v12 = vpack.c.bf16 %v10483_v63, %v10482_v40  ;;  %v10486_v0 = vld [vmem:[#allocation121_spill] sm:$0xff]  ;;  %v10487_v53 = vld [vmem:[#allocation123_spill] sm:$0xff]  ;;  %v10488_v34 = vld [vmem:[#allocation86_spill] sm:$0xff] }
 0xadb   : > { %v3523_v14 = vsel %vm1086_vm14, %v9090_v5, %v3519_v52  ;;  %v3535_v22 = vsel %vm1086_vm14, %v3519_v52, %v9082_v36  ;;  %v3546_v5 = vmul.f32 %v3526_v50, %v10459_v29  ;;  %v10467_v36 = vpack.c.bf16 %v10465_v7, %v10466_v10  ;;  %v10489_v6 = vld [vmem:[#allocation90_spill] sm:$0xff]  ;;  %v10491_v50 = vld [vmem:[#allocation105_spill] sm:$0xff] }
 0xadc   : > { %v3548_v13 = vmul.f32 %v3535_v22, %v10460_v59  ;;  %v3551_v41 = vmul.f32 %v3523_v14, %v10461_v54  ;;  %v9265_v20 = vpop.permute.xlu1 %3764  ;;  %3933 = vmatpush1.bf16.msra.mxu1 %v10464_v23  ;;  %v3846_v61 = vpack.c.bf16 %v10485_v39, %v10484_v60  ;;  %v10490_v51 = vpack.c.bf16 %v10488_v34, %v10489_v6  ;;  %v10496_v22 = vld [vmem:[#allocation54_spill] sm:$0xff]  ;;  %v10513_v63 = vld [vmem:[#allocation77_spill] sm:$0xff] }
 0xadd   : > { %3934 = vmatprep.subr.bf16.mxu1 %v3837_v30  ;;  %4015 = vmatpush1.bf16.msra.mxu0 %v10467_v36  ;;  %v3838_v17 = vpack.c.bf16 %v3550_v31, %v3546_v5  ;;  %v10493_v35 = vpack.c.bf16 %v10491_v50, %v10492_v38  ;;  %v10494_v30 = vld [vmem:[#allocation122_spill] sm:$0xff]  ;;  %v10495_v31 = vld [vmem:[#allocation47_spill] sm:$0xff]  ;;  %v10500_v23 = vpack.c.bf16 %v10498_v8, %v10499_v11  ;;  %v10501_v5 = vld [vmem:[#allocation117_spill] sm:$0xff] }
 0xade   : > { %v3836_v1 = vpack.c.bf16 %v3548_v13, %v3544_v28  ;;  %v9274_v62 = vpop.permute.xlu0 %3766  ;;  %v3839_v2 = vpack.c.bf16 %v3551_v41, %v3547_v56  ;;  %v10497_v28 = vld [vmem:[#allocation49_spill] sm:$0xff]  ;;  %v10502_v7 = vld [vmem:[#allocation118_spill] sm:$0xff]  ;;  %v10525_v8 = vld [vmem:[#allocation87_spill] sm:$0xff] }
 0xadf   : > { %v10503_v10 = vpack.c.bf16 %v10501_v5, %v10502_v7  ;;  %v10517_v34 = vld [vmem:[#allocation82_spill] sm:$0xff] }
 0xae0   : > { %v3565_v9 = vpop.permute.xlu1 %3564  ;;  %3935 = vmatpush1.bf16.msra.mxu1 %v3836_v1  ;;  %4016 = vmatprep.subr.bf16.mxu0 %v3839_v2 }
 0xae1   : > { %3936 = vmatprep.subr.bf16.mxu1 %v3841_v27  ;;  %4017 = vmatpush1.bf16.msra.mxu0 %v3838_v17  ;;  %v3590_v19 = vsel %vm1119_vm15, %v3565_v9, %v10486_v0  ;;  %v3594_v37 = vsel %vm1119_vm15, %v10487_v53, %v3565_v9  ;;  %v10505_v27 = vld [vmem:[#allocation31_spill] sm:$0xff] }
 0xae2   : > { %4018 = vmatprep.subr.bf16.mxu0 %v3843_v15  ;;  %v9280_v48 = vpop.permute.xlu0 %3750  ;;  %v3608_v59 = vmul.f32 %v3594_v37, %v10496_v22  ;;  %v3609_v54 = vmul.f32 %v3590_v19, %v10497_v28  ;;  %v10508_v15 = vpack.c.bf16 %v10506_v58, %v10507_v4  ;;  %v10516_v37 = vld [vmem:[#allocation111_spill] sm:$0xff]  ;;  %v10530_v58 = vld [vmem:[#allocation126_spill] sm:$0xff] }
 0xae3   : > { %v9356_v6 = vrot.slane %v10517_v34, %v10516_v37 }
 0xae4   : > { %v3629_v18 = vpop.permute.xlu1 %3628  ;;  %3937 = vmatpush1.bf16.msra.mxu1 %v10476_v16  ;;  %v10511_v16 = vld [vmem:[#allocation59_spill] sm:$0xff] }
 0xae5   : > { %3938 = vmatprep.subr.bf16.mxu1 %v3845_v47  ;;  %4019 = vmatpush1.bf16.msra.mxu0 %v10481_v46  ;;  %v3654_v43 = vsel %vm1152_vm0, %v3629_v18, %v10504_v3  ;;  %v3658_v9 = vsel %vm1152_vm0, %v10505_v27, %v3629_v18  ;;  %v9387_v7 = vcombine.high %v9356_v6, %v9356_v6 }
 0xae6   : > { %4020 = vmatprep.subr.bf16.mxu0 %v3847_v57  ;;  %v3707_v24 = vpop.permute.xlu0 %3706  ;;  %v3672_v26 = vmul.f32 %v3658_v9, %v10511_v16  ;;  %v3673_v57 = vmul.f32 %v3654_v43, %v10512_v33  ;;  %v10529_v9 = vld [vmem:[#allocation124_spill] sm:$0xff] }
 0xae8   : > { %v3581_v42 = vpop.permute.xlu1 %3580  ;;  %3939 = vmatpush1.bf16.msra.mxu1 %v3844_v12  ;;  %v10514_v12 = vld [vmem:[#allocation102_spill] sm:$0xff] }
 0xae9   : > { %3940 = vmatprep.subr.bf16.mxu1 %v10490_v51  ;;  %4021 = vmatpush1.bf16.msra.mxu0 %v3846_v61  ;;  %v3586_v46 = vsel %vm1119_vm15, %v10486_v0, %v3581_v42  ;;  %v3598_v40 = vsel %vm1119_vm15, %v3581_v42, %v10487_v53  ;;  %v10515_v60 = vpack.c.bf16 %v10513_v63, %v10514_v12  ;;  %v10518_v51 = vld [vmem:[#allocation72_spill] sm:$0xff]  ;;  %v10535_v63 = vld [vmem:[#allocation103_spill] sm:$0xff] }
 0xaea   : > { %4022 = vmatprep.subr.bf16.mxu0 %v10493_v35  ;;  %v3567_v52 = vpop.permute.xlu0 %3566  ;;  %v3713_v50 = vsel %vm1185_vm1, %v10518_v51, %v3707_v24  ;;  %v10519_v0 = vld [vmem:[#allocation76_spill] sm:$0xff]  ;;  %v10520_v35 = vld [vmem:[#allocation53_spill] sm:$0xff] }
 0xaeb   : > { %v3591_v29 = vsel %vm1119_vm15, %v3567_v52, %v10494_v30  ;;  %v3595_v14 = vsel %vm1119_vm15, %v10495_v31, %v3567_v52  ;;  %v3725_v38 = vsel %vm1185_vm1, %v3707_v24, %v10519_v0  ;;  %v3610_v52 = vmul.f32 %v3586_v46, %v10520_v35  ;;  %v10522_v24 = vld [vmem:[#allocation84_spill] sm:$0xff] }
 0xaec   : > { %v3612_v56 = vmul.f32 %v3595_v14, %v10496_v22  ;;  %v3613_v13 = vmul.f32 %v3591_v29, %v10497_v28  ;;  %v3693_v41 = vpop.permute.xlu1 %3692  ;;  %3941 = vmatpush1.bf16.msra.mxu1 %v10500_v23  ;;  %v10521_v29 = vld [vmem:[#allocation55_spill] sm:$0xff]  ;;  %v10540_v51 = vld [vmem:[#allocation92_spill] sm:$0xff] }
 0xaed   : > { %4023 = vmatpush1.bf16.msra.mxu0 %v10503_v10  ;;  %v3611_v14 = vmul.f32 %v3598_v40, %v10521_v29  ;;  %v10527_v10 = vld [vmem:[#allocation61_spill] sm:$0xff]  ;;  %v10534_v40 = vld [vmem:[#allocation104_spill] sm:$0xff] }
 0xaee   : > { %v3852_v36 = vpack.c.bf16 %v3612_v56, %v3608_v59  ;;  %v9324_v1 = vpop.permute.xlu0 %3770  ;;  %v3853_v2 = vpack.c.bf16 %v3613_v13, %v3609_v54  ;;  %v3718_v54 = vsel %vm1185_vm1, %v3693_v41, %v10522_v24  ;;  %v10524_v13 = vld [vmem:[#allocation65_spill] sm:$0xff]  ;;  %v10536_v12 = vpack.c.bf16 %v10534_v40, %v10535_v63 }
 0xaef   : > { %v10526_v11 = vpack.c.bf16 %v10524_v13, %v10525_v8  ;;  %v10545_v13 = vld [vmem:[#allocation100_spill] sm:$0xff] }
 0xaf0   : > { %v3645_v17 = vpop.permute.xlu1 %3644  ;;  %3942 = vmatprep.subr.bf16.mxu1 %v3853_v2  ;;  %v10528_v2 = vld [vmem:[#allocation63_spill] sm:$0xff]  ;;  %v10546_v8 = vld [vmem:[#allocation64_spill] sm:$0xff] }
 0xaf1   : > { %3943 = vmatpush1.bf16.msra.mxu1 %v3852_v36  ;;  %v9390_v36 = vmul.f32 %v3713_v50, %v10527_v10  ;;  %v3735_v43 = vmul.f32 %v3725_v38, %v10528_v2 }
 0xaf2   : > { %3944 = vmatprep.subr.bf16.mxu1 %v10508_v15  ;;  %v3631_v49 = vpop.permute.xlu0 %3630  ;;  %v10531_v15 = vld [vmem:[#allocation62_spill] sm:$0xff] }
 0xaf3   : > { %v3655_v47 = vsel %vm1152_vm0, %v3631_v49, %v10509_v55  ;;  %v3659_v21 = vsel %vm1152_vm0, %v10510_v25, %v3631_v49 }
 0xaf4   : > { %v3676_v18 = vmul.f32 %v3659_v21, %v10511_v16  ;;  %v3677_v44 = vmul.f32 %v3655_v47, %v10512_v33  ;;  %v3757_v32 = vpop.permute.xlu1 %3756  ;;  %v10532_v47 = vld [vmem:[#allocation57_spill] sm:$0xff] }
 0xaf5   : > { %3945 = vmatpush1.bf16.msra.mxu1 %v10515_v60  ;;  %v3737_v21 = vmul.f32 %v3718_v54, %v10532_v47  ;;  %v3782_v60 = vsel %vm1218_vm2, %v3757_v32, %v9265_v20 }
 0xaf6   : > { %v3860_v39 = vpack.c.bf16 %v3676_v18, %v3672_v26  ;;  %v3583_v61 = vpop.permute.xlu0 %3582  ;;  %v3861_v19 = vpack.c.bf16 %v3677_v44, %v3673_v57  ;;  %v3650_v57 = vsel %vm1152_vm0, %v10504_v3, %v3645_v17  ;;  %v3662_v18 = vsel %vm1152_vm0, %v3645_v17, %v10505_v27  ;;  %v10533_v44 = vld [vmem:[#allocation98_spill] sm:$0xff]  ;;  %v10538_v17 = vld [vmem:[#allocation120_spill] sm:$0xff] }
 0xaf7   : > { %v3587_v42 = vsel %vm1119_vm15, %v10494_v30, %v3583_v61  ;;  %v3599_v53 = vsel %vm1119_vm15, %v3583_v61, %v10495_v31  ;;  %v10523_v30 = vld [vmem:[#allocation125_spill] sm:$0xff]  ;;  %v10537_v61 = vld [vmem:[#allocation83_spill] sm:$0xff] }
 0xaf8   : > { %v3614_v22 = vmul.f32 %v3587_v42, %v10520_v35  ;;  %v3615_v59 = vmul.f32 %v3599_v53, %v10521_v29  ;;  %v9374_v28 = vpop.permute.xlu1 %3748  ;;  %3946 = vmatprep.subr.bf16.mxu1 %v3861_v19  ;;  %v3722_v56 = vsel %vm1185_vm1, %v10523_v30, %v3693_v41  ;;  %v10539_v27 = vpack.c.bf16 %v10537_v61, %v10538_v17  ;;  %v10541_v42 = vld [vmem:[#allocation58_spill] sm:$0xff]  ;;  %v10542_v35 = vld [vmem:[#allocation60_spill] sm:$0xff]  ;;  %v10553_v17 = vld [vmem:[#allocation79_spill] sm:$0xff] }
 0xaf9   : > { %3947 = vmatpush1.bf16.msra.mxu1 %v3860_v39  ;;  %v3736_v49 = vmul.f32 %v3722_v56, %v10531_v15  ;;  %v3786_v3 = vsel %vm1218_vm2, %v9374_v28, %v3757_v32  ;;  %v3674_v53 = vmul.f32 %v3650_v57, %v10541_v42  ;;  %v10544_v56 = vld [vmem:[#allocation71_spill] sm:$0xff] }
 0xafa   : > { %v3854_v31 = vpack.c.bf16 %v3614_v22, %v3610_v52  ;;  %3948 = vmatprep.subr.bf16.mxu1 %v10526_v11  ;;  %v3695_v23 = vpop.permute.xlu0 %3694  ;;  %v3855_v5 = vpack.c.bf16 %v3615_v59, %v3611_v14  ;;  %v3675_v52 = vmul.f32 %v3662_v18, %v10542_v35  ;;  %v10543_v59 = vld [vmem:[#allocation97_spill] sm:$0xff]  ;;  %v10547_v11 = vpack.c.bf16 %v10545_v13, %v10546_v8 }
 0xafb   : > { %v3719_v41 = vsel %vm1185_vm1, %v3695_v23, %v10529_v9  ;;  %v3723_v4 = vsel %vm1185_vm1, %v10530_v58, %v3695_v23  ;;  %v3789_v54 = vsel %vm1218_vm2, %v9324_v1, %v10543_v59  ;;  %v4628_v23 = vld [vmem:[%s9638_s4 + $0x20] ss:$0 sm:$0xff] }
 0xafc   : > { %v3740_v16 = vmul.f32 %v3723_v4, %v10531_v15  ;;  %v3741_v26 = vmul.f32 %v3719_v41, %v10532_v47  ;;  %v3705_v33 = vpop.permute.xlu1 %3704  ;;  %4024 = vmatprep.subr.bf16.mxu0 %v3855_v5  ;;  %v3800_v5 = vmul.f32 %v4628_v23, %v3786_v3  ;;  %v10548_v15 = vld [vmem:[#allocation85_spill] sm:$0xff] }
 0xafd   : > { %v3724_v46 = vsel %vm1185_vm1, %v3705_v33, %v10533_v44  ;;  %3949 = vmatpush1.bf16.msra.mxu1 %v10536_v12  ;;  %4025 = vmatpush1.bf16.msra.mxu0 %v3854_v31  ;;  %v3712_v50 = vsel %vm1185_vm1, %v10540_v51, %v3705_v33 }
 0xafe   : > { %v3868_v39 = vpack.c.bf16 %v3740_v16, %v3736_v49  ;;  %4026 = vmatprep.subr.bf16.mxu0 %v10539_v27  ;;  %v3647_v19 = vpop.permute.xlu0 %3646  ;;  %v3869_v34 = vpack.c.bf16 %v3741_v26, %v3737_v21  ;;  %v3731_v0 = vmul.f32 %v3724_v46, %v10528_v2  ;;  %v3730_v41 = vmul.f32 %v3712_v50, %v10527_v10  ;;  %v10549_v49 = vld [vmem:[#allocation101_spill] sm:$0xff]  ;;  %v4629_v26 = vld [vmem:[%s9638_s4 + $0x38] ss:$0 sm:$0xff]  ;;  %v10551_v46 = vld [vmem:[#allocation99_spill] sm:$0xff] }
 0xaff   : > { %v3651_v38 = vsel %vm1152_vm0, %v10509_v55, %v3647_v19  ;;  %v3663_v32 = vsel %vm1152_vm0, %v3647_v19, %v10510_v25  ;;  %v4627_v55 = vld [vmem:[%s9638_s4 + $0x28] ss:$0 sm:$0xff]  ;;  %v10550_v47 = vpack.c.bf16 %v10548_v15, %v10549_v49  ;;  %v3799_v3 = vmul.f32 %v4629_v26, %v3789_v54  ;;  %v10555_v19 = vld [vmem:[#allocation94_spill] sm:$0xff] }
 0xb00   : > { %v3678_v29 = vmul.f32 %v3651_v38, %v10541_v42  ;;  %v3679_v14 = vmul.f32 %v3663_v32, %v10542_v35  ;;  %v3769_v22 = vpop.permute.xlu1 %3768  ;;  %3950 = vmatprep.subr.bf16.mxu1 %v3869_v34  ;;  %v3801_v25 = vmul.f32 %v4627_v55, %v3782_v60  ;;  %v3867_v44 = vpack.c.bf16 %v3735_v43, %v3731_v0  ;;  %v10552_v43 = vld [vmem:[#allocation91_spill] sm:$0xff]  ;;  %v10563_v49 = vld [vmem:[#allocation44_spill] sm:$0xff] }
 0xb01   : > { %v3788_v31 = vsel %vm1218_vm2, %v3769_v22, %v10544_v56  ;;  %3951 = vmatpush1.bf16.msra.mxu1 %v3868_v39  ;;  %4027 = vmatpush1.bf16.msra.mxu0 %v10547_v11  ;;  %v3776_v40 = vsel %vm1218_vm2, %v10551_v46, %v3769_v22  ;;  %v10554_v27 = vpack.c.bf16 %v10552_v43, %v10553_v17  ;;  %v10559_v11 = vld [vmem:[#allocation36_spill] sm:$0xff] }
 0xb02   : > { %v3862_v4 = vpack.c.bf16 %v3678_v29, %v3674_v53  ;;  %3961 = vmatprep.subr.bf16.mxu1 %v10550_v47  ;;  %v3759_v21 = vpop.permute.xlu0 %3758  ;;  %v3863_v16 = vpack.c.bf16 %v3679_v14, %v3675_v52  ;;  %v3795_v33 = vmul.f32 %v4629_v26, %v3788_v31  ;;  %v3777_v34 = vsel %vm1218_vm2, %v10555_v19, %v9324_v1  ;;  %v10564_v47 = vld [vmem:[#allocation43_spill] sm:$0xff] }
 0xb03   : > { %v3783_v57 = vsel %vm1218_vm2, %v3759_v21, %v9274_v62  ;;  %v3787_v18 = vsel %vm1218_vm2, %v9280_v48, %v3759_v21  ;;  %v3866_v51 = vpack.c.bf16 %v9390_v36, %v3730_v41  ;;  %v10556_v53 = vmov 0   ;;  %v10561_v41 = vld [vmem:[#allocation42_spill] sm:$0xff] }
 0xb04   : > { %v3804_v63 = vmul.f32 %v4628_v23, %v3787_v18  ;;  %v3805_v12 = vmul.f32 %v4627_v55, %v3783_v57  ;;  %v3709_v60 = vpop.permute.xlu1 %3708  ;;  %3953 = vmatmul.mubr.bf16.vlgmr.msra.gmra.mrb[28].mxu1 %v9356_v6  ;;  %4028 = vmatprep.subr.bf16.mxu0 %v3863_v16  ;;  %v3875_v1 = vpack.c.bf16 %v3799_v3, %v3795_v33  ;;  %v10560_v23 = vld [vmem:[#allocation35_spill] sm:$0xff]  ;;  %v10565_v18 = vlaneseq }
 0xb05   : > { %v3714_v39 = vsel %vm1185_vm1, %v10522_v24, %v3709_v60  ;;  %v3726_v61 = vsel %vm1185_vm1, %v3709_v60, %v10523_v30  ;;  %3962 = vmatpush1.bf16.msra.mxu1 %v10554_v27  ;;  %4029 = vmatpush1.bf16.msra.mxu0 %v3862_v4  ;;  %v4630_v30 = vld [vmem:[%s9638_s4 + $0x30] ss:$0 sm:$0xff]  ;;  %v4181_v21 = vcombine.low %v10564_v47, %v10563_v49 }
 0xb06   : > { %v3876_v50 = vpack.c.bf16 %v3804_v63, %v3800_v5  ;;  %4030 = vmatprep.subr.bf16.mxu0 %v3867_v44  ;;  %v3711_v0 = vpop.permute.xlu0 %3710  ;;  %v3877_v24 = vpack.c.bf16 %v3805_v12, %v3801_v25  ;;  %v3794_v38 = vmul.f32 %v4630_v30, %v3776_v40  ;;  %3993 = vmatprep.mubr.bf16.mxu1 %v10556_v53  ;;  %v10562_v4 = vld [vmem:[#allocation41_spill] sm:$0xff]  ;;  %vm9530_vm6 = vcmp.lt.s32.totalorder %v10565_v18, 512 }
 0xb07   : > { %v3715_v32 = vsel %vm1185_vm1, %v10529_v9, %v3711_v0  ;;  %v3727_v42 = vsel %vm1185_vm1, %v3711_v0, %v10530_v58  ;;  %v3738_v36 = vmul.f32 %v3714_v39, %v10527_v10  ;;  %v3739_v35 = vmul.f32 %v3726_v61, %v10528_v2 }
 0xb08   : > { %v3742_v52 = vmul.f32 %v3715_v32, %v10527_v10  ;;  %v3743_v29 = vmul.f32 %v3727_v42, %v10528_v2  ;;  %v3773_v14 = vpop.permute.xlu1 %3772  ;;  %3963 = vmatprep.subr.bf16.mxu1 %v3877_v24  ;;  %v3798_v22 = vmul.f32 %v4630_v30, %v3777_v34  ;;  %v4155_v5 = vcombine.low %v10560_v23, %v10559_v11 }
 0xb09   : > { %v3778_v9 = vsel %vm1218_vm2, %v9265_v20, %v3773_v14  ;;  %v3790_v58 = vsel %vm1218_vm2, %v3773_v14, %v9374_v28  ;;  %3964 = vmatpush1.bf16.msra.mxu1 %v3876_v50  ;;  %4031 = vmatpush1.bf16.msra.mxu0 %v3866_v51  ;;  %v4180_v15 = vcombine.low %v10562_v4, %v10561_v41 }
 0xb0a   : > { %v3870_v59 = vpack.c.bf16 %v3742_v52, %v3738_v36  ;;  %4043 = vmatprep.subr.bf16.mxu1 %v3875_v1  ;;  %v3775_v54 = vpop.permute.xlu0 %3774  ;;  %v3871_v55 = vpack.c.bf16 %v3743_v29, %v3739_v35  ;;  %v3874_v10 = vpack.c.bf16 %v3798_v22, %v3794_v38  ;;  %v3802_v25 = vmul.f32 %v4630_v30, %v3778_v9 }
 0xb0b   : > { %v3779_v2 = vsel %vm1218_vm2, %v9274_v62, %v3775_v54  ;;  %v3791_v20 = vsel %vm1218_vm2, %v3775_v54, %v9280_v48  ;;  %v3803_v56 = vmul.f32 %v4629_v26, %v3790_v58  ;;  %v10558_v62 = vld [vmem:[#allocation32_spill] sm:$0xff] }
 0xb0c   : > { %v3806_v31 = vmul.f32 %v4630_v30, %v3779_v2  ;;  %v3807_v13 = vmul.f32 %v4629_v26, %v3791_v20  ;;  %4381 = vmatmul.mubr.msk.bf16.vlgmr.msra.gmra.mrb[32].mxu1 %vm2181_vm4, %v9387_v7  ;;  %4032 = vmatprep.subr.bf16.mxu0 %v3871_v55  ;;  %v4154_v48 = vcombine.low %v10558_v62, %v10557_v45 }
 0xb0d   : > { %4033 = vmatpush1.bf16.msra.mxu0 %v3870_v59  ;;  %4044 = vmatpush1.bf16.msra.mxu1 %v3874_v10  ;;  %v4188_v26 = vrot.slane %v4180_v15, %v10516_v37 }
 0xb0e   : > { %v3878_v28 = vpack.c.bf16 %v3806_v31, %v3802_v25  ;;  %v3879_v8 = vpack.c.bf16 %v3807_v13, %v3803_v56  ;;  %4075 = vmatprep.mubr.bf16.mxu1 %v10556_v53  ;;  %v4162_v16 = vrot.slane %v4154_v48, %v10516_v37 }
 0xb10   : > { %4035 = vmatmul.mubr.bf16.vlgmr.msra.gmra.mrb[28].mxu0 %v9356_v6  ;;  %4045 = vmatprep.subr.bf16.mxu1 %v3879_v8  ;;  %v4169_v6 = vrot.slane %v4155_v5, %v10516_v37 }
 0xb11   : > { %4046 = vmatpush1.bf16.msra.mxu1 %v3878_v28 }
 0xb12   : > { %v4170_v33 = vcombine.low %v4162_v16, %v4169_v6 }
 0xb14   : > { %4382 = vmatmul.mubr.msk.bf16.vlgmr.msra.gmra.mrb[36].mxu1 %vm2181_vm4, %v9387_v7  ;;  %v4195_v7 = vrot.slane %v4181_v21, %v10516_v37  ;;  %v4177_v46 = vrot.slane %v4170_v33, %v10516_v37 }
 0xb16   : > { %v4196_v57 = vcombine.low %v4188_v26, %v4195_v7  ;;  %4179 = vst.msk [vmem:[#allocation4] sm:$0xf] %vm9530_vm6, %v4177_v46 }
 0xb18   : > { %v4203_v40 = vrot.slane %v4196_v57, %v10516_v37 }
 0xb1a   : > { %4205 = vst.msk [vmem:[#allocation5] sm:$0xf] %vm9530_vm6, %v4203_v40 }
 0xb1b   : > { %4756 = shalt.err (!%p4753_p9)
}
 0xb1c   : > { %s4757_s21 = scalar_lea.hbm %s9648_s14, 16  ;;  %p10569_p4 = pmov %p10568_p3 }
 0xb1d   : > { %p4758_p10 = scmp.ne.s32.totalorder %s9648_s14, %s4757_s21  ;;  %p4763_p8 = scmp.lt.u32.totalorder %s4757_s21, %s9648_s14 }
 0xb1f   : > { %p4759_p13 = pnand %p4758_p10, %p10569_p4 }
 0xb21   : > { %p4760_p7 = pneg %p4759_p13 }
 0xb23   : > { %p4765_p12 = pnand %p4763_p8, %p4760_p7 }
 0xb25   : > { %4768 = shalt.err (!%p4765_p12)
}
 0xb26   : > { %p10570_p0 = pmov %p10568_p3  ;;  %v3885_v60 = vpop.permute.xlu1 %3884  ;;  %s4084_s16 = sld [smem:[#allocation6]]  ;;  %v10571_v61 = vld [vmem:[#allocation34_spill] sm:$0xff]  ;;  %v4085_v27 = vadd.f32 %v10562_v4, %v10558_v62  ;;  %v4086_v51 = vadd.f32 %v10561_v41, %v10557_v45  ;;  %v10572_v14 = vld [vmem:[#allocation37_spill] sm:$0xff]  ;;  %v4087_v59 = vadd.f32 %v10564_v47, %v10560_v23  ;;  %v4088_v2 = vadd.f32 %v10563_v49, %v10559_v11  ;;  %v10574_v23 = vld [vmem:[#allocation39_spill] sm:$0xff] }
 0xb27   : > { %v3890_v43 = vrot.slane %v3885_v60, %v10571_v61  ;;  %v10573_v54 = vld [vmem:[#allocation38_spill] sm:$0xff]  ;;  %v10575_v4 = vld [vmem:[#allocation40_spill] sm:$0xff]  ;;  %s4392_s13 = sshll.u32 %s4976_s3, 6  ;;  %s10576_s17 = scalar_lea.vmem [#allocation16], %s5131_s27 }
 0xb28   : > { %4509 = dma.vmem_to_hbm [thread:$0]  (%p10570_p0), %s4234_s25, 16, %s9648_s14, [#allocation18]  }
 0xb29   : > { %s10577_s20 = sld [smem:[#allocation29_spill]]  ;;  %s4222_s25 = sshll.u32 %s10576_s17, 4  ;;  %s9583_s25 = int_to_ptr.vmem [resolvable:$true] %s4222_s25 }
 0xb2a   : > { %s10578_s26 = sld [smem:[#allocation127_spill]]  ;;  %s10579_s21 = smov %s10576_s17 }
 0xb2b   : > { %s10580_s24 = sand.u32 1, %s4839_s18   ;;  %s4769_s28 = scalar_lea.vmem %s9583_s25, 64 }
 0xb2c   : > { %v4093_v24 = vstv %s4084_s16  ;;  %s4208_s23 = scalar_lea.sflag [#allocation10], %s10580_s24  ;;  %p4770_p3 = scmp.ne.s32.totalorder %s9583_s25, %s4769_s28 }
 0xb2d   : > { %s4873_s15 = smov [#allocation16]  }
 0xb2e   : > { %s4773_s12 = sshll.u32 %s4873_s15, 4  ;;  %s4774_s12 = int_to_ptr.vmem [resolvable:$false] %s4773_s12 }
 0xb2f   : > { %p10581_p2 = scmp.ne.s32.totalorder %s10577_s20, 0  ;;  %s4775_s22 = scalar_lea.vmem %s4774_s12, 128 }
 0xb30   : > { %s9581_s30 = scalar_lea.hbm %s10578_s26, %s4392_s13  ;;  %p4776_p11 = scmp.lt.s32.totalorder %s9583_s25, %s4774_s12 }
 0xb31   : > { %p4771_p6 = pnand %p4770_p3, %p10581_p2  ;;  %p4777_p1 = scmp.lt.s32.totalorder %s4775_s22, %s4769_s28 }
 0xb33   : > { %p4772_p5 = pneg %p4771_p6  ;;  %p4778_p9 = por %p4777_p1, %p4776_p11 }
 0xb35   : > { %p4779_p10 = pnand %p4778_p9, %p4772_p5 }
 0xbd7   : > { %v3954_v63 = vpop.f32.mrb[28].mxu1 }
 0xbd8   : > { %v3956_v12 = vpop.f32.mrb[29].mxu1  ;;  %v3955_v17 = vadd.f32 %v3954_v63, %v3890_v43 }
 0xbd9   : > { %v3958_v3 = vpop.f32.mrb[30].mxu1  ;;  %v3957_v19 = vadd.f32 %v3956_v12, %v3890_v43 }
 0xbda   : > { %v3959_v39 = vpop.f32.mrb[31].mxu1 }
 0xbdf   : > { %v3995_v34 = vpop.f32.mrb[32].mxu1 }
 0xbe0   : > { %v3996_v50 = vadd.f32 %v3995_v34, %v3955_v17  ;;  %v3997_v0 = vpop.f32.mrb[33].mxu1 }
 0xbe1   : > { %v3998_v30 = vadd.f32 %v3997_v0, %v3957_v19  ;;  %v3999_v38 = vpop.f32.mrb[34].mxu1 }
 0xbe2   : > { %v4089_v32 = vadd.f32 %v4085_v27, %v3996_v50  ;;  %v4000_v42 = vpop.f32.mrb[35].mxu1 }
 0xbe3   : > { %v4090_v1 = vadd.f32 %v4086_v51, %v3998_v30  ;;  %v4036_v53 = vpop.f32.mrb[28].mxu0 }
 0xbe4   : > { %v4094_v36 = vmul.f32 %v4093_v24, %v4089_v32  ;;  %v4038_v35 = vpop.f32.mrb[29].mxu0  ;;  %v4037_v9 = vadd.f32 %v4036_v53, %v3890_v43 }
 0xbe5   : > { %v4095_v52 = vmul.f32 %v4093_v24, %v4090_v1  ;;  %v4040_v29 = vpop.f32.mrb[30].mxu0  ;;  %v4039_v10 = vadd.f32 %v4038_v35, %v3890_v43 }
 0xbe6   : > { %v4098_v22 = vsub.f32 %v10572_v14, %v4094_v36  ;;  %v4041_v58 = vpop.f32.mrb[31].mxu0 }
 0xbe7   : > { %v4099_v55 = vsub.f32 %v10573_v54, %v4095_v52  ;;  %v4077_v25 = vpop.f32.mrb[36].mxu1 }
 0xbe8   : > { %v4078_v20 = vadd.f32 %v4077_v25, %v4037_v9  ;;  %v4079_v56 = vpop.f32.mrb[37].mxu1 }
 0xbe9   : > { %v4124_v31 = vcombine.low %v4098_v22, %v4099_v55  ;;  %v4080_v13 = vadd.f32 %v4079_v56, %v4039_v10  ;;  %v4081_v28 = vpop.f32.mrb[38].mxu1 }
 0xbea   : > { %v4091_v8 = vadd.f32 %v4087_v59, %v4078_v20  ;;  %v4082_v45 = vpop.f32.mrb[39].mxu1 }
 0xbeb   : > { %v4092_v62 = vadd.f32 %v4088_v2, %v4080_v13  ;;  %v4132_v16 = vrot.slane %v4124_v31, %v10516_v37 }
 0xbec   : > { %v4096_v48 = vmul.f32 %v4093_v24, %v4091_v8 }
 0xbed   : > { %v4097_v5 = vmul.f32 %v4093_v24, %v4092_v62 }
 0xbee   : > { %v4100_v41 = vsub.f32 %v10574_v23, %v4096_v48 }
 0xbef   : > { %v4101_v15 = vsub.f32 %v10575_v4, %v4097_v5 }
 0xbf0   : > { %v4104_v47 = vrot.slane %v4100_v41, 7 }
 0xbf1   : > { %v4105_v11 = vrot.slane %v4101_v15, 7  ;;  %v4125_v49 = vcombine.low %v4100_v41, %v4101_v15 }
 0xbf2   : > { %v4108_v21 = vsel %vm944_vm5, %v4098_v22, %v4104_v47 }
 0xbf3   : > { %v4139_v6 = vrot.slane %v4125_v49, %v10516_v37  ;;  %v4109_v26 = vsel %vm944_vm5, %v4099_v55, %v4105_v11 }
 0xbf4   : > { %v4112_v7 = vcombine.low %v4108_v21, %v4109_v26 }
 0xbf5   : > { %v4140_v33 = vcombine.low %v4132_v16, %v4139_v6 }
 0xbf6   : > { %4383 = vst.sshfl [vmem:[#allocation2] sm:$0x33 pattern:$0x76325410] %v4112_v7 }
 0xbf7   : > { %4384 = vst.sshfl [vmem:[%s10579_s21] sm:$0x33 pattern:$0x76325410] %v4112_v7  ;;  %v4147_v57 = vrot.slane %v4140_v33, %v10516_v37 }
 0xbf8   : > { %4782 = shalt.err (!%p4779_p10)
}
 0xbf9   : > { %s4783_s27 = scalar_lea.hbm %s9581_s30, 64  ;;  %s4787_s17 = scalar_lea.hbm %s10578_s26, 128 }
 0xbfa   : > { %p4784_p4 = scmp.ne.s32.totalorder %s9581_s30, %s4783_s27  ;;  %p4788_p8 = scmp.lt.u32.totalorder %s9581_s30, %s10578_s26 }
 0xbfb   : > { %p4789_p12 = scmp.lt.u32.totalorder %s4787_s17, %s4783_s27  ;;  %p4791_p3 = scmp.lt.u32.totalorder %s4783_s27, %s9581_s30 }
 0xbfc   : > { %p4785_p13 = pnand %p4784_p4, %p10581_p2 }
 0xbfd   : > { %p4790_p0 = por %p4789_p12, %p4788_p8 }
 0xbfe   : > { %p4786_p7 = pneg %p4785_p13 }
 0xbff   : > { %p4792_p6 = por %p4791_p3, %p4790_p0 }
 0xc01   : > { %p4793_p5 = pnand %p4792_p6, %p4786_p7 }
 0xc03   : > { %4796 = shalt.err (!%p4793_p5)
}
 0xc04   : > { %4507 = dma.vmem_to_hbm [thread:$0]  (%p10581_p2), %s9583_s25, 64, %s9581_s30, %s4208_s23   ;;  %4153 = vst.msk [vmem:[#allocation3] sm:$0xf] %vm9530_vm6, %v4147_v57 }
 0xc05   : > { %p10582_p11 = scmp.eq.s32.totalorder %s4976_s3, 1 }
 0xc07   : > { %4826 = dma.done.wait (%p10582_p11), [#allocation18], 16   ;;  %p10583_p1 = pmov %p10582_p11 }
 0xc09   : > { %4828 = vsyncadd (%p10583_p1), [#allocation18], 4294967280 }
 0xc0a PF: > { %s10584_s21 = sld [smem:[#allocation26_spill]]  ;;  %s10585_s24 = sld [smem:[#allocation24_spill]] }
 0xc0b   : > { %s10586_s28 = sld [smem:[#allocation30_spill]] }
 0xc10   : > { %p4540_p9 = scmp.ge.s32.totalorder %s10584_s21, 2  ;;  %s4249_s15 = sand.u32 1, %s10585_s24  }
 0xc11   : > { %p10587_p10 = scmp.ne.s32.totalorder %s10586_s28, 0  ;;  %s4250_s20 = scalar_lea.sflag [#allocation10], %s4249_s15 }
 0xc13   : > { %p4527_p4 = pnand %p4540_p9, %p10587_p10 }
 0xc15   : > { %4830 = dma.done.wait (!%p4527_p4), %s4250_s20, 64  }
 0xc16   : > { %4832 = vsyncadd (!%p4527_p4), %s4250_s20, 4294967232  ;;  %s10588_s20 = sld [smem:[#allocation27_spill]]  ;;  %s10589_s25 = sld [smem:[#allocation25_spill]] }
 0xc17   : > { %s10590_s19 = sld [smem:[#allocation28_spill]]  ;;  %s10591_s17 = smov %s4839_s18 }
 0xc1c   : > { %p32_p2 = scmp.ge.s32.totalorder %s10588_s20, 4   ;;  %s10592_s18 = smov %s10589_s25 }
 0xc1e   :  { %34 = sbr.rel (!%p32_p2) target bundleno = 10 (0xa), region = 141 }
 0xc25   :  { %4255 = vsyncpa [#allocation9], 1 }
 0xc26   :  { %4257 = vsyncpa [#allocation9 + $0x1], 1 }
 0xc27   :  { %4258 = vsyncpa [#allocation12], 1 }
 0xc28   :  { %4259 = vsyncpa [#allocation15], 1 }
 0xc29   :  { %4260 = vsyncpa [#allocation10], 1 }
 0xc2a   :  { %4262 = vsyncpa [#allocation10 + $0x1], 1 }
 0xc2b   :  { %4263 = vsyncpa [#allocation18], 1 }

</bundles_post_ra>
